<compile_context>
chip_gen: v7x
topology: tpu7x:2x2x1
jax: 0.10.0
libtpu: 0.0.40
codegen_flags: <defaults>
</compile_context>

<pallas_src>
import functools

import jax
import jax.numpy as jnp
from jax import lax
from jax.experimental import pallas as pl
from jax.experimental.pallas import tpu as pltpu


def _round_up(x, m):
    return (x + m - 1) // m * m


# ----------------------------------------------------------------------------
# Pallas kernel: tiled matmul (bf16 in, f32 accumulate into resident output)
# with fused per-channel affine + activation on the last K step.
# ----------------------------------------------------------------------------
def _matmul_fused_kernel(x_ref, w_ref, s_ref, b_ref, o_ref, *,
                         slope, use_sigmoid):
    k = pl.program_id(2)

    @pl.when(k == 0)
    def _():
        o_ref[...] = jnp.zeros_like(o_ref)

    # bf16 x bf16 -> f32 accumulation on the MXU; o_ref's block index is
    # constant along the K grid axis, so it stays resident and acts as the
    # accumulator.
    o_ref[...] += jnp.dot(x_ref[...], w_ref[...],
                          preferred_element_type=jnp.float32)

    @pl.when(k == pl.num_programs(2) - 1)
    def _():
        y = o_ref[...] * s_ref[...] + b_ref[...]
        if use_sigmoid:
            # exp + reciprocal both land on the EUP slot (off the VALU path).
            y = pl.reciprocal(1.0 + jnp.exp(-y), approx=True)
        elif slope is not None:
            y = jnp.where(y >= 0, y, slope * y)
        o_ref[...] = y


# ----------------------------------------------------------------------------
# im2col glue (plain JAX): NCHW -> (N*Ho*Wo, Cin*kh*kw), K ordered (C, kh, kw)
# to match PyTorch OIHW weights reshaped to (Cout, Cin*kh*kw).
# ----------------------------------------------------------------------------
def _im2col(x, kh, kw, stride, pad):
    N, C, H, W = x.shape
    xp = jnp.pad(x, ((0, 0), (0, 0), (pad, pad), (pad, pad)))
    Ho = (H + 2 * pad - kh) // stride + 1
    Wo = (W + 2 * pad - kw) // stride + 1
    cols = []
    for i in range(kh):
        for j in range(kw):
            cols.append(xp[:, :, i:i + stride * Ho:stride,
                           j:j + stride * Wo:stride])  # (N, C, Ho, Wo)
    stacked = jnp.stack(cols, axis=-1)                   # (N, C, Ho, Wo, kh*kw)
    stacked = jnp.transpose(stacked, (0, 2, 3, 1, 4))    # (N, Ho, Wo, C, kh*kw)
    patches = stacked.reshape(N * Ho * Wo, C * kh * kw)
    return patches, Ho, Wo


# ----------------------------------------------------------------------------
# One conv (+affine +activation) layer via the Pallas kernel
# ----------------------------------------------------------------------------
def conv_layer_pallas(x, weight, scale, bias, *, stride, pad,
                      slope=None, sigmoid=False):
    N = x.shape[0]
    Cout, Cin, kh, kw = weight.shape

    patches, Ho, Wo = _im2col(x, kh, kw, stride, pad)
    M, K = patches.shape
    w2 = weight.reshape(Cout, Cin * kh * kw).T            # (K, Cout)

    # Tile selection:
    #  * tk/tn = 256 when the padded extent allows (feeds the 256x256 MXU on
    #    v6e/v7x), else 128 (avoids extra K/N padding on small layers).
    #  * tm caps the rows per block at 512 so per-step VMEM is
    #    ~(tm*tk + tk*tn)*2B (bf16, double-buffered) + tm*tn*4B (f32 out),
    #    i.e. a few MiB -- well inside v7x's 64 MiB VMEM at any image size.
    K_pad = _round_up(K, 128)
    tk = 256 if K_pad % 256 == 0 else 128
    N_pad = _round_up(Cout, 128)
    tn = 256 if N_pad % 256 == 0 else 128
    tm = min(512, _round_up(M, 16))        # multiple of 16 for bf16 sublanes
    M_pad = _round_up(M, tm)

    # bf16 matmul operands (MXU-native), f32 affine params.
    xp = jnp.zeros((M_pad, K_pad), jnp.bfloat16).at[:M, :K].set(
        patches.astype(jnp.bfloat16))
    wp = jnp.zeros((K_pad, N_pad), jnp.bfloat16).at[:K, :Cout].set(
        w2.astype(jnp.bfloat16))
    sp = jnp.zeros((1, N_pad), jnp.float32).at[0, :Cout].set(scale)
    bp = jnp.zeros((1, N_pad), jnp.float32).at[0, :Cout].set(bias)

    kernel = functools.partial(_matmul_fused_kernel,
                               slope=slope, use_sigmoid=sigmoid)

    out = pl.pallas_call(
        kernel,
        out_shape=jax.ShapeDtypeStruct((M_pad, N_pad), jnp.float32),
        grid_spec=pltpu.PrefetchScalarGridSpec(
            num_scalar_prefetch=0,
            grid=(M_pad // tm, N_pad // tn, K_pad // tk),   # K innermost
            in_specs=[
                pl.BlockSpec((tm, tk), lambda m, n, k: (m, k)),
                pl.BlockSpec((tk, tn), lambda m, n, k: (k, n)),
                pl.BlockSpec((1, tn), lambda m, n, k: (0, n)),
                pl.BlockSpec((1, tn), lambda m, n, k: (0, n)),
            ],
            out_specs=pl.BlockSpec((tm, tn), lambda m, n, k: (m, n)),
        ),
        compiler_params=pltpu.CompilerParams(
            dimension_semantics=("parallel", "parallel", "arbitrary")),
    )(xp, wp, sp, bp)

    out = out[:M, :Cout].reshape(N, Ho, Wo, Cout)
    return jnp.transpose(out, (0, 3, 1, 2))               # back to NCHW


# ----------------------------------------------------------------------------
# Model definition (layer configs mirror the PyTorch Sequential exactly)
# ----------------------------------------------------------------------------
LAYER_CFGS = [
    # (cin, cout, ksize, stride, pad, has_bn, slope, sigmoid)
    (1,   64,  3, 1, 1, False, 0.01, False),   # Conv + LeakyReLU() [slope 0.01]
    (64,  64,  4, 2, 1, True,  0.2,  False),   # conv_bn_lrelu
    (64,  128, 3, 1, 1, True,  0.2,  False),
    (128, 128, 4, 2, 1, True,  0.2,  False),
    (128, 256, 3, 1, 1, True,  0.2,  False),
    (256, 256, 4, 2, 1, True,  0.2,  False),
    (256, 512, 3, 1, 1, True,  0.2,  False),
    (512, 512, 3, 1, 1, True,  0.2,  False),
    (512, 1,   3, 1, 1, False, None, True),    # Conv + Sigmoid
]

BN_EPS = 1e-5


def init_params(key):
    """Deterministic init mirroring Discriminator.init_params (eval-mode BN)."""
    params = []
    for (cin, cout, k, s, p, has_bn, slope, sig) in LAYER_CFGS:
        key, wk, bk, gk = jax.random.split(key, 4)
        w = 0.02 * jax.random.normal(wk, (cout, cin, k, k), jnp.float32)
        if has_bn:
            gamma = 1.0 + 0.02 * jax.random.normal(gk, (cout,), jnp.float32)
            beta = jnp.zeros((cout,), jnp.float32)
            # eval-mode BN with running_mean=0, running_var=1
            scale = gamma / jnp.sqrt(1.0 + BN_EPS)
            shift = beta
        else:
            conv_bias = 0.02 * jax.random.normal(bk, (cout,), jnp.float32)
            scale = jnp.ones((cout,), jnp.float32)
            shift = conv_bias
        params.append((w, scale, shift))
    return params


def discriminator_forward(x, params):
    out = x
    for (w, scale, shift), cfg in zip(params, LAYER_CFGS):
        _, _, k, s, p, _, slope, sig = cfg
        out = conv_layer_pallas(out, w, scale, shift, stride=s, pad=p,
                                slope=slope, sigmoid=sig)
    return out


# Pure-JAX (f32) reference for a sanity check
def discriminator_ref(x, params):
    out = x
    for (w, scale, shift), cfg in zip(params, LAYER_CFGS):
        _, _, k, s, p, _, slope, sig = cfg
        y = lax.conv_general_dilated(
            out, w, window_strides=(s, s), padding=[(p, p), (p, p)],
            dimension_numbers=("NCHW", "OIHW", "NCHW"),
            precision=lax.Precision.HIGHEST)
        y = y * scale[None, :, None, None] + shift[None, :, None, None]
        if sig:
            y = 1.0 / (1.0 + jnp.exp(-y))
        elif slope is not None:
            y = jnp.where(y >= 0, y, slope * y)
        out = y
    return out


if __name__ == "__main__":
    key = jax.random.PRNGKey(0)
    pkey, xkey = jax.random.split(key)
    params = init_params(pkey)

    # Small input consistent with the module (1 input channel, NCHW)
    x = jax.random.normal(xkey, (2, 1, 16, 16), jnp.float32)

    fwd = jax.jit(discriminator_forward)
    out = fwd(x, params)
    out = jax.block_until_ready(out)

    ref = jax.block_until_ready(discriminator_ref(x, params))
    assert out.shape == ref.shape == (2, 1, 2, 2), out.shape
    # bf16 matmul operands (f32 accumulation) vs. f32 reference: keep a
    # slightly relaxed tolerance on the sigmoid output.
    assert jnp.allclose(out, ref, rtol=1e-2, atol=1e-2), (
        float(jnp.max(jnp.abs(out - ref))))

    print("KERNEL_OK")
</pallas_src>

<mosaic_0001>
module attributes {stable_mosaic.version = 11 : i64} {
  func.func @_matmul_fused_kernel(%arg0: i32, %arg1: i32, %arg2: i32, %arg3: memref<512x128xbf16, #tpu.memory_space<vmem>>, %arg4: memref<128x128xbf16, #tpu.memory_space<vmem>>, %arg5: memref<1x128xf32, #tpu.memory_space<vmem>>, %arg6: memref<1x128xf32, #tpu.memory_space<vmem>>, %arg7: memref<512x128xf32, #tpu.memory_space<vmem>>) attributes {dimension_semantics = [#tpu.dimension_semantics<parallel>, #tpu.dimension_semantics<parallel>, #tpu.dimension_semantics<arbitrary>], iteration_bounds = array<i64: 1, 1, 1>, scalar_prefetch = 0 : i64, scratch_operands = 0 : i64, tpu.core_type = #tpu.core_type<tc>, window_params = [{transform_indices = @transform_0, window_bounds = array<i64: 512, 128>}, {transform_indices = @transform_1, window_bounds = array<i64: 128, 128>}, {transform_indices = @transform_2, window_bounds = array<i64: 1, 128>}, {transform_indices = @transform_3, window_bounds = array<i64: 1, 128>}, {transform_indices = @transform_4, window_bounds = array<i64: 512, 128>}]} {
    %c0_i32 = arith.constant 0 : i32
    %0 = arith.cmpi eq, %arg2, %c0_i32 : i32
    %1 = arith.extui %0 : i1 to i32
    %c0_i32_0 = arith.constant 0 : i32
    %2 = arith.cmpi ne, %1, %c0_i32_0 : i32
    scf.if %2 {
      %cst_10 = arith.constant 0.000000e+00 : f32
      %12 = vector.broadcast %cst_10 : f32 to vector<512x128xf32>
      %c0_11 = arith.constant 0 : index
      %c0_12 = arith.constant 0 : index
      %13 = vector.load %arg7[%c0_11, %c0_12] : memref<512x128xf32, #tpu.memory_space<vmem>>, vector<512x128xf32>
      tpu.vector_store %arg7[%c0_11, %c0_12], %12 {strides = array<i32>} : memref<512x128xf32, #tpu.memory_space<vmem>>, vector<512x128xf32>,
    } else {
    }
    %c0 = arith.constant 0 : index
    %c0_1 = arith.constant 0 : index
    %3 = vector.load %arg7[%c0, %c0_1] : memref<512x128xf32, #tpu.memory_space<vmem>>, vector<512x128xf32>
    %c0_2 = arith.constant 0 : index
    %c0_3 = arith.constant 0 : index
    %4 = vector.load %arg3[%c0_2, %c0_3] : memref<512x128xbf16, #tpu.memory_space<vmem>>, vector<512x128xbf16>
    %c0_4 = arith.constant 0 : index
    %c0_5 = arith.constant 0 : index
    %5 = vector.load %arg4[%c0_4, %c0_5] : memref<128x128xbf16, #tpu.memory_space<vmem>>, vector<128x128xbf16>
    %cst = arith.constant dense<0.000000e+00> : vector<512x128xf32>
    %6 = tpu.matmul %4, %5, %cst {dimension_numbers = #tpu.dot_dimension_numbers<[1], [0], [0], [1], [0, 0, 1, 1], [], []>} : vector<512x128xbf16>, vector<128x128xbf16>, vector<512x128xf32> -> vector<512x128xf32>
    %7 = arith.addf %3, %6 : vector<512x128xf32>
    %c0_6 = arith.constant 0 : index
    %c0_7 = arith.constant 0 : index
    %8 = vector.load %arg7[%c0_6, %c0_7] : memref<512x128xf32, #tpu.memory_space<vmem>>, vector<512x128xf32>
    tpu.vector_store %arg7[%c0_6, %c0_7], %7 {strides = array<i32>} : memref<512x128xf32, #tpu.memory_space<vmem>>, vector<512x128xf32>,
    %c0_i32_8 = arith.constant 0 : i32
    %9 = arith.cmpi eq, %arg2, %c0_i32_8 : i32
    %10 = arith.extui %9 : i1 to i32
    %c0_i32_9 = arith.constant 0 : i32
    %11 = arith.cmpi ne, %10, %c0_i32_9 : i32
    scf.if %11 {
      %c0_10 = arith.constant 0 : index
      %c0_11 = arith.constant 0 : index
      %12 = vector.load %arg7[%c0_10, %c0_11] : memref<512x128xf32, #tpu.memory_space<vmem>>, vector<512x128xf32>
      %c0_12 = arith.constant 0 : index
      %c0_13 = arith.constant 0 : index
      %13 = vector.load %arg5[%c0_12, %c0_13] : memref<1x128xf32, #tpu.memory_space<vmem>>, vector<1x128xf32>
      %14 = vector.broadcast %13 : vector<1x128xf32> to vector<512x128xf32>
      %15 = arith.mulf %12, %14 : vector<512x128xf32>
      %c0_14 = arith.constant 0 : index
      %c0_15 = arith.constant 0 : index
      %16 = vector.load %arg6[%c0_14, %c0_15] : memref<1x128xf32, #tpu.memory_space<vmem>>, vector<1x128xf32>
      %17 = vector.broadcast %16 : vector<1x128xf32> to vector<512x128xf32>
      %18 = arith.addf %15, %17 : vector<512x128xf32>
      %cst_16 = arith.constant 0.000000e+00 : f32
      %19 = vector.broadcast %cst_16 : f32 to vector<512x128xf32>
      %20 = arith.cmpf oge, %18, %19 : vector<512x128xf32>
      %cst_17 = arith.constant 0.00999999977 : f32
      %21 = vector.broadcast %cst_17 : f32 to vector<512x128xf32>
      %22 = arith.mulf %21, %18 : vector<512x128xf32>
      %23 = arith.select %20, %18, %22 : vector<512x128xi1>, vector<512x128xf32>
      %c0_18 = arith.constant 0 : index
      %c0_19 = arith.constant 0 : index
      %24 = vector.load %arg7[%c0_18, %c0_19] : memref<512x128xf32, #tpu.memory_space<vmem>>, vector<512x128xf32>
      tpu.vector_store %arg7[%c0_18, %c0_19], %23 {strides = array<i32>} : memref<512x128xf32, #tpu.memory_space<vmem>>, vector<512x128xf32>,
    } else {
    }
    return
  }
  func.func @transform_0(%arg0: i32, %arg1: i32, %arg2: i32) -> (i32, i32) {
    %c0_i32 = arith.constant 0 : i32
    return %arg0, %arg2 : i32, i32
  }
  func.func @transform_1(%arg0: i32, %arg1: i32, %arg2: i32) -> (i32, i32) {
    %c0_i32 = arith.constant 0 : i32
    return %arg2, %arg1 : i32, i32
  }
  func.func @transform_2(%arg0: i32, %arg1: i32, %arg2: i32) -> (i32, i32) {
    %c0_i32 = arith.constant 0 : i32
    %c0_i32_0 = arith.constant 0 : i32
    return %c0_i32, %arg1 : i32, i32
  }
  func.func @transform_3(%arg0: i32, %arg1: i32, %arg2: i32) -> (i32, i32) {
    %c0_i32 = arith.constant 0 : i32
    %c0_i32_0 = arith.constant 0 : i32
    return %c0_i32, %arg1 : i32, i32
  }
  func.func @transform_4(%arg0: i32, %arg1: i32, %arg2: i32) -> (i32, i32) {
    %c0_i32 = arith.constant 0 : i32
    return %arg0, %arg1 : i32, i32
  }
}

module attributes {stable_mosaic.version = 11 : i64} {
  func.func @_matmul_fused_kernel(%arg0: i32, %arg1: i32, %arg2: i32, %arg3: memref<128x256xbf16, #tpu.memory_space<vmem>>, %arg4: memref<256x128xbf16, #tpu.memory_space<vmem>>, %arg5: memref<1x128xf32, #tpu.memory_space<vmem>>, %arg6: memref<1x128xf32, #tpu.memory_space<vmem>>, %arg7: memref<128x128xf32, #tpu.memory_space<vmem>>) attributes {dimension_semantics = [#tpu.dimension_semantics<parallel>, #tpu.dimension_semantics<parallel>, #tpu.dimension_semantics<arbitrary>], iteration_bounds = array<i64: 1, 1, 4>, scalar_prefetch = 0 : i64, scratch_operands = 0 : i64, tpu.core_type = #tpu.core_type<tc>, window_params = [{transform_indices = @transform_0, window_bounds = array<i64: 128, 256>}, {transform_indices = @transform_1, window_bounds = array<i64: 256, 128>}, {transform_indices = @transform_2, window_bounds = array<i64: 1, 128>}, {transform_indices = @transform_3, window_bounds = array<i64: 1, 128>}, {transform_indices = @transform_4, window_bounds = array<i64: 128, 128>}]} {
    %c0_i32 = arith.constant 0 : i32
    %0 = arith.cmpi eq, %arg2, %c0_i32 : i32
    %1 = arith.extui %0 : i1 to i32
    %c0_i32_0 = arith.constant 0 : i32
    %2 = arith.cmpi ne, %1, %c0_i32_0 : i32
    scf.if %2 {
      %cst_9 = arith.constant 0.000000e+00 : f32
      %12 = vector.broadcast %cst_9 : f32 to vector<128x128xf32>
      %c0_10 = arith.constant 0 : index
      %c0_11 = arith.constant 0 : index
      %13 = vector.load %arg7[%c0_10, %c0_11] : memref<128x128xf32, #tpu.memory_space<vmem>>, vector<128x128xf32>
      tpu.vector_store %arg7[%c0_10, %c0_11], %12 {strides = array<i32>} : memref<128x128xf32, #tpu.memory_space<vmem>>, vector<128x128xf32>,
    } else {
    }
    %c0 = arith.constant 0 : index
    %c0_1 = arith.constant 0 : index
    %3 = vector.load %arg7[%c0, %c0_1] : memref<128x128xf32, #tpu.memory_space<vmem>>, vector<128x128xf32>
    %c0_2 = arith.constant 0 : index
    %c0_3 = arith.constant 0 : index
    %4 = vector.load %arg3[%c0_2, %c0_3] : memref<128x256xbf16, #tpu.memory_space<vmem>>, vector<128x256xbf16>
    %c0_4 = arith.constant 0 : index
    %c0_5 = arith.constant 0 : index
    %5 = vector.load %arg4[%c0_4, %c0_5] : memref<256x128xbf16, #tpu.memory_space<vmem>>, vector<256x128xbf16>
    %cst = arith.constant dense<0.000000e+00> : vector<128x128xf32>
    %6 = tpu.matmul %4, %5, %cst {dimension_numbers = #tpu.dot_dimension_numbers<[1], [0], [0], [1], [0, 0, 1, 1], [], []>} : vector<128x256xbf16>, vector<256x128xbf16>, vector<128x128xf32> -> vector<128x128xf32>
    %7 = arith.addf %3, %6 : vector<128x128xf32>
    %c0_6 = arith.constant 0 : index
    %c0_7 = arith.constant 0 : index
    %8 = vector.load %arg7[%c0_6, %c0_7] : memref<128x128xf32, #tpu.memory_space<vmem>>, vector<128x128xf32>
    tpu.vector_store %arg7[%c0_6, %c0_7], %7 {strides = array<i32>} : memref<128x128xf32, #tpu.memory_space<vmem>>, vector<128x128xf32>,
    %c3_i32 = arith.constant 3 : i32
    %9 = arith.cmpi eq, %arg2, %c3_i32 : i32
    %10 = arith.extui %9 : i1 to i32
    %c0_i32_8 = arith.constant 0 : i32
    %11 = arith.cmpi ne, %10, %c0_i32_8 : i32
    scf.if %11 {
      %c0_9 = arith.constant 0 : index
      %c0_10 = arith.constant 0 : index
      %12 = vector.load %arg7[%c0_9, %c0_10] : memref<128x128xf32, #tpu.memory_space<vmem>>, vector<128x128xf32>
      %c0_11 = arith.constant 0 : index
      %c0_12 = arith.constant 0 : index
      %13 = vector.load %arg5[%c0_11, %c0_12] : memref<1x128xf32, #tpu.memory_space<vmem>>, vector<1x128xf32>
      %14 = vector.broadcast %13 : vector<1x128xf32> to vector<128x128xf32>
      %15 = arith.mulf %12, %14 : vector<128x128xf32>
      %c0_13 = arith.constant 0 : index
      %c0_14 = arith.constant 0 : index
      %16 = vector.load %arg6[%c0_13, %c0_14] : memref<1x128xf32, #tpu.memory_space<vmem>>, vector<1x128xf32>
      %17 = vector.broadcast %16 : vector<1x128xf32> to vector<128x128xf32>
      %18 = arith.addf %15, %17 : vector<128x128xf32>
      %cst_15 = arith.constant 0.000000e+00 : f32
      %19 = vector.broadcast %cst_15 : f32 to vector<128x128xf32>
      %20 = arith.cmpf oge, %18, %19 : vector<128x128xf32>
      %cst_16 = arith.constant 2.000000e-01 : f32
      %21 = vector.broadcast %cst_16 : f32 to vector<128x128xf32>
      %22 = arith.mulf %21, %18 : vector<128x128xf32>
      %23 = arith.select %20, %18, %22 : vector<128x128xi1>, vector<128x128xf32>
      %c0_17 = arith.constant 0 : index
      %c0_18 = arith.constant 0 : index
      %24 = vector.load %arg7[%c0_17, %c0_18] : memref<128x128xf32, #tpu.memory_space<vmem>>, vector<128x128xf32>
      tpu.vector_store %arg7[%c0_17, %c0_18], %23 {strides = array<i32>} : memref<128x128xf32, #tpu.memory_space<vmem>>, vector<128x128xf32>,
    } else {
    }
    return
  }
  func.func @transform_0(%arg0: i32, %arg1: i32, %arg2: i32) -> (i32, i32) {
    %c0_i32 = arith.constant 0 : i32
    return %arg0, %arg2 : i32, i32
  }
  func.func @transform_1(%arg0: i32, %arg1: i32, %arg2: i32) -> (i32, i32) {
    %c0_i32 = arith.constant 0 : i32
    return %arg2, %arg1 : i32, i32
  }
  func.func @transform_2(%arg0: i32, %arg1: i32, %arg2: i32) -> (i32, i32) {
    %c0_i32 = arith.constant 0 : i32
    %c0_i32_0 = arith.constant 0 : i32
    return %c0_i32, %arg1 : i32, i32
  }
  func.func @transform_3(%arg0: i32, %arg1: i32, %arg2: i32) -> (i32, i32) {
    %c0_i32 = arith.constant 0 : i32
    %c0_i32_0 = arith.constant 0 : i32
    return %c0_i32, %arg1 : i32, i32
  }
  func.func @transform_4(%arg0: i32, %arg1: i32, %arg2: i32) -> (i32, i32) {
    %c0_i32 = arith.constant 0 : i32
    return %arg0, %arg1 : i32, i32
  }
}

module attributes {stable_mosaic.version = 11 : i64} {
  func.func @_matmul_fused_kernel(%arg0: i32, %arg1: i32, %arg2: i32, %arg3: memref<128x128xbf16, #tpu.memory_space<vmem>>, %arg4: memref<128x128xbf16, #tpu.memory_space<vmem>>, %arg5: memref<1x128xf32, #tpu.memory_space<vmem>>, %arg6: memref<1x128xf32, #tpu.memory_space<vmem>>, %arg7: memref<128x128xf32, #tpu.memory_space<vmem>>) attributes {dimension_semantics = [#tpu.dimension_semantics<parallel>, #tpu.dimension_semantics<parallel>, #tpu.dimension_semantics<arbitrary>], iteration_bounds = array<i64: 1, 1, 5>, scalar_prefetch = 0 : i64, scratch_operands = 0 : i64, tpu.core_type = #tpu.core_type<tc>, window_params = [{transform_indices = @transform_0, window_bounds = array<i64: 128, 128>}, {transform_indices = @transform_1, window_bounds = array<i64: 128, 128>}, {transform_indices = @transform_2, window_bounds = array<i64: 1, 128>}, {transform_indices = @transform_3, window_bounds = array<i64: 1, 128>}, {transform_indices = @transform_4, window_bounds = array<i64: 128, 128>}]} {
    %c0_i32 = arith.constant 0 : i32
    %0 = arith.cmpi eq, %arg2, %c0_i32 : i32
    %1 = arith.extui %0 : i1 to i32
    %c0_i32_0 = arith.constant 0 : i32
    %2 = arith.cmpi ne, %1, %c0_i32_0 : i32
    scf.if %2 {
      %cst_9 = arith.constant 0.000000e+00 : f32
      %12 = vector.broadcast %cst_9 : f32 to vector<128x128xf32>
      %c0_10 = arith.constant 0 : index
      %c0_11 = arith.constant 0 : index
      %13 = vector.load %arg7[%c0_10, %c0_11] : memref<128x128xf32, #tpu.memory_space<vmem>>, vector<128x128xf32>
      tpu.vector_store %arg7[%c0_10, %c0_11], %12 {strides = array<i32>} : memref<128x128xf32, #tpu.memory_space<vmem>>, vector<128x128xf32>,
    } else {
    }
    %c0 = arith.constant 0 : index
    %c0_1 = arith.constant 0 : index
    %3 = vector.load %arg7[%c0, %c0_1] : memref<128x128xf32, #tpu.memory_space<vmem>>, vector<128x128xf32>
    %c0_2 = arith.constant 0 : index
    %c0_3 = arith.constant 0 : index
    %4 = vector.load %arg3[%c0_2, %c0_3] : memref<128x128xbf16, #tpu.memory_space<vmem>>, vector<128x128xbf16>
    %c0_4 = arith.constant 0 : index
    %c0_5 = arith.constant 0 : index
    %5 = vector.load %arg4[%c0_4, %c0_5] : memref<128x128xbf16, #tpu.memory_space<vmem>>, vector<128x128xbf16>
    %cst = arith.constant dense<0.000000e+00> : vector<128x128xf32>
    %6 = tpu.matmul %4, %5, %cst {dimension_numbers = #tpu.dot_dimension_numbers<[1], [0], [0], [1], [0, 0, 1, 1], [], []>} : vector<128x128xbf16>, vector<128x128xbf16>, vector<128x128xf32> -> vector<128x128xf32>
    %7 = arith.addf %3, %6 : vector<128x128xf32>
    %c0_6 = arith.constant 0 : index
    %c0_7 = arith.constant 0 : index
    %8 = vector.load %arg7[%c0_6, %c0_7] : memref<128x128xf32, #tpu.memory_space<vmem>>, vector<128x128xf32>
    tpu.vector_store %arg7[%c0_6, %c0_7], %7 {strides = array<i32>} : memref<128x128xf32, #tpu.memory_space<vmem>>, vector<128x128xf32>,
    %c4_i32 = arith.constant 4 : i32
    %9 = arith.cmpi eq, %arg2, %c4_i32 : i32
    %10 = arith.extui %9 : i1 to i32
    %c0_i32_8 = arith.constant 0 : i32
    %11 = arith.cmpi ne, %10, %c0_i32_8 : i32
    scf.if %11 {
      %c0_9 = arith.constant 0 : index
      %c0_10 = arith.constant 0 : index
      %12 = vector.load %arg7[%c0_9, %c0_10] : memref<128x128xf32, #tpu.memory_space<vmem>>, vector<128x128xf32>
      %c0_11 = arith.constant 0 : index
      %c0_12 = arith.constant 0 : index
      %13 = vector.load %arg5[%c0_11, %c0_12] : memref<1x128xf32, #tpu.memory_space<vmem>>, vector<1x128xf32>
      %14 = vector.broadcast %13 : vector<1x128xf32> to vector<128x128xf32>
      %15 = arith.mulf %12, %14 : vector<128x128xf32>
      %c0_13 = arith.constant 0 : index
      %c0_14 = arith.constant 0 : index
      %16 = vector.load %arg6[%c0_13, %c0_14] : memref<1x128xf32, #tpu.memory_space<vmem>>, vector<1x128xf32>
      %17 = vector.broadcast %16 : vector<1x128xf32> to vector<128x128xf32>
      %18 = arith.addf %15, %17 : vector<128x128xf32>
      %cst_15 = arith.constant 0.000000e+00 : f32
      %19 = vector.broadcast %cst_15 : f32 to vector<128x128xf32>
      %20 = arith.cmpf oge, %18, %19 : vector<128x128xf32>
      %cst_16 = arith.constant 2.000000e-01 : f32
      %21 = vector.broadcast %cst_16 : f32 to vector<128x128xf32>
      %22 = arith.mulf %21, %18 : vector<128x128xf32>
      %23 = arith.select %20, %18, %22 : vector<128x128xi1>, vector<128x128xf32>
      %c0_17 = arith.constant 0 : index
      %c0_18 = arith.constant 0 : index
      %24 = vector.load %arg7[%c0_17, %c0_18] : memref<128x128xf32, #tpu.memory_space<vmem>>, vector<128x128xf32>
      tpu.vector_store %arg7[%c0_17, %c0_18], %23 {strides = array<i32>} : memref<128x128xf32, #tpu.memory_space<vmem>>, vector<128x128xf32>,
    } else {
    }
    return
  }
  func.func @transform_0(%arg0: i32, %arg1: i32, %arg2: i32) -> (i32, i32) {
    %c0_i32 = arith.constant 0 : i32
    return %arg0, %arg2 : i32, i32
  }
  func.func @transform_1(%arg0: i32, %arg1: i32, %arg2: i32) -> (i32, i32) {
    %c0_i32 = arith.constant 0 : i32
    return %arg2, %arg1 : i32, i32
  }
  func.func @transform_2(%arg0: i32, %arg1: i32, %arg2: i32) -> (i32, i32) {
    %c0_i32 = arith.constant 0 : i32
    %c0_i32_0 = arith.constant 0 : i32
    return %c0_i32, %arg1 : i32, i32
  }
  func.func @transform_3(%arg0: i32, %arg1: i32, %arg2: i32) -> (i32, i32) {
    %c0_i32 = arith.constant 0 : i32
    %c0_i32_0 = arith.constant 0 : i32
    return %c0_i32, %arg1 : i32, i32
  }
  func.func @transform_4(%arg0: i32, %arg1: i32, %arg2: i32) -> (i32, i32) {
    %c0_i32 = arith.constant 0 : i32
    return %arg0, %arg1 : i32, i32
  }
}

module attributes {stable_mosaic.version = 11 : i64} {
  func.func @_matmul_fused_kernel(%arg0: i32, %arg1: i32, %arg2: i32, %arg3: memref<32x256xbf16, #tpu.memory_space<vmem>>, %arg4: memref<256x128xbf16, #tpu.memory_space<vmem>>, %arg5: memref<1x128xf32, #tpu.memory_space<vmem>>, %arg6: memref<1x128xf32, #tpu.memory_space<vmem>>, %arg7: memref<32x128xf32, #tpu.memory_space<vmem>>) attributes {dimension_semantics = [#tpu.dimension_semantics<parallel>, #tpu.dimension_semantics<parallel>, #tpu.dimension_semantics<arbitrary>], iteration_bounds = array<i64: 1, 1, 8>, scalar_prefetch = 0 : i64, scratch_operands = 0 : i64, tpu.core_type = #tpu.core_type<tc>, window_params = [{transform_indices = @transform_0, window_bounds = array<i64: 32, 256>}, {transform_indices = @transform_1, window_bounds = array<i64: 256, 128>}, {transform_indices = @transform_2, window_bounds = array<i64: 1, 128>}, {transform_indices = @transform_3, window_bounds = array<i64: 1, 128>}, {transform_indices = @transform_4, window_bounds = array<i64: 32, 128>}]} {
    %c0_i32 = arith.constant 0 : i32
    %0 = arith.cmpi eq, %arg2, %c0_i32 : i32
    %1 = arith.extui %0 : i1 to i32
    %c0_i32_0 = arith.constant 0 : i32
    %2 = arith.cmpi ne, %1, %c0_i32_0 : i32
    scf.if %2 {
      %cst_9 = arith.constant 0.000000e+00 : f32
      %12 = vector.broadcast %cst_9 : f32 to vector<32x128xf32>
      %c0_10 = arith.constant 0 : index
      %c0_11 = arith.constant 0 : index
      %13 = vector.load %arg7[%c0_10, %c0_11] : memref<32x128xf32, #tpu.memory_space<vmem>>, vector<32x128xf32>
      tpu.vector_store %arg7[%c0_10, %c0_11], %12 {strides = array<i32>} : memref<32x128xf32, #tpu.memory_space<vmem>>, vector<32x128xf32>,
    } else {
    }
    %c0 = arith.constant 0 : index
    %c0_1 = arith.constant 0 : index
    %3 = vector.load %arg7[%c0, %c0_1] : memref<32x128xf32, #tpu.memory_space<vmem>>, vector<32x128xf32>
    %c0_2 = arith.constant 0 : index
    %c0_3 = arith.constant 0 : index
    %4 = vector.load %arg3[%c0_2, %c0_3] : memref<32x256xbf16, #tpu.memory_space<vmem>>, vector<32x256xbf16>
    %c0_4 = arith.constant 0 : index
    %c0_5 = arith.constant 0 : index
    %5 = vector.load %arg4[%c0_4, %c0_5] : memref<256x128xbf16, #tpu.memory_space<vmem>>, vector<256x128xbf16>
    %cst = arith.constant dense<0.000000e+00> : vector<32x128xf32>
    %6 = tpu.matmul %4, %5, %cst {dimension_numbers = #tpu.dot_dimension_numbers<[1], [0], [0], [1], [0, 0, 1, 1], [], []>} : vector<32x256xbf16>, vector<256x128xbf16>, vector<32x128xf32> -> vector<32x128xf32>
    %7 = arith.addf %3, %6 : vector<32x128xf32>
    %c0_6 = arith.constant 0 : index
    %c0_7 = arith.constant 0 : index
    %8 = vector.load %arg7[%c0_6, %c0_7] : memref<32x128xf32, #tpu.memory_space<vmem>>, vector<32x128xf32>
    tpu.vector_store %arg7[%c0_6, %c0_7], %7 {strides = array<i32>} : memref<32x128xf32, #tpu.memory_space<vmem>>, vector<32x128xf32>,
    %c7_i32 = arith.constant 7 : i32
    %9 = arith.cmpi eq, %arg2, %c7_i32 : i32
    %10 = arith.extui %9 : i1 to i32
    %c0_i32_8 = arith.constant 0 : i32
    %11 = arith.cmpi ne, %10, %c0_i32_8 : i32
    scf.if %11 {
      %c0_9 = arith.constant 0 : index
      %c0_10 = arith.constant 0 : index
      %12 = vector.load %arg7[%c0_9, %c0_10] : memref<32x128xf32, #tpu.memory_space<vmem>>, vector<32x128xf32>
      %c0_11 = arith.constant 0 : index
      %c0_12 = arith.constant 0 : index
      %13 = vector.load %arg5[%c0_11, %c0_12] : memref<1x128xf32, #tpu.memory_space<vmem>>, vector<1x128xf32>
      %14 = vector.broadcast %13 : vector<1x128xf32> to vector<32x128xf32>
      %15 = arith.mulf %12, %14 : vector<32x128xf32>
      %c0_13 = arith.constant 0 : index
      %c0_14 = arith.constant 0 : index
      %16 = vector.load %arg6[%c0_13, %c0_14] : memref<1x128xf32, #tpu.memory_space<vmem>>, vector<1x128xf32>
      %17 = vector.broadcast %16 : vector<1x128xf32> to vector<32x128xf32>
      %18 = arith.addf %15, %17 : vector<32x128xf32>
      %cst_15 = arith.constant 0.000000e+00 : f32
      %19 = vector.broadcast %cst_15 : f32 to vector<32x128xf32>
      %20 = arith.cmpf oge, %18, %19 : vector<32x128xf32>
      %cst_16 = arith.constant 2.000000e-01 : f32
      %21 = vector.broadcast %cst_16 : f32 to vector<32x128xf32>
      %22 = arith.mulf %21, %18 : vector<32x128xf32>
      %23 = arith.select %20, %18, %22 : vector<32x128xi1>, vector<32x128xf32>
      %c0_17 = arith.constant 0 : index
      %c0_18 = arith.constant 0 : index
      %24 = vector.load %arg7[%c0_17, %c0_18] : memref<32x128xf32, #tpu.memory_space<vmem>>, vector<32x128xf32>
      tpu.vector_store %arg7[%c0_17, %c0_18], %23 {strides = array<i32>} : memref<32x128xf32, #tpu.memory_space<vmem>>, vector<32x128xf32>,
    } else {
    }
    return
  }
  func.func @transform_0(%arg0: i32, %arg1: i32, %arg2: i32) -> (i32, i32) {
    %c0_i32 = arith.constant 0 : i32
    return %arg0, %arg2 : i32, i32
  }
  func.func @transform_1(%arg0: i32, %arg1: i32, %arg2: i32) -> (i32, i32) {
    %c0_i32 = arith.constant 0 : i32
    return %arg2, %arg1 : i32, i32
  }
  func.func @transform_2(%arg0: i32, %arg1: i32, %arg2: i32) -> (i32, i32) {
    %c0_i32 = arith.constant 0 : i32
    %c0_i32_0 = arith.constant 0 : i32
    return %c0_i32, %arg1 : i32, i32
  }
  func.func @transform_3(%arg0: i32, %arg1: i32, %arg2: i32) -> (i32, i32) {
    %c0_i32 = arith.constant 0 : i32
    %c0_i32_0 = arith.constant 0 : i32
    return %c0_i32, %arg1 : i32, i32
  }
  func.func @transform_4(%arg0: i32, %arg1: i32, %arg2: i32) -> (i32, i32) {
    %c0_i32 = arith.constant 0 : i32
    return %arg0, %arg1 : i32, i32
  }
}

module attributes {stable_mosaic.version = 11 : i64} {
  func.func @_matmul_fused_kernel(%arg0: i32, %arg1: i32, %arg2: i32, %arg3: memref<32x128xbf16, #tpu.memory_space<vmem>>, %arg4: memref<128x256xbf16, #tpu.memory_space<vmem>>, %arg5: memref<1x256xf32, #tpu.memory_space<vmem>>, %arg6: memref<1x256xf32, #tpu.memory_space<vmem>>, %arg7: memref<32x256xf32, #tpu.memory_space<vmem>>) attributes {dimension_semantics = [#tpu.dimension_semantics<parallel>, #tpu.dimension_semantics<parallel>, #tpu.dimension_semantics<arbitrary>], iteration_bounds = array<i64: 1, 1, 9>, scalar_prefetch = 0 : i64, scratch_operands = 0 : i64, tpu.core_type = #tpu.core_type<tc>, window_params = [{transform_indices = @transform_0, window_bounds = array<i64: 32, 128>}, {transform_indices = @transform_1, window_bounds = array<i64: 128, 256>}, {transform_indices = @transform_2, window_bounds = array<i64: 1, 256>}, {transform_indices = @transform_3, window_bounds = array<i64: 1, 256>}, {transform_indices = @transform_4, window_bounds = array<i64: 32, 256>}]} {
    %c0_i32 = arith.constant 0 : i32
    %0 = arith.cmpi eq, %arg2, %c0_i32 : i32
    %1 = arith.extui %0 : i1 to i32
    %c0_i32_0 = arith.constant 0 : i32
    %2 = arith.cmpi ne, %1, %c0_i32_0 : i32
    scf.if %2 {
      %cst_9 = arith.constant 0.000000e+00 : f32
      %12 = vector.broadcast %cst_9 : f32 to vector<32x256xf32>
      %c0_10 = arith.constant 0 : index
      %c0_11 = arith.constant 0 : index
      %13 = vector.load %arg7[%c0_10, %c0_11] : memref<32x256xf32, #tpu.memory_space<vmem>>, vector<32x256xf32>
      tpu.vector_store %arg7[%c0_10, %c0_11], %12 {strides = array<i32>} : memref<32x256xf32, #tpu.memory_space<vmem>>, vector<32x256xf32>,
    } else {
    }
    %c0 = arith.constant 0 : index
    %c0_1 = arith.constant 0 : index
    %3 = vector.load %arg7[%c0, %c0_1] : memref<32x256xf32, #tpu.memory_space<vmem>>, vector<32x256xf32>
    %c0_2 = arith.constant 0 : index
    %c0_3 = arith.constant 0 : index
    %4 = vector.load %arg3[%c0_2, %c0_3] : memref<32x128xbf16, #tpu.memory_space<vmem>>, vector<32x128xbf16>
    %c0_4 = arith.constant 0 : index
    %c0_5 = arith.constant 0 : index
    %5 = vector.load %arg4[%c0_4, %c0_5] : memref<128x256xbf16, #tpu.memory_space<vmem>>, vector<128x256xbf16>
    %cst = arith.constant dense<0.000000e+00> : vector<32x256xf32>
    %6 = tpu.matmul %4, %5, %cst {dimension_numbers = #tpu.dot_dimension_numbers<[1], [0], [0], [1], [0, 0, 1, 1], [], []>} : vector<32x128xbf16>, vector<128x256xbf16>, vector<32x256xf32> -> vector<32x256xf32>
    %7 = arith.addf %3, %6 : vector<32x256xf32>
    %c0_6 = arith.constant 0 : index
    %c0_7 = arith.constant 0 : index
    %8 = vector.load %arg7[%c0_6, %c0_7] : memref<32x256xf32, #tpu.memory_space<vmem>>, vector<32x256xf32>
    tpu.vector_store %arg7[%c0_6, %c0_7], %7 {strides = array<i32>} : memref<32x256xf32, #tpu.memory_space<vmem>>, vector<32x256xf32>,
    %c8_i32 = arith.constant 8 : i32
    %9 = arith.cmpi eq, %arg2, %c8_i32 : i32
    %10 = arith.extui %9 : i1 to i32
    %c0_i32_8 = arith.constant 0 : i32
    %11 = arith.cmpi ne, %10, %c0_i32_8 : i32
    scf.if %11 {
      %c0_9 = arith.constant 0 : index
      %c0_10 = arith.constant 0 : index
      %12 = vector.load %arg7[%c0_9, %c0_10] : memref<32x256xf32, #tpu.memory_space<vmem>>, vector<32x256xf32>
      %c0_11 = arith.constant 0 : index
      %c0_12 = arith.constant 0 : index
      %13 = vector.load %arg5[%c0_11, %c0_12] : memref<1x256xf32, #tpu.memory_space<vmem>>, vector<1x256xf32>
      %14 = vector.broadcast %13 : vector<1x256xf32> to vector<32x256xf32>
      %15 = arith.mulf %12, %14 : vector<32x256xf32>
      %c0_13 = arith.constant 0 : index
      %c0_14 = arith.constant 0 : index
      %16 = vector.load %arg6[%c0_13, %c0_14] : memref<1x256xf32, #tpu.memory_space<vmem>>, vector<1x256xf32>
      %17 = vector.broadcast %16 : vector<1x256xf32> to vector<32x256xf32>
      %18 = arith.addf %15, %17 : vector<32x256xf32>
      %cst_15 = arith.constant 0.000000e+00 : f32
      %19 = vector.broadcast %cst_15 : f32 to vector<32x256xf32>
      %20 = arith.cmpf oge, %18, %19 : vector<32x256xf32>
      %cst_16 = arith.constant 2.000000e-01 : f32
      %21 = vector.broadcast %cst_16 : f32 to vector<32x256xf32>
      %22 = arith.mulf %21, %18 : vector<32x256xf32>
      %23 = arith.select %20, %18, %22 : vector<32x256xi1>, vector<32x256xf32>
      %c0_17 = arith.constant 0 : index
      %c0_18 = arith.constant 0 : index
      %24 = vector.load %arg7[%c0_17, %c0_18] : memref<32x256xf32, #tpu.memory_space<vmem>>, vector<32x256xf32>
      tpu.vector_store %arg7[%c0_17, %c0_18], %23 {strides = array<i32>} : memref<32x256xf32, #tpu.memory_space<vmem>>, vector<32x256xf32>,
    } else {
    }
    return
  }
  func.func @transform_0(%arg0: i32, %arg1: i32, %arg2: i32) -> (i32, i32) {
    %c0_i32 = arith.constant 0 : i32
    return %arg0, %arg2 : i32, i32
  }
  func.func @transform_1(%arg0: i32, %arg1: i32, %arg2: i32) -> (i32, i32) {
    %c0_i32 = arith.constant 0 : i32
    return %arg2, %arg1 : i32, i32
  }
  func.func @transform_2(%arg0: i32, %arg1: i32, %arg2: i32) -> (i32, i32) {
    %c0_i32 = arith.constant 0 : i32
    %c0_i32_0 = arith.constant 0 : i32
    return %c0_i32, %arg1 : i32, i32
  }
  func.func @transform_3(%arg0: i32, %arg1: i32, %arg2: i32) -> (i32, i32) {
    %c0_i32 = arith.constant 0 : i32
    %c0_i32_0 = arith.constant 0 : i32
    return %c0_i32, %arg1 : i32, i32
  }
  func.func @transform_4(%arg0: i32, %arg1: i32, %arg2: i32) -> (i32, i32) {
    %c0_i32 = arith.constant 0 : i32
    return %arg0, %arg1 : i32, i32
  }
}

module attributes {stable_mosaic.version = 11 : i64} {
  func.func @_matmul_fused_kernel(%arg0: i32, %arg1: i32, %arg2: i32, %arg3: memref<16x256xbf16, #tpu.memory_space<vmem>>, %arg4: memref<256x256xbf16, #tpu.memory_space<vmem>>, %arg5: memref<1x256xf32, #tpu.memory_space<vmem>>, %arg6: memref<1x256xf32, #tpu.memory_space<vmem>>, %arg7: memref<16x256xf32, #tpu.memory_space<vmem>>) attributes {dimension_semantics = [#tpu.dimension_semantics<parallel>, #tpu.dimension_semantics<parallel>, #tpu.dimension_semantics<arbitrary>], iteration_bounds = array<i64: 1, 1, 16>, scalar_prefetch = 0 : i64, scratch_operands = 0 : i64, tpu.core_type = #tpu.core_type<tc>, window_params = [{transform_indices = @transform_0, window_bounds = array<i64: 16, 256>}, {transform_indices = @transform_1, window_bounds = array<i64: 256, 256>}, {transform_indices = @transform_2, window_bounds = array<i64: 1, 256>}, {transform_indices = @transform_3, window_bounds = array<i64: 1, 256>}, {transform_indices = @transform_4, window_bounds = array<i64: 16, 256>}]} {
    %c0_i32 = arith.constant 0 : i32
    %0 = arith.cmpi eq, %arg2, %c0_i32 : i32
    %1 = arith.extui %0 : i1 to i32
    %c0_i32_0 = arith.constant 0 : i32
    %2 = arith.cmpi ne, %1, %c0_i32_0 : i32
    scf.if %2 {
      %cst_9 = arith.constant 0.000000e+00 : f32
      %12 = vector.broadcast %cst_9 : f32 to vector<16x256xf32>
      %c0_10 = arith.constant 0 : index
      %c0_11 = arith.constant 0 : index
      %13 = vector.load %arg7[%c0_10, %c0_11] : memref<16x256xf32, #tpu.memory_space<vmem>>, vector<16x256xf32>
      tpu.vector_store %arg7[%c0_10, %c0_11], %12 {strides = array<i32>} : memref<16x256xf32, #tpu.memory_space<vmem>>, vector<16x256xf32>,
    } else {
    }
    %c0 = arith.constant 0 : index
    %c0_1 = arith.constant 0 : index
    %3 = vector.load %arg7[%c0, %c0_1] : memref<16x256xf32, #tpu.memory_space<vmem>>, vector<16x256xf32>
    %c0_2 = arith.constant 0 : index
    %c0_3 = arith.constant 0 : index
    %4 = vector.load %arg3[%c0_2, %c0_3] : memref<16x256xbf16, #tpu.memory_space<vmem>>, vector<16x256xbf16>
    %c0_4 = arith.constant 0 : index
    %c0_5 = arith.constant 0 : index
    %5 = vector.load %arg4[%c0_4, %c0_5] : memref<256x256xbf16, #tpu.memory_space<vmem>>, vector<256x256xbf16>
    %cst = arith.constant dense<0.000000e+00> : vector<16x256xf32>
    %6 = tpu.matmul %4, %5, %cst {dimension_numbers = #tpu.dot_dimension_numbers<[1], [0], [0], [1], [0, 0, 1, 1], [], []>} : vector<16x256xbf16>, vector<256x256xbf16>, vector<16x256xf32> -> vector<16x256xf32>
    %7 = arith.addf %3, %6 : vector<16x256xf32>
    %c0_6 = arith.constant 0 : index
    %c0_7 = arith.constant 0 : index
    %8 = vector.load %arg7[%c0_6, %c0_7] : memref<16x256xf32, #tpu.memory_space<vmem>>, vector<16x256xf32>
    tpu.vector_store %arg7[%c0_6, %c0_7], %7 {strides = array<i32>} : memref<16x256xf32, #tpu.memory_space<vmem>>, vector<16x256xf32>,
    %c15_i32 = arith.constant 15 : i32
    %9 = arith.cmpi eq, %arg2, %c15_i32 : i32
    %10 = arith.extui %9 : i1 to i32
    %c0_i32_8 = arith.constant 0 : i32
    %11 = arith.cmpi ne, %10, %c0_i32_8 : i32
    scf.if %11 {
      %c0_9 = arith.constant 0 : index
      %c0_10 = arith.constant 0 : index
      %12 = vector.load %arg7[%c0_9, %c0_10] : memref<16x256xf32, #tpu.memory_space<vmem>>, vector<16x256xf32>
      %c0_11 = arith.constant 0 : index
      %c0_12 = arith.constant 0 : index
      %13 = vector.load %arg5[%c0_11, %c0_12] : memref<1x256xf32, #tpu.memory_space<vmem>>, vector<1x256xf32>
      %14 = vector.broadcast %13 : vector<1x256xf32> to vector<16x256xf32>
      %15 = arith.mulf %12, %14 : vector<16x256xf32>
      %c0_13 = arith.constant 0 : index
      %c0_14 = arith.constant 0 : index
      %16 = vector.load %arg6[%c0_13, %c0_14] : memref<1x256xf32, #tpu.memory_space<vmem>>, vector<1x256xf32>
      %17 = vector.broadcast %16 : vector<1x256xf32> to vector<16x256xf32>
      %18 = arith.addf %15, %17 : vector<16x256xf32>
      %cst_15 = arith.constant 0.000000e+00 : f32
      %19 = vector.broadcast %cst_15 : f32 to vector<16x256xf32>
      %20 = arith.cmpf oge, %18, %19 : vector<16x256xf32>
      %cst_16 = arith.constant 2.000000e-01 : f32
      %21 = vector.broadcast %cst_16 : f32 to vector<16x256xf32>
      %22 = arith.mulf %21, %18 : vector<16x256xf32>
      %23 = arith.select %20, %18, %22 : vector<16x256xi1>, vector<16x256xf32>
      %c0_17 = arith.constant 0 : index
      %c0_18 = arith.constant 0 : index
      %24 = vector.load %arg7[%c0_17, %c0_18] : memref<16x256xf32, #tpu.memory_space<vmem>>, vector<16x256xf32>
      tpu.vector_store %arg7[%c0_17, %c0_18], %23 {strides = array<i32>} : memref<16x256xf32, #tpu.memory_space<vmem>>, vector<16x256xf32>,
    } else {
    }
    return
  }
  func.func @transform_0(%arg0: i32, %arg1: i32, %arg2: i32) -> (i32, i32) {
    %c0_i32 = arith.constant 0 : i32
    return %arg0, %arg2 : i32, i32
  }
  func.func @transform_1(%arg0: i32, %arg1: i32, %arg2: i32) -> (i32, i32) {
    %c0_i32 = arith.constant 0 : i32
    return %arg2, %arg1 : i32, i32
  }
  func.func @transform_2(%arg0: i32, %arg1: i32, %arg2: i32) -> (i32, i32) {
    %c0_i32 = arith.constant 0 : i32
    %c0_i32_0 = arith.constant 0 : i32
    return %c0_i32, %arg1 : i32, i32
  }
  func.func @transform_3(%arg0: i32, %arg1: i32, %arg2: i32) -> (i32, i32) {
    %c0_i32 = arith.constant 0 : i32
    %c0_i32_0 = arith.constant 0 : i32
    return %c0_i32, %arg1 : i32, i32
  }
  func.func @transform_4(%arg0: i32, %arg1: i32, %arg2: i32) -> (i32, i32) {
    %c0_i32 = arith.constant 0 : i32
    return %arg0, %arg1 : i32, i32
  }
}

module attributes {stable_mosaic.version = 11 : i64} {
  func.func @_matmul_fused_kernel(%arg0: i32, %arg1: i32, %arg2: i32, %arg3: memref<16x256xbf16, #tpu.memory_space<vmem>>, %arg4: memref<256x256xbf16, #tpu.memory_space<vmem>>, %arg5: memref<1x256xf32, #tpu.memory_space<vmem>>, %arg6: memref<1x256xf32, #tpu.memory_space<vmem>>, %arg7: memref<16x256xf32, #tpu.memory_space<vmem>>) attributes {dimension_semantics = [#tpu.dimension_semantics<parallel>, #tpu.dimension_semantics<parallel>, #tpu.dimension_semantics<arbitrary>], iteration_bounds = array<i64: 1, 2, 9>, scalar_prefetch = 0 : i64, scratch_operands = 0 : i64, tpu.core_type = #tpu.core_type<tc>, window_params = [{transform_indices = @transform_0, window_bounds = array<i64: 16, 256>}, {transform_indices = @transform_1, window_bounds = array<i64: 256, 256>}, {transform_indices = @transform_2, window_bounds = array<i64: 1, 256>}, {transform_indices = @transform_3, window_bounds = array<i64: 1, 256>}, {transform_indices = @transform_4, window_bounds = array<i64: 16, 256>}]} {
    %c0_i32 = arith.constant 0 : i32
    %0 = arith.cmpi eq, %arg2, %c0_i32 : i32
    %1 = arith.extui %0 : i1 to i32
    %c0_i32_0 = arith.constant 0 : i32
    %2 = arith.cmpi ne, %1, %c0_i32_0 : i32
    scf.if %2 {
      %cst_9 = arith.constant 0.000000e+00 : f32
      %12 = vector.broadcast %cst_9 : f32 to vector<16x256xf32>
      %c0_10 = arith.constant 0 : index
      %c0_11 = arith.constant 0 : index
      %13 = vector.load %arg7[%c0_10, %c0_11] : memref<16x256xf32, #tpu.memory_space<vmem>>, vector<16x256xf32>
      tpu.vector_store %arg7[%c0_10, %c0_11], %12 {strides = array<i32>} : memref<16x256xf32, #tpu.memory_space<vmem>>, vector<16x256xf32>,
    } else {
    }
    %c0 = arith.constant 0 : index
    %c0_1 = arith.constant 0 : index
    %3 = vector.load %arg7[%c0, %c0_1] : memref<16x256xf32, #tpu.memory_space<vmem>>, vector<16x256xf32>
    %c0_2 = arith.constant 0 : index
    %c0_3 = arith.constant 0 : index
    %4 = vector.load %arg3[%c0_2, %c0_3] : memref<16x256xbf16, #tpu.memory_space<vmem>>, vector<16x256xbf16>
    %c0_4 = arith.constant 0 : index
    %c0_5 = arith.constant 0 : index
    %5 = vector.load %arg4[%c0_4, %c0_5] : memref<256x256xbf16, #tpu.memory_space<vmem>>, vector<256x256xbf16>
    %cst = arith.constant dense<0.000000e+00> : vector<16x256xf32>
    %6 = tpu.matmul %4, %5, %cst {dimension_numbers = #tpu.dot_dimension_numbers<[1], [0], [0], [1], [0, 0, 1, 1], [], []>} : vector<16x256xbf16>, vector<256x256xbf16>, vector<16x256xf32> -> vector<16x256xf32>
    %7 = arith.addf %3, %6 : vector<16x256xf32>
    %c0_6 = arith.constant 0 : index
    %c0_7 = arith.constant 0 : index
    %8 = vector.load %arg7[%c0_6, %c0_7] : memref<16x256xf32, #tpu.memory_space<vmem>>, vector<16x256xf32>
    tpu.vector_store %arg7[%c0_6, %c0_7], %7 {strides = array<i32>} : memref<16x256xf32, #tpu.memory_space<vmem>>, vector<16x256xf32>,
    %c8_i32 = arith.constant 8 : i32
    %9 = arith.cmpi eq, %arg2, %c8_i32 : i32
    %10 = arith.extui %9 : i1 to i32
    %c0_i32_8 = arith.constant 0 : i32
    %11 = arith.cmpi ne, %10, %c0_i32_8 : i32
    scf.if %11 {
      %c0_9 = arith.constant 0 : index
      %c0_10 = arith.constant 0 : index
      %12 = vector.load %arg7[%c0_9, %c0_10] : memref<16x256xf32, #tpu.memory_space<vmem>>, vector<16x256xf32>
      %c0_11 = arith.constant 0 : index
      %c0_12 = arith.constant 0 : index
      %13 = vector.load %arg5[%c0_11, %c0_12] : memref<1x256xf32, #tpu.memory_space<vmem>>, vector<1x256xf32>
      %14 = vector.broadcast %13 : vector<1x256xf32> to vector<16x256xf32>
      %15 = arith.mulf %12, %14 : vector<16x256xf32>
      %c0_13 = arith.constant 0 : index
      %c0_14 = arith.constant 0 : index
      %16 = vector.load %arg6[%c0_13, %c0_14] : memref<1x256xf32, #tpu.memory_space<vmem>>, vector<1x256xf32>
      %17 = vector.broadcast %16 : vector<1x256xf32> to vector<16x256xf32>
      %18 = arith.addf %15, %17 : vector<16x256xf32>
      %cst_15 = arith.constant 0.000000e+00 : f32
      %19 = vector.broadcast %cst_15 : f32 to vector<16x256xf32>
      %20 = arith.cmpf oge, %18, %19 : vector<16x256xf32>
      %cst_16 = arith.constant 2.000000e-01 : f32
      %21 = vector.broadcast %cst_16 : f32 to vector<16x256xf32>
      %22 = arith.mulf %21, %18 : vector<16x256xf32>
      %23 = arith.select %20, %18, %22 : vector<16x256xi1>, vector<16x256xf32>
      %c0_17 = arith.constant 0 : index
      %c0_18 = arith.constant 0 : index
      %24 = vector.load %arg7[%c0_17, %c0_18] : memref<16x256xf32, #tpu.memory_space<vmem>>, vector<16x256xf32>
      tpu.vector_store %arg7[%c0_17, %c0_18], %23 {strides = array<i32>} : memref<16x256xf32, #tpu.memory_space<vmem>>, vector<16x256xf32>,
    } else {
    }
    return
  }
  func.func @transform_0(%arg0: i32, %arg1: i32, %arg2: i32) -> (i32, i32) {
    %c0_i32 = arith.constant 0 : i32
    return %arg0, %arg2 : i32, i32
  }
  func.func @transform_1(%arg0: i32, %arg1: i32, %arg2: i32) -> (i32, i32) {
    %c0_i32 = arith.constant 0 : i32
    return %arg2, %arg1 : i32, i32
  }
  func.func @transform_2(%arg0: i32, %arg1: i32, %arg2: i32) -> (i32, i32) {
    %c0_i32 = arith.constant 0 : i32
    %c0_i32_0 = arith.constant 0 : i32
    return %c0_i32, %arg1 : i32, i32
  }
  func.func @transform_3(%arg0: i32, %arg1: i32, %arg2: i32) -> (i32, i32) {
    %c0_i32 = arith.constant 0 : i32
    %c0_i32_0 = arith.constant 0 : i32
    return %c0_i32, %arg1 : i32, i32
  }
  func.func @transform_4(%arg0: i32, %arg1: i32, %arg2: i32) -> (i32, i32) {
    %c0_i32 = arith.constant 0 : i32
    return %arg0, %arg1 : i32, i32
  }
}

module attributes {stable_mosaic.version = 11 : i64} {
  func.func @_matmul_fused_kernel(%arg0: i32, %arg1: i32, %arg2: i32, %arg3: memref<16x256xbf16, #tpu.memory_space<vmem>>, %arg4: memref<256x256xbf16, #tpu.memory_space<vmem>>, %arg5: memref<1x256xf32, #tpu.memory_space<vmem>>, %arg6: memref<1x256xf32, #tpu.memory_space<vmem>>, %arg7: memref<16x256xf32, #tpu.memory_space<vmem>>) attributes {dimension_semantics = [#tpu.dimension_semantics<parallel>, #tpu.dimension_semantics<parallel>, #tpu.dimension_semantics<arbitrary>], iteration_bounds = array<i64: 1, 2, 18>, scalar_prefetch = 0 : i64, scratch_operands = 0 : i64, tpu.core_type = #tpu.core_type<tc>, window_params = [{transform_indices = @transform_0, window_bounds = array<i64: 16, 256>}, {transform_indices = @transform_1, window_bounds = array<i64: 256, 256>}, {transform_indices = @transform_2, window_bounds = array<i64: 1, 256>}, {transform_indices = @transform_3, window_bounds = array<i64: 1, 256>}, {transform_indices = @transform_4, window_bounds = array<i64: 16, 256>}]} {
    %c0_i32 = arith.constant 0 : i32
    %0 = arith.cmpi eq, %arg2, %c0_i32 : i32
    %1 = arith.extui %0 : i1 to i32
    %c0_i32_0 = arith.constant 0 : i32
    %2 = arith.cmpi ne, %1, %c0_i32_0 : i32
    scf.if %2 {
      %cst_9 = arith.constant 0.000000e+00 : f32
      %12 = vector.broadcast %cst_9 : f32 to vector<16x256xf32>
      %c0_10 = arith.constant 0 : index
      %c0_11 = arith.constant 0 : index
      %13 = vector.load %arg7[%c0_10, %c0_11] : memref<16x256xf32, #tpu.memory_space<vmem>>, vector<16x256xf32>
      tpu.vector_store %arg7[%c0_10, %c0_11], %12 {strides = array<i32>} : memref<16x256xf32, #tpu.memory_space<vmem>>, vector<16x256xf32>,
    } else {
    }
    %c0 = arith.constant 0 : index
    %c0_1 = arith.constant 0 : index
    %3 = vector.load %arg7[%c0, %c0_1] : memref<16x256xf32, #tpu.memory_space<vmem>>, vector<16x256xf32>
    %c0_2 = arith.constant 0 : index
    %c0_3 = arith.constant 0 : index
    %4 = vector.load %arg3[%c0_2, %c0_3] : memref<16x256xbf16, #tpu.memory_space<vmem>>, vector<16x256xbf16>
    %c0_4 = arith.constant 0 : index
    %c0_5 = arith.constant 0 : index
    %5 = vector.load %arg4[%c0_4, %c0_5] : memref<256x256xbf16, #tpu.memory_space<vmem>>, vector<256x256xbf16>
    %cst = arith.constant dense<0.000000e+00> : vector<16x256xf32>
    %6 = tpu.matmul %4, %5, %cst {dimension_numbers = #tpu.dot_dimension_numbers<[1], [0], [0], [1], [0, 0, 1, 1], [], []>} : vector<16x256xbf16>, vector<256x256xbf16>, vector<16x256xf32> -> vector<16x256xf32>
    %7 = arith.addf %3, %6 : vector<16x256xf32>
    %c0_6 = arith.constant 0 : index
    %c0_7 = arith.constant 0 : index
    %8 = vector.load %arg7[%c0_6, %c0_7] : memref<16x256xf32, #tpu.memory_space<vmem>>, vector<16x256xf32>
    tpu.vector_store %arg7[%c0_6, %c0_7], %7 {strides = array<i32>} : memref<16x256xf32, #tpu.memory_space<vmem>>, vector<16x256xf32>,
    %c17_i32 = arith.constant 17 : i32
    %9 = arith.cmpi eq, %arg2, %c17_i32 : i32
    %10 = arith.extui %9 : i1 to i32
    %c0_i32_8 = arith.constant 0 : i32
    %11 = arith.cmpi ne, %10, %c0_i32_8 : i32
    scf.if %11 {
      %c0_9 = arith.constant 0 : index
      %c0_10 = arith.constant 0 : index
      %12 = vector.load %arg7[%c0_9, %c0_10] : memref<16x256xf32, #tpu.memory_space<vmem>>, vector<16x256xf32>
      %c0_11 = arith.constant 0 : index
      %c0_12 = arith.constant 0 : index
      %13 = vector.load %arg5[%c0_11, %c0_12] : memref<1x256xf32, #tpu.memory_space<vmem>>, vector<1x256xf32>
      %14 = vector.broadcast %13 : vector<1x256xf32> to vector<16x256xf32>
      %15 = arith.mulf %12, %14 : vector<16x256xf32>
      %c0_13 = arith.constant 0 : index
      %c0_14 = arith.constant 0 : index
      %16 = vector.load %arg6[%c0_13, %c0_14] : memref<1x256xf32, #tpu.memory_space<vmem>>, vector<1x256xf32>
      %17 = vector.broadcast %16 : vector<1x256xf32> to vector<16x256xf32>
      %18 = arith.addf %15, %17 : vector<16x256xf32>
      %cst_15 = arith.constant 0.000000e+00 : f32
      %19 = vector.broadcast %cst_15 : f32 to vector<16x256xf32>
      %20 = arith.cmpf oge, %18, %19 : vector<16x256xf32>
      %cst_16 = arith.constant 2.000000e-01 : f32
      %21 = vector.broadcast %cst_16 : f32 to vector<16x256xf32>
      %22 = arith.mulf %21, %18 : vector<16x256xf32>
      %23 = arith.select %20, %18, %22 : vector<16x256xi1>, vector<16x256xf32>
      %c0_17 = arith.constant 0 : index
      %c0_18 = arith.constant 0 : index
      %24 = vector.load %arg7[%c0_17, %c0_18] : memref<16x256xf32, #tpu.memory_space<vmem>>, vector<16x256xf32>
      tpu.vector_store %arg7[%c0_17, %c0_18], %23 {strides = array<i32>} : memref<16x256xf32, #tpu.memory_space<vmem>>, vector<16x256xf32>,
    } else {
    }
    return
  }
  func.func @transform_0(%arg0: i32, %arg1: i32, %arg2: i32) -> (i32, i32) {
    %c0_i32 = arith.constant 0 : i32
    return %arg0, %arg2 : i32, i32
  }
  func.func @transform_1(%arg0: i32, %arg1: i32, %arg2: i32) -> (i32, i32) {
    %c0_i32 = arith.constant 0 : i32
    return %arg2, %arg1 : i32, i32
  }
  func.func @transform_2(%arg0: i32, %arg1: i32, %arg2: i32) -> (i32, i32) {
    %c0_i32 = arith.constant 0 : i32
    %c0_i32_0 = arith.constant 0 : i32
    return %c0_i32, %arg1 : i32, i32
  }
  func.func @transform_3(%arg0: i32, %arg1: i32, %arg2: i32) -> (i32, i32) {
    %c0_i32 = arith.constant 0 : i32
    %c0_i32_0 = arith.constant 0 : i32
    return %c0_i32, %arg1 : i32, i32
  }
  func.func @transform_4(%arg0: i32, %arg1: i32, %arg2: i32) -> (i32, i32) {
    %c0_i32 = arith.constant 0 : i32
    return %arg0, %arg1 : i32, i32
  }
}

module attributes {stable_mosaic.version = 11 : i64} {
  func.func @_matmul_fused_kernel(%arg0: i32, %arg1: i32, %arg2: i32, %arg3: memref<16x256xbf16, #tpu.memory_space<vmem>>, %arg4: memref<256x128xbf16, #tpu.memory_space<vmem>>, %arg5: memref<1x128xf32, #tpu.memory_space<vmem>>, %arg6: memref<1x128xf32, #tpu.memory_space<vmem>>, %arg7: memref<16x128xf32, #tpu.memory_space<vmem>>) attributes {dimension_semantics = [#tpu.dimension_semantics<parallel>, #tpu.dimension_semantics<parallel>, #tpu.dimension_semantics<arbitrary>], iteration_bounds = array<i64: 1, 1, 18>, scalar_prefetch = 0 : i64, scratch_operands = 0 : i64, tpu.core_type = #tpu.core_type<tc>, window_params = [{transform_indices = @transform_0, window_bounds = array<i64: 16, 256>}, {transform_indices = @transform_1, window_bounds = array<i64: 256, 128>}, {transform_indices = @transform_2, window_bounds = array<i64: 1, 128>}, {transform_indices = @transform_3, window_bounds = array<i64: 1, 128>}, {transform_indices = @transform_4, window_bounds = array<i64: 16, 128>}]} {
    %c0_i32 = arith.constant 0 : i32
    %0 = arith.cmpi eq, %arg2, %c0_i32 : i32
    %1 = arith.extui %0 : i1 to i32
    %c0_i32_0 = arith.constant 0 : i32
    %2 = arith.cmpi ne, %1, %c0_i32_0 : i32
    scf.if %2 {
      %cst_9 = arith.constant 0.000000e+00 : f32
      %12 = vector.broadcast %cst_9 : f32 to vector<16x128xf32>
      %c0_10 = arith.constant 0 : index
      %c0_11 = arith.constant 0 : index
      %13 = vector.load %arg7[%c0_10, %c0_11] : memref<16x128xf32, #tpu.memory_space<vmem>>, vector<16x128xf32>
      tpu.vector_store %arg7[%c0_10, %c0_11], %12 {strides = array<i32>} : memref<16x128xf32, #tpu.memory_space<vmem>>, vector<16x128xf32>,
    } else {
    }
    %c0 = arith.constant 0 : index
    %c0_1 = arith.constant 0 : index
    %3 = vector.load %arg7[%c0, %c0_1] : memref<16x128xf32, #tpu.memory_space<vmem>>, vector<16x128xf32>
    %c0_2 = arith.constant 0 : index
    %c0_3 = arith.constant 0 : index
    %4 = vector.load %arg3[%c0_2, %c0_3] : memref<16x256xbf16, #tpu.memory_space<vmem>>, vector<16x256xbf16>
    %c0_4 = arith.constant 0 : index
    %c0_5 = arith.constant 0 : index
    %5 = vector.load %arg4[%c0_4, %c0_5] : memref<256x128xbf16, #tpu.memory_space<vmem>>, vector<256x128xbf16>
    %cst = arith.constant dense<0.000000e+00> : vector<16x128xf32>
    %6 = tpu.matmul %4, %5, %cst {dimension_numbers = #tpu.dot_dimension_numbers<[1], [0], [0], [1], [0, 0, 1, 1], [], []>} : vector<16x256xbf16>, vector<256x128xbf16>, vector<16x128xf32> -> vector<16x128xf32>
    %7 = arith.addf %3, %6 : vector<16x128xf32>
    %c0_6 = arith.constant 0 : index
    %c0_7 = arith.constant 0 : index
    %8 = vector.load %arg7[%c0_6, %c0_7] : memref<16x128xf32, #tpu.memory_space<vmem>>, vector<16x128xf32>
    tpu.vector_store %arg7[%c0_6, %c0_7], %7 {strides = array<i32>} : memref<16x128xf32, #tpu.memory_space<vmem>>, vector<16x128xf32>,
    %c17_i32 = arith.constant 17 : i32
    %9 = arith.cmpi eq, %arg2, %c17_i32 : i32
    %10 = arith.extui %9 : i1 to i32
    %c0_i32_8 = arith.constant 0 : i32
    %11 = arith.cmpi ne, %10, %c0_i32_8 : i32
    scf.if %11 {
      %c0_9 = arith.constant 0 : index
      %c0_10 = arith.constant 0 : index
      %12 = vector.load %arg7[%c0_9, %c0_10] : memref<16x128xf32, #tpu.memory_space<vmem>>, vector<16x128xf32>
      %c0_11 = arith.constant 0 : index
      %c0_12 = arith.constant 0 : index
      %13 = vector.load %arg5[%c0_11, %c0_12] : memref<1x128xf32, #tpu.memory_space<vmem>>, vector<1x128xf32>
      %14 = vector.broadcast %13 : vector<1x128xf32> to vector<16x128xf32>
      %15 = arith.mulf %12, %14 : vector<16x128xf32>
      %c0_13 = arith.constant 0 : index
      %c0_14 = arith.constant 0 : index
      %16 = vector.load %arg6[%c0_13, %c0_14] : memref<1x128xf32, #tpu.memory_space<vmem>>, vector<1x128xf32>
      %17 = vector.broadcast %16 : vector<1x128xf32> to vector<16x128xf32>
      %18 = arith.addf %15, %17 : vector<16x128xf32>
      %cst_15 = arith.constant 0.000000e+00 : f32
      %19 = vector.broadcast %cst_15 : f32 to vector<16x128xf32>
      %20 = arith.subf %19, %18 : vector<16x128xf32>
      %21 = math.exp %20 : vector<16x128xf32>
      %cst_16 = arith.constant 1.000000e+00 : f32
      %22 = vector.broadcast %cst_16 : f32 to vector<16x128xf32>
      %23 = arith.addf %22, %21 : vector<16x128xf32>
      %24 = tpu.reciprocal %23 {approx = true} : vector<16x128xf32> -> vector<16x128xf32>
      %c0_17 = arith.constant 0 : index
      %c0_18 = arith.constant 0 : index
      %25 = vector.load %arg7[%c0_17, %c0_18] : memref<16x128xf32, #tpu.memory_space<vmem>>, vector<16x128xf32>
      tpu.vector_store %arg7[%c0_17, %c0_18], %24 {strides = array<i32>} : memref<16x128xf32, #tpu.memory_space<vmem>>, vector<16x128xf32>,
    } else {
    }
    return
  }
  func.func @transform_0(%arg0: i32, %arg1: i32, %arg2: i32) -> (i32, i32) {
    %c0_i32 = arith.constant 0 : i32
    return %arg0, %arg2 : i32, i32
  }
  func.func @transform_1(%arg0: i32, %arg1: i32, %arg2: i32) -> (i32, i32) {
    %c0_i32 = arith.constant 0 : i32
    return %arg2, %arg1 : i32, i32
  }
  func.func @transform_2(%arg0: i32, %arg1: i32, %arg2: i32) -> (i32, i32) {
    %c0_i32 = arith.constant 0 : i32
    %c0_i32_0 = arith.constant 0 : i32
    return %c0_i32, %arg1 : i32, i32
  }
  func.func @transform_3(%arg0: i32, %arg1: i32, %arg2: i32) -> (i32, i32) {
    %c0_i32 = arith.constant 0 : i32
    %c0_i32_0 = arith.constant 0 : i32
    return %c0_i32, %arg1 : i32, i32
  }
  func.func @transform_4(%arg0: i32, %arg1: i32, %arg2: i32) -> (i32, i32) {
    %c0_i32 = arith.constant 0 : i32
    return %arg0, %arg1 : i32, i32
  }
}

</mosaic_0001>

<bundles_post_ra>
// kernel: discriminator_forward.9
= control target key start
LH: loop header
LB: loop body
LE: loop exit
PB: predicated region body
PF: predicated region fallthrough
CT: control target
= control target key end

     0   :  { %s2170_s1 = inlined_call_operand.vmem [shape: bf16[128,128], index: 1, kind: input, shape index: {}]   ;;  %s2171_s0 = inlined_call_operand.vmem [shape: bf16[512,128], index: 0, kind: input, shape index: {}]   ;;  %s2172_s2 = inlined_call_operand.vmem [shape: f32[1,128], index: 2, kind: input, shape index: {}]   ;;  %s2173_s3 = inlined_call_operand.vmem [shape: f32[1,128], index: 3, kind: input, shape index: {}]   ;;  %s2174_s4 = inlined_call_operand.vmem [shape: f32[512,128], index: 4, kind: output, shape index: {}]  }
   0x1   :  { %v1535_v0 = vld [vmem:[%s2170_s1] sm:$0xff]   ;;  %v1536_v1 = vld [vmem:[%s2170_s1 + $0x8] sm:$0xff]   ;;  %v1537_v2 = vld [vmem:[%s2170_s1 + $0x10] sm:$0xff]  }
   0x2   :  { %1438 = vmatprep.subr.bf16.mxu0 %v1535_v0  ;;  %1518 = vmatprep.subr.bf16.mxu1 %v1535_v0  ;;  %v1538_v3 = vld [vmem:[%s2170_s1 + $0x18] sm:$0xff]   ;;  %v1543_v4 = vld [vmem:[%s2171_s0] sm:$0xff]   ;;  %v1540_v7 = vld [vmem:[%s2170_s1 + $0x28] sm:$0xff]  }
   0x3   :  { %1439 = vmatpush3.bf16.msra.mxu0 %v1535_v0  ;;  %1526 = vmatpush3.bf16.msra.mxu1 %v1535_v0  ;;  %v1544_v5 = vld [vmem:[%s2171_s0 + $0x80] sm:$0xff]   ;;  %v1541_v8 = vld [vmem:[%s2170_s1 + $0x30] sm:$0xff]   ;;  %v1542_v9 = vld [vmem:[%s2170_s1 + $0x38] sm:$0xff]  }
   0x4   :  { %1440 = vmatprep.subr.bf16.mxu0 %v1536_v1  ;;  %1519 = vmatprep.subr.bf16.mxu1 %v1536_v1  ;;  %v1539_v6 = vld [vmem:[%s2170_s1 + $0x20] sm:$0xff]   ;;  %v1545_v10 = vld [vmem:[%s2171_s0 + $0x8] sm:$0xff]   ;;  %v1547_v12 = vld [vmem:[%s2171_s0 + $0x10] sm:$0xff]  }
   0x5   :  { %1454 = vmatprep.mubr.bf16.mxu0 %v1543_v4  ;;  %1486 = vmatprep.mubr.bf16.mxu1 %v1544_v5  ;;  %v1546_v11 = vld [vmem:[%s2171_s0 + $0x88] sm:$0xff]   ;;  %v1548_v13 = vld [vmem:[%s2171_s0 + $0x90] sm:$0xff]   ;;  %v1549_v14 = vld [vmem:[%s2171_s0 + $0x18] sm:$0xff]  }
   0x6   :  { %v1550_v15 = vld [vmem:[%s2171_s0 + $0x98] sm:$0xff]   ;;  %v1551_v16 = vld [vmem:[%s2171_s0 + $0x20] sm:$0xff]   ;;  %v1553_v18 = vld [vmem:[%s2171_s0 + $0x28] sm:$0xff]  }
   0x7   :  { %1441 = vmatpush3.bf16.msra.mxu0 %v1536_v1  ;;  %1527 = vmatpush3.bf16.msra.mxu1 %v1536_v1  ;;  %v1552_v17 = vld [vmem:[%s2171_s0 + $0xa0] sm:$0xff]   ;;  %v1554_v19 = vld [vmem:[%s2171_s0 + $0xa8] sm:$0xff]   ;;  %v1555_v20 = vld [vmem:[%s2171_s0 + $0x30] sm:$0xff]  }
   0x8   :  { %1442 = vmatprep.subr.bf16.mxu0 %v1537_v2  ;;  %1520 = vmatprep.subr.bf16.mxu1 %v1537_v2  ;;  %v1556_v21 = vld [vmem:[%s2171_s0 + $0xb0] sm:$0xff]   ;;  %v1557_v22 = vld [vmem:[%s2171_s0 + $0x38] sm:$0xff]   ;;  %v1559_v24 = vld [vmem:[%s2171_s0 + $0x40] sm:$0xff]  }
   0x9   :  { %v1558_v23 = vld [vmem:[%s2171_s0 + $0xb8] sm:$0xff]   ;;  %v1560_v25 = vld [vmem:[%s2171_s0 + $0xc0] sm:$0xff]   ;;  %v1561_v26 = vld [vmem:[%s2171_s0 + $0x48] sm:$0xff]  }
   0xa   :  { %v1562_v27 = vld [vmem:[%s2171_s0 + $0xc8] sm:$0xff]   ;;  %v1563_v28 = vld [vmem:[%s2171_s0 + $0x50] sm:$0xff]   ;;  %v1565_v30 = vld [vmem:[%s2171_s0 + $0x58] sm:$0xff]  }
   0xb   :  { %1443 = vmatpush3.bf16.msra.mxu0 %v1537_v2  ;;  %1528 = vmatpush3.bf16.msra.mxu1 %v1537_v2  ;;  %v1564_v29 = vld [vmem:[%s2171_s0 + $0xd0] sm:$0xff]   ;;  %v1566_v31 = vld [vmem:[%s2171_s0 + $0xd8] sm:$0xff]   ;;  %v1567_v32 = vld [vmem:[%s2171_s0 + $0x60] sm:$0xff]  }
   0xc   :  { %1444 = vmatprep.subr.bf16.mxu0 %v1538_v3  ;;  %1521 = vmatprep.subr.bf16.mxu1 %v1538_v3  ;;  %v1568_v33 = vld [vmem:[%s2171_s0 + $0xe0] sm:$0xff]   ;;  %v1569_v34 = vld [vmem:[%s2171_s0 + $0x68] sm:$0xff]   ;;  %v1571_v36 = vld [vmem:[%s2171_s0 + $0x70] sm:$0xff]  }
   0xd   :  { %v1570_v35 = vld [vmem:[%s2171_s0 + $0xe8] sm:$0xff]   ;;  %v1572_v37 = vld [vmem:[%s2171_s0 + $0xf0] sm:$0xff]   ;;  %v1573_v38 = vld [vmem:[%s2171_s0 + $0x78] sm:$0xff]  }
   0xe   :  { %v1574_v39 = vld [vmem:[%s2171_s0 + $0xf8] sm:$0xff]   ;;  %v1723_v41 = vld [vmem:[%s2172_s2] ss:$0 sm:$0xff] }
   0xf   :  { %1445 = vmatpush3.bf16.msra.mxu0 %v1538_v3  ;;  %1529 = vmatpush3.bf16.msra.mxu1 %v1538_v3  ;;  %v1728_v45 = vld [vmem:[%s2173_s3] ss:$0 sm:$0xff] }
  0x10   :  { %1446 = vmatprep.subr.bf16.mxu0 %v1539_v6  ;;  %1522 = vmatprep.subr.bf16.mxu1 %v1539_v6 }
  0x13   :  { %1447 = vmatpush3.bf16.msra.mxu0 %v1539_v6  ;;  %1530 = vmatpush3.bf16.msra.mxu1 %v1539_v6 }
  0x14   :  { %1448 = vmatprep.subr.bf16.mxu0 %v1540_v7  ;;  %1523 = vmatprep.subr.bf16.mxu1 %v1540_v7 }
  0x17   :  { %1449 = vmatpush3.bf16.msra.mxu0 %v1540_v7  ;;  %1531 = vmatpush3.bf16.msra.mxu1 %v1540_v7 }
  0x18   :  { %1450 = vmatprep.subr.bf16.mxu0 %v1541_v8  ;;  %1524 = vmatprep.subr.bf16.mxu1 %v1541_v8 }
  0x1b   :  { %1451 = vmatpush3.bf16.msra.mxu0 %v1541_v8  ;;  %1532 = vmatpush3.bf16.msra.mxu1 %v1541_v8 }
  0x1c   :  { %1452 = vmatprep.subr.bf16.mxu0 %v1542_v9  ;;  %1525 = vmatprep.subr.bf16.mxu1 %v1542_v9 }
  0x1f   :  { %1453 = vmatpush3.bf16.msra.mxu0 %v1542_v9  ;;  %1533 = vmatpush3.bf16.msra.mxu1 %v1542_v9 }
  0x22   :  { %1455 = vmatmul.mubr.bf16.vlgmr.msra.gmra.mrb[0].mxu0 %v1545_v10  ;;  %1487 = vmatmul.mubr.bf16.vlgmr.msra.gmra.mrb[0].mxu1 %v1546_v11 }
  0x23   :  { %1458 = vmatprep.mubr.bf16.mxu0 %v1547_v12  ;;  %1490 = vmatprep.mubr.bf16.mxu1 %v1548_v13 }
  0x2a   :  { %1459 = vmatmul.mubr.bf16.gmra.mrb[4].mxu0 %v1549_v14  ;;  %1491 = vmatmul.mubr.bf16.gmra.mrb[4].mxu1 %v1550_v15 }
  0x2b   :  { %1462 = vmatprep.mubr.bf16.mxu0 %v1551_v16  ;;  %1494 = vmatprep.mubr.bf16.mxu1 %v1552_v17 }
  0x32   :  { %1463 = vmatmul.mubr.bf16.gmra.mrb[8].mxu0 %v1553_v18  ;;  %1495 = vmatmul.mubr.bf16.gmra.mrb[8].mxu1 %v1554_v19 }
  0x33   :  { %1466 = vmatprep.mubr.bf16.mxu0 %v1555_v20  ;;  %1498 = vmatprep.mubr.bf16.mxu1 %v1556_v21 }
  0x3a   :  { %1467 = vmatmul.mubr.bf16.gmra.mrb[12].mxu0 %v1557_v22  ;;  %1499 = vmatmul.mubr.bf16.gmra.mrb[12].mxu1 %v1558_v23 }
  0x3b   :  { %1470 = vmatprep.mubr.bf16.mxu0 %v1559_v24  ;;  %1502 = vmatprep.mubr.bf16.mxu1 %v1560_v25 }
  0x42   :  { %1471 = vmatmul.mubr.bf16.gmra.mrb[16].mxu0 %v1561_v26  ;;  %1503 = vmatmul.mubr.bf16.gmra.mrb[16].mxu1 %v1562_v27 }
  0x43   :  { %1474 = vmatprep.mubr.bf16.mxu0 %v1563_v28  ;;  %1506 = vmatprep.mubr.bf16.mxu1 %v1564_v29 }
  0x4a   :  { %1475 = vmatmul.mubr.bf16.gmra.mrb[20].mxu0 %v1565_v30  ;;  %1507 = vmatmul.mubr.bf16.gmra.mrb[20].mxu1 %v1566_v31 }
  0x4b   :  { %1478 = vmatprep.mubr.bf16.mxu0 %v1567_v32  ;;  %1510 = vmatprep.mubr.bf16.mxu1 %v1568_v33 }
  0x52   :  { %1479 = vmatmul.mubr.bf16.gmra.mrb[24].mxu0 %v1569_v34  ;;  %1511 = vmatmul.mubr.bf16.gmra.mrb[24].mxu1 %v1570_v35 }
  0x53   :  { %1482 = vmatprep.mubr.bf16.mxu0 %v1571_v36  ;;  %1514 = vmatprep.mubr.bf16.mxu1 %v1572_v37 }
  0x5a   :  { %1483 = vmatmul.mubr.bf16.gmra.mrb[28].mxu0 %v1573_v38  ;;  %1515 = vmatmul.mubr.bf16.gmra.mrb[28].mxu1 %v1574_v39 }
  0xf5   :  { %v1456_v40 = vpop.f32.mrb[0].mxu0  ;;  %v1488_v42 = vpop.f32.mrb[0].mxu1 }
  0xf6   :  { %v504_v43 = vpop.f32.mrb[1].mxu0  ;;  %v632_v44 = vpop.f32.mrb[1].mxu1  ;;  %v963_v48 = vmul.f32 %v1456_v40, %v1723_v41  ;;  %v995_v49 = vmul.f32 %v1488_v42, %v1723_v41 }
  0xf7   :  { %v1457_v46 = vpop.f32.mrb[2].mxu0  ;;  %v1489_v47 = vpop.f32.mrb[2].mxu1  ;;  %v961_v52 = vmul.f32 %v1723_v41, %v504_v43  ;;  %v993_v53 = vmul.f32 %v1723_v41, %v632_v44 }
  0xf8   :  { %v507_v50 = vpop.f32.mrb[3].mxu0  ;;  %v635_v51 = vpop.f32.mrb[3].mxu1  ;;  %v1034_v54 = vadd.f32 %v1728_v45, %v963_v48  ;;  %v1066_v55 = vadd.f32 %v1728_v45, %v995_v49  ;;  %v964_v56 = vmul.f32 %v1457_v46, %v1723_v41  ;;  %v996_v57 = vmul.f32 %v1489_v47, %v1723_v41 }
  0xf9   :  { %v1032_v58 = vadd.f32 %v1728_v45, %v961_v52  ;;  %v1064_v59 = vadd.f32 %v1728_v45, %v993_v53  ;;  %v962_v60 = vmul.f32 %v1723_v41, %v507_v50  ;;  %v994_v61 = vmul.f32 %v1723_v41, %v635_v51 }
  0xfa   :  { %vm1098_vm0 = vcmp.ge.f32.partialorder %v1034_v54, 0.0  ;;  %v1162_v62 = vmul.f32 0.01, %v1034_v54  ;;  %vm1130_vm1 = vcmp.ge.f32.partialorder %v1066_v55, 0.0  ;;  %v1194_v63 = vmul.f32 0.01, %v1066_v55 }
  0xfb   :  { %vm1096_vm2 = vcmp.ge.f32.partialorder %v1032_v58, 0.0  ;;  %v1160_v0 = vmul.f32 0.01, %v1032_v58  ;;  %vm1128_vm3 = vcmp.ge.f32.partialorder %v1064_v59, 0.0  ;;  %v1192_v1 = vmul.f32 0.01, %v1064_v59 }
  0xfc   :  { %v1226_v2 = vsel %vm1098_vm0, %v1034_v54, %v1162_v62  ;;  %v1258_v3 = vsel %vm1130_vm1, %v1066_v55, %v1194_v63  ;;  %v1035_v4 = vadd.f32 %v1728_v45, %v964_v56  ;;  %v1067_v5 = vadd.f32 %v1728_v45, %v996_v57 }
  0xfd   :  { %v1460_v6 = vpop.f32.mrb[4].mxu0  ;;  %v1492_v7 = vpop.f32.mrb[4].mxu1  ;;  %1290 = vst [vmem:[%s2174_s4 + $0x10] sm:$0xff] %v1226_v2  ;;  %1322 = vst [vmem:[%s2174_s4 + $0x110] sm:$0xff] %v1258_v3  ;;  %v1224_v8 = vsel %vm1096_vm2, %v1032_v58, %v1160_v0  ;;  %v1256_v9 = vsel %vm1128_vm3, %v1064_v59, %v1192_v1  ;;  %v1033_v10 = vadd.f32 %v1728_v45, %v962_v60 }
  0xfe   :  { %v1065_v11 = vadd.f32 %v1728_v45, %v994_v61  ;;  %v520_v12 = vpop.f32.mrb[5].mxu0  ;;  %v648_v13 = vpop.f32.mrb[5].mxu1  ;;  %1288 = vst [vmem:[%s2174_s4] sm:$0xff] %v1224_v8  ;;  %1320 = vst [vmem:[%s2174_s4 + $0x100] sm:$0xff] %v1256_v9  ;;  %vm1099_vm4 = vcmp.ge.f32.partialorder %v1035_v4, 0.0  ;;  %v1163_v14 = vmul.f32 0.01, %v1035_v4  ;;  %v967_v26 = vmul.f32 %v1460_v6, %v1723_v41 }
  0xff   :  { %vm1131_vm5 = vcmp.ge.f32.partialorder %v1067_v5, 0.0  ;;  %v1195_v15 = vmul.f32 0.01, %v1067_v5  ;;  %vm1097_vm6 = vcmp.ge.f32.partialorder %v1033_v10, 0.0  ;;  %v1161_v16 = vmul.f32 0.01, %v1033_v10 }
 0x100   :  { %vm1129_vm7 = vcmp.ge.f32.partialorder %v1065_v11, 0.0  ;;  %v1193_v17 = vmul.f32 0.01, %v1065_v11  ;;  %v1227_v18 = vsel %vm1099_vm4, %v1035_v4, %v1163_v14  ;;  %v1461_v20 = vpop.f32.mrb[6].mxu0  ;;  %v1493_v21 = vpop.f32.mrb[6].mxu1  ;;  %v999_v27 = vmul.f32 %v1492_v7, %v1723_v41 }
 0x101   :  { %v1259_v19 = vsel %vm1131_vm5, %v1067_v5, %v1195_v15  ;;  %1291 = vst [vmem:[%s2174_s4 + $0x18] sm:$0xff] %v1227_v18  ;;  %v1225_v22 = vsel %vm1097_vm6, %v1033_v10, %v1161_v16  ;;  %v523_v24 = vpop.f32.mrb[7].mxu0  ;;  %v651_v25 = vpop.f32.mrb[7].mxu1  ;;  %v965_v28 = vmul.f32 %v1723_v41, %v520_v12  ;;  %v997_v29 = vmul.f32 %v1723_v41, %v648_v13 }
 0x102   :  { %1323 = vst [vmem:[%s2174_s4 + $0x118] sm:$0xff] %v1259_v19  ;;  %v1257_v23 = vsel %vm1129_vm7, %v1065_v11, %v1193_v17  ;;  %1289 = vst [vmem:[%s2174_s4 + $0x8] sm:$0xff] %v1225_v22  ;;  %v1038_v32 = vadd.f32 %v1728_v45, %v967_v26  ;;  %v1070_v33 = vadd.f32 %v1728_v45, %v999_v27 }
 0x103   :  { %1321 = vst [vmem:[%s2174_s4 + $0x108] sm:$0xff] %v1257_v23  ;;  %v968_v34 = vmul.f32 %v1461_v20, %v1723_v41  ;;  %v1000_v35 = vmul.f32 %v1493_v21, %v1723_v41  ;;  %v1036_v38 = vadd.f32 %v1728_v45, %v965_v28  ;;  %v1068_v39 = vadd.f32 %v1728_v45, %v997_v29 }
 0x104   :  { %v966_v40 = vmul.f32 %v1723_v41, %v523_v24  ;;  %v998_v42 = vmul.f32 %v1723_v41, %v651_v25  ;;  %vm1102_vm8 = vcmp.ge.f32.partialorder %v1038_v32, 0.0  ;;  %v1166_v46 = vmul.f32 0.01, %v1038_v32 }
 0x105   :  { %v1464_v30 = vpop.f32.mrb[8].mxu0  ;;  %v1496_v31 = vpop.f32.mrb[8].mxu1  ;;  %vm1134_vm9 = vcmp.ge.f32.partialorder %v1070_v33, 0.0  ;;  %v1198_v47 = vmul.f32 0.01, %v1070_v33  ;;  %vm1100_vm10 = vcmp.ge.f32.partialorder %v1036_v38, 0.0  ;;  %v1039_v52 = vadd.f32 %v1728_v45, %v968_v34 }
 0x106   :  { %v536_v36 = vpop.f32.mrb[9].mxu0  ;;  %v664_v37 = vpop.f32.mrb[9].mxu1  ;;  %v1164_v48 = vmul.f32 0.01, %v1036_v38  ;;  %vm1132_vm11 = vcmp.ge.f32.partialorder %v1068_v39, 0.0  ;;  %v1230_v50 = vsel %vm1102_vm8, %v1038_v32, %v1166_v46  ;;  %v1071_v53 = vadd.f32 %v1728_v45, %v1000_v35 }
 0x107   :  { %v1465_v43 = vpop.f32.mrb[10].mxu0  ;;  %v1497_v44 = vpop.f32.mrb[10].mxu1  ;;  %v1196_v49 = vmul.f32 0.01, %v1068_v39  ;;  %v1262_v51 = vsel %vm1134_vm9, %v1070_v33, %v1198_v47  ;;  %1294 = vst [vmem:[%s2174_s4 + $0x30] sm:$0xff] %v1230_v50  ;;  %v1037_v58 = vadd.f32 %v1728_v45, %v966_v40  ;;  %v1069_v59 = vadd.f32 %v1728_v45, %v998_v42 }
 0x108   :  { %v539_v54 = vpop.f32.mrb[11].mxu0  ;;  %v667_v55 = vpop.f32.mrb[11].mxu1  ;;  %1326 = vst [vmem:[%s2174_s4 + $0x130] sm:$0xff] %v1262_v51  ;;  %v1228_v56 = vsel %vm1100_vm10, %v1036_v38, %v1164_v48  ;;  %vm1103_vm12 = vcmp.ge.f32.partialorder %v1039_v52, 0.0  ;;  %v1167_v60 = vmul.f32 0.01, %v1039_v52  ;;  %v971_v8 = vmul.f32 %v1464_v30, %v1723_v41 }
 0x109   :  { %v1260_v57 = vsel %vm1132_vm11, %v1068_v39, %v1196_v49  ;;  %1292 = vst [vmem:[%s2174_s4 + $0x20] sm:$0xff] %v1228_v56  ;;  %vm1135_vm13 = vcmp.ge.f32.partialorder %v1071_v53, 0.0  ;;  %v1199_v61 = vmul.f32 0.01, %v1071_v53  ;;  %vm1101_vm14 = vcmp.ge.f32.partialorder %v1037_v58, 0.0 }
 0x10a   :  { %1324 = vst [vmem:[%s2174_s4 + $0x120] sm:$0xff] %v1260_v57  ;;  %v1165_v62 = vmul.f32 0.01, %v1037_v58  ;;  %vm1133_vm15 = vcmp.ge.f32.partialorder %v1069_v59, 0.0  ;;  %v1197_v63 = vmul.f32 0.01, %v1069_v59  ;;  %v1231_v0 = vsel %vm1103_vm12, %v1039_v52, %v1167_v60 }
 0x10b   :  { %v1263_v1 = vsel %vm1135_vm13, %v1071_v53, %v1199_v61  ;;  %1295 = vst [vmem:[%s2174_s4 + $0x38] sm:$0xff] %v1231_v0  ;;  %v1003_v9 = vmul.f32 %v1496_v31, %v1723_v41  ;;  %v969_v12 = vmul.f32 %v1723_v41, %v536_v36  ;;  %v1001_v13 = vmul.f32 %v1723_v41, %v664_v37 }
 0x10c   :  { %1327 = vst [vmem:[%s2174_s4 + $0x138] sm:$0xff] %v1263_v1  ;;  %v1229_v4 = vsel %vm1101_vm14, %v1037_v58, %v1165_v62  ;;  %v1261_v5 = vsel %vm1133_vm15, %v1069_v59, %v1197_v63  ;;  %v1042_v16 = vadd.f32 %v1728_v45, %v971_v8  ;;  %v972_v18 = vmul.f32 %v1465_v43, %v1723_v41 }
 0x10d   :  { %v1798_v2 = vpop.f32.mrb[12].mxu0  ;;  %v1800_v3 = vpop.f32.mrb[12].mxu1  ;;  %1293 = vst [vmem:[%s2174_s4 + $0x28] sm:$0xff] %v1229_v4  ;;  %1325 = vst [vmem:[%s2174_s4 + $0x128] sm:$0xff] %v1261_v5  ;;  %v1074_v17 = vadd.f32 %v1728_v45, %v1003_v9  ;;  %v1004_v19 = vmul.f32 %v1497_v44, %v1723_v41  ;;  %v1040_v20 = vadd.f32 %v1728_v45, %v969_v12 }
 0x10e   :  { %v1808_v6 = vpop.f32.mrb[13].mxu0  ;;  %v1810_v7 = vpop.f32.mrb[13].mxu1  ;;  %v1072_v21 = vadd.f32 %v1728_v45, %v1001_v13  ;;  %v970_v22 = vmul.f32 %v1723_v41, %v539_v54  ;;  %v1002_v23 = vmul.f32 %v1723_v41, %v667_v55  ;;  %vm1106_vm0 = vcmp.ge.f32.partialorder %v1042_v16, 0.0 }
 0x10f   :  { %v1820_v10 = vpop.f32.mrb[14].mxu0  ;;  %v1822_v11 = vpop.f32.mrb[14].mxu1  ;;  %v1170_v24 = vmul.f32 0.01, %v1042_v16  ;;  %vm1138_vm1 = vcmp.ge.f32.partialorder %v1074_v17, 0.0  ;;  %vm1104_vm2 = vcmp.ge.f32.partialorder %v1040_v20, 0.0  ;;  %v1043_v30 = vadd.f32 %v1728_v45, %v972_v18 }
 0x110   :  { %v1826_v14 = vpop.f32.mrb[15].mxu0  ;;  %v1828_v15 = vpop.f32.mrb[15].mxu1  ;;  %v1202_v25 = vmul.f32 0.01, %v1074_v17  ;;  %v1168_v26 = vmul.f32 0.01, %v1040_v20  ;;  %v1075_v31 = vadd.f32 %v1728_v45, %v1004_v19  ;;  %v1041_v36 = vadd.f32 %v1728_v45, %v970_v22 }
 0x111   :  { %vm1136_vm3 = vcmp.ge.f32.partialorder %v1072_v21, 0.0  ;;  %v1200_v27 = vmul.f32 0.01, %v1072_v21  ;;  %v1234_v28 = vsel %vm1106_vm0, %v1042_v16, %v1170_v24  ;;  %v1073_v37 = vadd.f32 %v1728_v45, %v1002_v23 }
 0x112   :  { %v1266_v29 = vsel %vm1138_vm1, %v1074_v17, %v1202_v25  ;;  %1298 = vst [vmem:[%s2174_s4 + $0x50] sm:$0xff] %v1234_v28  ;;  %v1232_v34 = vsel %vm1104_vm2, %v1040_v20, %v1168_v26  ;;  %vm1107_vm4 = vcmp.ge.f32.partialorder %v1043_v30, 0.0  ;;  %v1171_v40 = vmul.f32 0.01, %v1043_v30 }
 0x113   :  { %1330 = vst [vmem:[%s2174_s4 + $0x150] sm:$0xff] %v1266_v29  ;;  %v1264_v35 = vsel %vm1136_vm3, %v1072_v21, %v1200_v27  ;;  %1296 = vst [vmem:[%s2174_s4 + $0x40] sm:$0xff] %v1232_v34  ;;  %vm1139_vm5 = vcmp.ge.f32.partialorder %v1075_v31, 0.0  ;;  %v1203_v42 = vmul.f32 0.01, %v1075_v31  ;;  %vm1105_vm6 = vcmp.ge.f32.partialorder %v1041_v36, 0.0 }
 0x114   :  { %1328 = vst [vmem:[%s2174_s4 + $0x140] sm:$0xff] %v1264_v35  ;;  %v1169_v43 = vmul.f32 0.01, %v1041_v36  ;;  %vm1137_vm7 = vcmp.ge.f32.partialorder %v1073_v37, 0.0  ;;  %v1201_v44 = vmul.f32 0.01, %v1073_v37  ;;  %v1235_v46 = vsel %vm1107_vm4, %v1043_v30, %v1171_v40 }
 0x115   :  { %v1840_v32 = vpop.f32.mrb[16].mxu0  ;;  %v1842_v33 = vpop.f32.mrb[16].mxu1  ;;  %v1267_v47 = vsel %vm1139_vm5, %v1075_v31, %v1203_v42  ;;  %1299 = vst [vmem:[%s2174_s4 + $0x58] sm:$0xff] %v1235_v46  ;;  %v975_v54 = vmul.f32 %v1798_v2, %v1723_v41  ;;  %v1007_v55 = vmul.f32 %v1800_v3, %v1723_v41  ;;  %v973_v56 = vmul.f32 %v1723_v41, %v1808_v6 }
 0x116   :  { %v1852_v38 = vpop.f32.mrb[17].mxu0  ;;  %v1854_v39 = vpop.f32.mrb[17].mxu1  ;;  %1331 = vst [vmem:[%s2174_s4 + $0x158] sm:$0xff] %v1267_v47  ;;  %v1233_v50 = vsel %vm1105_vm6, %v1041_v36, %v1169_v43  ;;  %v1265_v51 = vsel %vm1137_vm7, %v1073_v37, %v1201_v44  ;;  %v1005_v57 = vmul.f32 %v1723_v41, %v1810_v7  ;;  %v976_v62 = vmul.f32 %v1820_v10, %v1723_v41 }
 0x117   :  { %v1862_v48 = vpop.f32.mrb[18].mxu0  ;;  %v1864_v49 = vpop.f32.mrb[18].mxu1  ;;  %1297 = vst [vmem:[%s2174_s4 + $0x48] sm:$0xff] %v1233_v50  ;;  %1329 = vst [vmem:[%s2174_s4 + $0x148] sm:$0xff] %v1265_v51  ;;  %v1046_v60 = vadd.f32 %v1728_v45, %v975_v54  ;;  %v1078_v61 = vadd.f32 %v1728_v45, %v1007_v55  ;;  %v1008_v63 = vmul.f32 %v1822_v11, %v1723_v41 }
 0x118   :  { %v1872_v52 = vpop.f32.mrb[19].mxu0  ;;  %v1874_v53 = vpop.f32.mrb[19].mxu1  ;;  %v1044_v2 = vadd.f32 %v1728_v45, %v973_v56  ;;  %v1076_v3 = vadd.f32 %v1728_v45, %v1005_v57  ;;  %v974_v4 = vmul.f32 %v1723_v41, %v1826_v14  ;;  %v1006_v5 = vmul.f32 %v1723_v41, %v1828_v15 }
 0x119   :  { %vm1110_vm8 = vcmp.ge.f32.partialorder %v1046_v60, 0.0  ;;  %v1174_v8 = vmul.f32 0.01, %v1046_v60  ;;  %vm1142_vm9 = vcmp.ge.f32.partialorder %v1078_v61, 0.0  ;;  %v1206_v9 = vmul.f32 0.01, %v1078_v61 }
 0x11a   :  { %vm1108_vm10 = vcmp.ge.f32.partialorder %v1044_v2, 0.0  ;;  %v1172_v10 = vmul.f32 0.01, %v1044_v2  ;;  %vm1140_vm11 = vcmp.ge.f32.partialorder %v1076_v3, 0.0  ;;  %v1204_v11 = vmul.f32 0.01, %v1076_v3 }
 0x11b   :  { %v1238_v12 = vsel %vm1110_vm8, %v1046_v60, %v1174_v8  ;;  %v1270_v13 = vsel %vm1142_vm9, %v1078_v61, %v1206_v9  ;;  %v1047_v16 = vadd.f32 %v1728_v45, %v976_v62  ;;  %v1079_v14 = vadd.f32 %v1728_v45, %v1008_v63 }
 0x11c   :  { %1302 = vst [vmem:[%s2174_s4 + $0x70] sm:$0xff] %v1238_v12  ;;  %1334 = vst [vmem:[%s2174_s4 + $0x170] sm:$0xff] %v1270_v13  ;;  %v1236_v18 = vsel %vm1108_vm10, %v1044_v2, %v1172_v10  ;;  %v1268_v19 = vsel %vm1140_vm11, %v1076_v3, %v1204_v11  ;;  %v1045_v20 = vadd.f32 %v1728_v45, %v974_v4 }
 0x11d   :  { %v1890_v58 = vpop.f32.mrb[20].mxu0  ;;  %v1892_v59 = vpop.f32.mrb[20].mxu1  ;;  %v1077_v21 = vadd.f32 %v1728_v45, %v1006_v5  ;;  %1300 = vst [vmem:[%s2174_s4 + $0x60] sm:$0xff] %v1236_v18  ;;  %1332 = vst [vmem:[%s2174_s4 + $0x160] sm:$0xff] %v1268_v19  ;;  %vm1111_vm12 = vcmp.ge.f32.partialorder %v1047_v16, 0.0  ;;  %vm1143_vm13 = vcmp.ge.f32.partialorder %v1079_v14, 0.0  ;;  %v979_v36 = vmul.f32 %v1840_v32, %v1723_v41 }
 0x11e   :  { %v1900_v0 = vpop.f32.mrb[21].mxu0  ;;  %v1902_v1 = vpop.f32.mrb[21].mxu1  ;;  %v1175_v22 = vmul.f32 0.01, %v1047_v16  ;;  %v1207_v23 = vmul.f32 0.01, %v1079_v14  ;;  %v1011_v37 = vmul.f32 %v1842_v33, %v1723_v41  ;;  %v977_v43 = vmul.f32 %v1723_v41, %v1852_v38 }
 0x11f   :  { %v1910_v6 = vpop.f32.mrb[22].mxu0  ;;  %v1912_v7 = vpop.f32.mrb[22].mxu1  ;;  %vm1109_vm14 = vcmp.ge.f32.partialorder %v1045_v20, 0.0  ;;  %v1173_v24 = vmul.f32 0.01, %v1045_v20  ;;  %vm1141_vm15 = vcmp.ge.f32.partialorder %v1077_v21, 0.0  ;;  %v1009_v44 = vmul.f32 %v1723_v41, %v1854_v39 }
 0x120   :  { %v1916_v17 = vpop.f32.mrb[23].mxu0  ;;  %v1918_v15 = vpop.f32.mrb[23].mxu1  ;;  %v1205_v25 = vmul.f32 0.01, %v1077_v21  ;;  %v1239_v26 = vsel %vm1111_vm12, %v1047_v16, %v1175_v22  ;;  %v1271_v27 = vsel %vm1143_vm13, %v1079_v14, %v1207_v23  ;;  %v1050_v50 = vadd.f32 %v1728_v45, %v979_v36 }
 0x121   :  { %1303 = vst [vmem:[%s2174_s4 + $0x78] sm:$0xff] %v1239_v26  ;;  %1335 = vst [vmem:[%s2174_s4 + $0x178] sm:$0xff] %v1271_v27  ;;  %v1237_v30 = vsel %vm1109_vm14, %v1045_v20, %v1173_v24  ;;  %v1082_v32 = vadd.f32 %v1728_v45, %v1011_v37  ;;  %v980_v33 = vmul.f32 %v1862_v48, %v1723_v41 }
 0x122   :  { %v1269_v31 = vsel %vm1141_vm15, %v1077_v21, %v1205_v25  ;;  %1301 = vst [vmem:[%s2174_s4 + $0x68] sm:$0xff] %v1237_v30  ;;  %v1012_v51 = vmul.f32 %v1864_v49, %v1723_v41  ;;  %v1048_v54 = vadd.f32 %v1728_v45, %v977_v43  ;;  %v1080_v38 = vadd.f32 %v1728_v45, %v1009_v44 }
 0x123   :  { %1333 = vst [vmem:[%s2174_s4 + $0x168] sm:$0xff] %v1269_v31  ;;  %v978_v39 = vmul.f32 %v1723_v41, %v1872_v52  ;;  %v1010_v55 = vmul.f32 %v1723_v41, %v1874_v53  ;;  %vm1114_vm0 = vcmp.ge.f32.partialorder %v1050_v50, 0.0  ;;  %v1178_v56 = vmul.f32 0.01, %v1050_v50 }
 0x124   :  { %vm1146_vm1 = vcmp.ge.f32.partialorder %v1082_v32, 0.0  ;;  %v1210_v57 = vmul.f32 0.01, %v1082_v32  ;;  %vm1112_vm2 = vcmp.ge.f32.partialorder %v1048_v54, 0.0  ;;  %v1176_v60 = vmul.f32 0.01, %v1048_v54 }
 0x125   :  { %v1934_v28 = vpop.f32.mrb[24].mxu0  ;;  %v1936_v29 = vpop.f32.mrb[24].mxu1  ;;  %vm1144_vm3 = vcmp.ge.f32.partialorder %v1080_v38, 0.0  ;;  %v1208_v48 = vmul.f32 0.01, %v1080_v38  ;;  %v1242_v61 = vsel %vm1114_vm0, %v1050_v50, %v1178_v56  ;;  %v1051_v62 = vadd.f32 %v1728_v45, %v980_v33 }
 0x126   :  { %v1944_v34 = vpop.f32.mrb[25].mxu0  ;;  %v1946_v35 = vpop.f32.mrb[25].mxu1  ;;  %v1274_v49 = vsel %vm1146_vm1, %v1082_v32, %v1210_v57  ;;  %v1083_v63 = vadd.f32 %v1728_v45, %v1012_v51  ;;  %1306 = vst [vmem:[%s2174_s4 + $0x90] sm:$0xff] %v1242_v61  ;;  %v1240_v53 = vsel %vm1112_vm2, %v1048_v54, %v1176_v60  ;;  %v1049_v4 = vadd.f32 %v1728_v45, %v978_v39 }
 0x127   :  { %v1958_v40 = vpop.f32.mrb[26].mxu0  ;;  %v1960_v42 = vpop.f32.mrb[26].mxu1  ;;  %1338 = vst [vmem:[%s2174_s4 + $0x190] sm:$0xff] %v1274_v49  ;;  %v1272_v3 = vsel %vm1144_vm3, %v1080_v38, %v1208_v48  ;;  %v1081_v5 = vadd.f32 %v1728_v45, %v1010_v55  ;;  %1304 = vst [vmem:[%s2174_s4 + $0x80] sm:$0xff] %v1240_v53  ;;  %vm1115_vm4 = vcmp.ge.f32.partialorder %v1051_v62, 0.0  ;;  %v983_v24 = vmul.f32 %v1890_v58, %v1723_v41 }
 0x128   :  { %v1966_v46 = vpop.f32.mrb[27].mxu0  ;;  %v1968_v47 = vpop.f32.mrb[27].mxu1  ;;  %1336 = vst [vmem:[%s2174_s4 + $0x180] sm:$0xff] %v1272_v3  ;;  %v1179_v10 = vmul.f32 0.01, %v1051_v62  ;;  %vm1147_vm5 = vcmp.ge.f32.partialorder %v1083_v63, 0.0  ;;  %v1015_v25 = vmul.f32 %v1892_v59, %v1723_v41  ;;  %v981_v26 = vmul.f32 %v1723_v41, %v1900_v0 }
 0x129   :  { %v1211_v11 = vmul.f32 0.01, %v1083_v63  ;;  %vm1113_vm6 = vcmp.ge.f32.partialorder %v1049_v4, 0.0  ;;  %v1177_v12 = vmul.f32 0.01, %v1049_v4  ;;  %vm1145_vm7 = vcmp.ge.f32.partialorder %v1081_v5, 0.0 }
 0x12a   :  { %v1209_v13 = vmul.f32 0.01, %v1081_v5  ;;  %v1243_v16 = vsel %vm1115_vm4, %v1051_v62, %v1179_v10  ;;  %v1013_v27 = vmul.f32 %v1723_v41, %v1902_v1  ;;  %v1054_v30 = vadd.f32 %v1728_v45, %v983_v24 }
 0x12b   :  { %v1275_v14 = vsel %vm1147_vm5, %v1083_v63, %v1211_v11  ;;  %1307 = vst [vmem:[%s2174_s4 + $0x98] sm:$0xff] %v1243_v16  ;;  %v1241_v20 = vsel %vm1113_vm6, %v1049_v4, %v1177_v12  ;;  %v1086_v31 = vadd.f32 %v1728_v45, %v1015_v25  ;;  %v984_v36 = vmul.f32 %v1910_v6, %v1723_v41 }
 0x12c   :  { %1339 = vst [vmem:[%s2174_s4 + $0x198] sm:$0xff] %v1275_v14  ;;  %v1273_v21 = vsel %vm1145_vm7, %v1081_v5, %v1209_v13  ;;  %1305 = vst [vmem:[%s2174_s4 + $0x88] sm:$0xff] %v1241_v20  ;;  %v1016_v37 = vmul.f32 %v1912_v7, %v1723_v41  ;;  %v1052_v58 = vadd.f32 %v1728_v45, %v981_v26  ;;  %vm1118_vm8 = vcmp.ge.f32.partialorder %v1054_v30, 0.0 }
 0x12d   :  { %v1984_v2 = vpop.f32.mrb[28].mxu0  ;;  %v1986_v52 = vpop.f32.mrb[28].mxu1  ;;  %1337 = vst [vmem:[%s2174_s4 + $0x188] sm:$0xff] %v1273_v21  ;;  %v1084_v59 = vadd.f32 %v1728_v45, %v1013_v27  ;;  %v982_v0 = vmul.f32 %v1723_v41, %v1916_v17  ;;  %v1014_v1 = vmul.f32 %v1723_v41, %v1918_v15  ;;  %v1182_v43 = vmul.f32 0.01, %v1054_v30 }
 0x12e   :  { %v1996_v8 = vpop.f32.mrb[29].mxu0  ;;  %v1998_v9 = vpop.f32.mrb[29].mxu1  ;;  %vm1150_vm9 = vcmp.ge.f32.partialorder %v1086_v31, 0.0  ;;  %v1214_v44 = vmul.f32 0.01, %v1086_v31  ;;  %vm1116_vm10 = vcmp.ge.f32.partialorder %v1052_v58, 0.0  ;;  %v1055_v33 = vadd.f32 %v1728_v45, %v984_v36 }
 0x12f   :  { %v2006_v18 = vpop.f32.mrb[30].mxu0  ;;  %v2008_v19 = vpop.f32.mrb[30].mxu1  ;;  %v1180_v50 = vmul.f32 0.01, %v1052_v58  ;;  %vm1148_vm11 = vcmp.ge.f32.partialorder %v1084_v59, 0.0  ;;  %v1246_v32 = vsel %vm1118_vm8, %v1054_v30, %v1182_v43  ;;  %v1087_v51 = vadd.f32 %v1728_v45, %v1016_v37 }
 0x130   :  { %v2016_v22 = vpop.f32.mrb[31].mxu0  ;;  %v2018_v23 = vpop.f32.mrb[31].mxu1  ;;  %v1212_v6 = vmul.f32 0.01, %v1084_v59  ;;  %v1278_v7 = vsel %vm1150_vm9, %v1086_v31, %v1214_v44  ;;  %1310 = vst [vmem:[%s2174_s4 + $0xb0] sm:$0xff] %v1246_v32  ;;  %v1053_v54 = vadd.f32 %v1728_v45, %v982_v0  ;;  %v1085_v38 = vadd.f32 %v1728_v45, %v1014_v1 }
 0x131   :  { %1342 = vst [vmem:[%s2174_s4 + $0x1b0] sm:$0xff] %v1278_v7  ;;  %v1244_v17 = vsel %vm1116_vm10, %v1052_v58, %v1180_v50  ;;  %vm1119_vm12 = vcmp.ge.f32.partialorder %v1055_v33, 0.0  ;;  %v1183_v39 = vmul.f32 0.01, %v1055_v33  ;;  %vm1151_vm13 = vcmp.ge.f32.partialorder %v1087_v51, 0.0 }
 0x132   :  { %v1276_v15 = vsel %vm1148_vm11, %v1084_v59, %v1212_v6  ;;  %1308 = vst [vmem:[%s2174_s4 + $0xa0] sm:$0xff] %v1244_v17  ;;  %v1215_v55 = vmul.f32 0.01, %v1087_v51  ;;  %vm1117_vm14 = vcmp.ge.f32.partialorder %v1053_v54, 0.0  ;;  %v1181_v56 = vmul.f32 0.01, %v1053_v54 }
 0x133   :  { %1340 = vst [vmem:[%s2174_s4 + $0x1a0] sm:$0xff] %v1276_v15  ;;  %vm1149_vm15 = vcmp.ge.f32.partialorder %v1085_v38, 0.0  ;;  %v1213_v57 = vmul.f32 0.01, %v1085_v38  ;;  %v1247_v60 = vsel %vm1119_vm12, %v1055_v33, %v1183_v39  ;;  %v987_v62 = vmul.f32 %v1934_v28, %v1723_v41 }
 0x134   :  { %v1279_v48 = vsel %vm1151_vm13, %v1087_v51, %v1215_v55  ;;  %1311 = vst [vmem:[%s2174_s4 + $0xb8] sm:$0xff] %v1247_v60  ;;  %v1245_v61 = vsel %vm1117_vm14, %v1053_v54, %v1181_v56  ;;  %v1019_v63 = vmul.f32 %v1936_v29, %v1723_v41  ;;  %v985_v53 = vmul.f32 %v1723_v41, %v1944_v34 }
 0x135   :  { %1343 = vst [vmem:[%s2174_s4 + $0x1b8] sm:$0xff] %v1279_v48  ;;  %v1277_v49 = vsel %vm1149_vm15, %v1085_v38, %v1213_v57  ;;  %1309 = vst [vmem:[%s2174_s4 + $0xa8] sm:$0xff] %v1245_v61  ;;  %v1017_v3 = vmul.f32 %v1723_v41, %v1946_v35  ;;  %v1058_v4 = vadd.f32 %v1728_v45, %v987_v62 }
 0x136   :  { %1341 = vst [vmem:[%s2174_s4 + $0x1a8] sm:$0xff] %v1277_v49  ;;  %v1090_v5 = vadd.f32 %v1728_v45, %v1019_v63  ;;  %v988_v10 = vmul.f32 %v1958_v40, %v1723_v41  ;;  %v1020_v11 = vmul.f32 %v1960_v42, %v1723_v41  ;;  %v1056_v28 = vadd.f32 %v1728_v45, %v985_v53 }
 0x137   :  { %v1088_v29 = vadd.f32 %v1728_v45, %v1017_v3  ;;  %v986_v34 = vmul.f32 %v1723_v41, %v1966_v46  ;;  %v1018_v35 = vmul.f32 %v1723_v41, %v1968_v47  ;;  %vm1122_vm0 = vcmp.ge.f32.partialorder %v1058_v4, 0.0 }
 0x138   :  { %v1186_v12 = vmul.f32 0.01, %v1058_v4  ;;  %vm1154_vm1 = vcmp.ge.f32.partialorder %v1090_v5, 0.0  ;;  %v1218_v13 = vmul.f32 0.01, %v1090_v5  ;;  %vm1120_vm2 = vcmp.ge.f32.partialorder %v1056_v28, 0.0 }
 0x139   :  { %v1184_v16 = vmul.f32 0.01, %v1056_v28  ;;  %vm1152_vm3 = vcmp.ge.f32.partialorder %v1088_v29, 0.0  ;;  %v1216_v40 = vmul.f32 0.01, %v1088_v29  ;;  %v1059_v20 = vadd.f32 %v1728_v45, %v988_v10 }
 0x13a   :  { %v1250_v14 = vsel %vm1122_vm0, %v1058_v4, %v1186_v12  ;;  %v1282_v42 = vsel %vm1154_vm1, %v1090_v5, %v1218_v13  ;;  %v1091_v21 = vadd.f32 %v1728_v45, %v1020_v11  ;;  %v1057_v24 = vadd.f32 %v1728_v45, %v986_v34 }
 0x13b   :  { %1314 = vst [vmem:[%s2174_s4 + $0xd0] sm:$0xff] %v1250_v14  ;;  %1346 = vst [vmem:[%s2174_s4 + $0x1d0] sm:$0xff] %v1282_v42  ;;  %v1248_v46 = vsel %vm1120_vm2, %v1056_v28, %v1184_v16  ;;  %v1280_v47 = vsel %vm1152_vm3, %v1088_v29, %v1216_v40  ;;  %v1089_v25 = vadd.f32 %v1728_v45, %v1018_v35  ;;  %vm1123_vm4 = vcmp.ge.f32.partialorder %v1059_v20, 0.0 }
 0x13c   :  { %1312 = vst [vmem:[%s2174_s4 + $0xc0] sm:$0xff] %v1248_v46  ;;  %1344 = vst [vmem:[%s2174_s4 + $0x1c0] sm:$0xff] %v1280_v47  ;;  %v1187_v26 = vmul.f32 0.01, %v1059_v20  ;;  %vm1155_vm5 = vcmp.ge.f32.partialorder %v1091_v21, 0.0  ;;  %vm1121_vm6 = vcmp.ge.f32.partialorder %v1057_v24, 0.0  ;;  %v991_v0 = vmul.f32 %v1984_v2, %v1723_v41 }
 0x13d   :  { %v1219_v27 = vmul.f32 0.01, %v1091_v21  ;;  %v1185_v30 = vmul.f32 0.01, %v1057_v24  ;;  %vm1153_vm7 = vcmp.ge.f32.partialorder %v1089_v25, 0.0  ;;  %v1023_v1 = vmul.f32 %v1986_v52, %v1723_v41 }
 0x13e   :  { %v1217_v31 = vmul.f32 0.01, %v1089_v25  ;;  %v1251_v36 = vsel %vm1123_vm4, %v1059_v20, %v1187_v26  ;;  %v989_v43 = vmul.f32 %v1723_v41, %v1996_v8  ;;  %v1021_v44 = vmul.f32 %v1723_v41, %v1998_v9 }
 0x13f   :  { %v1283_v37 = vsel %vm1155_vm5, %v1091_v21, %v1219_v27  ;;  %1315 = vst [vmem:[%s2174_s4 + $0xd8] sm:$0xff] %v1251_v36  ;;  %v1249_v58 = vsel %vm1121_vm6, %v1057_v24, %v1185_v30  ;;  %v1062_v50 = vadd.f32 %v1728_v45, %v991_v0  ;;  %v1094_v6 = vadd.f32 %v1728_v45, %v1023_v1 }
 0x140   :  { %1347 = vst [vmem:[%s2174_s4 + $0x1d8] sm:$0xff] %v1283_v37  ;;  %v1281_v59 = vsel %vm1153_vm7, %v1089_v25, %v1217_v31  ;;  %1313 = vst [vmem:[%s2174_s4 + $0xc8] sm:$0xff] %v1249_v58  ;;  %v992_v32 = vmul.f32 %v2006_v18, %v1723_v41  ;;  %v1024_v7 = vmul.f32 %v2008_v19, %v1723_v41 }
 0x141   :  { %1345 = vst [vmem:[%s2174_s4 + $0x1c8] sm:$0xff] %v1281_v59  ;;  %v1060_v2 = vadd.f32 %v1728_v45, %v989_v43  ;;  %v1092_v52 = vadd.f32 %v1728_v45, %v1021_v44  ;;  %v990_v8 = vmul.f32 %v1723_v41, %v2016_v22  ;;  %v1022_v9 = vmul.f32 %v1723_v41, %v2018_v23 }
 0x142   :  { %vm1126_vm8 = vcmp.ge.f32.partialorder %v1062_v50, 0.0  ;;  %v1190_v33 = vmul.f32 0.01, %v1062_v50  ;;  %vm1158_vm9 = vcmp.ge.f32.partialorder %v1094_v6, 0.0  ;;  %v1222_v51 = vmul.f32 0.01, %v1094_v6 }
 0x143   :  { %vm1124_vm10 = vcmp.ge.f32.partialorder %v1060_v2, 0.0  ;;  %v1188_v17 = vmul.f32 0.01, %v1060_v2  ;;  %vm1156_vm11 = vcmp.ge.f32.partialorder %v1092_v52, 0.0  ;;  %v1220_v18 = vmul.f32 0.01, %v1092_v52 }
 0x144   :  { %v1254_v15 = vsel %vm1126_vm8, %v1062_v50, %v1190_v33  ;;  %v1286_v19 = vsel %vm1158_vm9, %v1094_v6, %v1222_v51  ;;  %v1063_v54 = vadd.f32 %v1728_v45, %v992_v32  ;;  %v1095_v38 = vadd.f32 %v1728_v45, %v1024_v7 }
 0x145   :  { %1318 = vst [vmem:[%s2174_s4 + $0xf0] sm:$0xff] %v1254_v15  ;;  %1350 = vst [vmem:[%s2174_s4 + $0x1f0] sm:$0xff] %v1286_v19  ;;  %v1252_v41 = vsel %vm1124_vm10, %v1060_v2, %v1188_v17  ;;  %v1284_v22 = vsel %vm1156_vm11, %v1092_v52, %v1220_v18  ;;  %v1061_v23 = vadd.f32 %v1728_v45, %v990_v8 }
 0x146   :  { %v1093_v39 = vadd.f32 %v1728_v45, %v1022_v9  ;;  %1316 = vst [vmem:[%s2174_s4 + $0xe0] sm:$0xff] %v1252_v41  ;;  %1348 = vst [vmem:[%s2174_s4 + $0x1e0] sm:$0xff] %v1284_v22  ;;  %vm1127_vm12 = vcmp.ge.f32.partialorder %v1063_v54, 0.0  ;;  %v1191_v55 = vmul.f32 0.01, %v1063_v54  ;;  %vm1159_vm13 = vcmp.ge.f32.partialorder %v1095_v38, 0.0 }
 0x147   :  { %v1223_v56 = vmul.f32 0.01, %v1095_v38  ;;  %vm1125_vm14 = vcmp.ge.f32.partialorder %v1061_v23, 0.0  ;;  %v1189_v57 = vmul.f32 0.01, %v1061_v23 }
 0x148   :  { %vm1157_vm15 = vcmp.ge.f32.partialorder %v1093_v39, 0.0  ;;  %v1221_v60 = vmul.f32 0.01, %v1093_v39  ;;  %v1255_v48 = vsel %vm1127_vm12, %v1063_v54, %v1191_v55 }
 0x149   :  { %v1287_v61 = vsel %vm1159_vm13, %v1095_v38, %v1223_v56  ;;  %1319 = vst [vmem:[%s2174_s4 + $0xf8] sm:$0xff] %v1255_v48  ;;  %v1253_v45 = vsel %vm1125_vm14, %v1061_v23, %v1189_v57 }
 0x14a   :  { %1351 = vst [vmem:[%s2174_s4 + $0x1f8] sm:$0xff] %v1287_v61  ;;  %v1285_v49 = vsel %vm1157_vm15, %v1093_v39, %v1221_v60  ;;  %1317 = vst [vmem:[%s2174_s4 + $0xe8] sm:$0xff] %v1253_v45 }
 0x14b   :  { %1349 = vst [vmem:[%s2174_s4 + $0x1e8] sm:$0xff] %v1285_v49 }

// kernel: discriminator_forward.10
= control target key start
LH: loop header
LB: loop body
LE: loop exit
PB: predicated region body
PF: predicated region fallthrough
CT: control target
= control target key end

     0   :  { %s1312_s15 = smov 0   ;;  %s1314_s16 = smov 0   ;;  %s1716_s0 = inlined_call_operand.vmem [shape: bf16[128,1024], index: 0, kind: input, shape index: {}]   ;;  %s1717_s1 = inlined_call_operand.vmem [shape: bf16[1024,128], index: 1, kind: input, shape index: {}]   ;;  %s1718_s2 = inlined_call_operand.vmem [shape: f32[1,128], index: 2, kind: input, shape index: {}]   ;;  %s1719_s3 = inlined_call_operand.vmem [shape: f32[1,128], index: 3, kind: input, shape index: {}]   ;;  %s1720_s4 = inlined_call_operand.vmem [shape: f32[128,128], index: 4, kind: output, shape index: {}]  }
   0x1   :  { %s1316_s17 = smov 0   ;;  %s1318_s18 = smov 0  }
   0x2   :  { %s1320_s19 = smov 0  }
   0x3 LB: > { %s26_s20 = sadd.s32 1, %s1280_s18  ;;  %p49_p1 = scmp.ne.s32.totalorder %s1272_s16, %s1268_s15  ;;  %s1284_s19 = sphi %s1320_s19, %s14_s19   ;;  %s1280_s18 = sphi %s1318_s18, %s1724_s18   ;;  %s1276_s17 = sphi %s1316_s17, %s1723_s17   ;;  %s1272_s16 = sphi %s1314_s16, %s1722_s16   ;;  %s1268_s15 = sphi %s1312_s15, %s1721_s15  }
   0x4   : > { %p27_p0 = scmp.ge.s32.totalorder %s26_s20, 4  ;;  %p50_p2 = scmp.eq.s32.totalorder %s1284_s19, 0 }
   0x5   : > { %s42_s22 = sadd.s32 1, %s1272_s16  ;;  %p1036_p5 = scmp.ge.s32.totalorder %s1284_s19, 4 }
   0x6   : > { %s1726_s20 = smov (%p27_p0, %s26_s20), 0  ;;  %p51_p3 = por %p50_p2, %p49_p1 }
   0x7   : > { %s38_s21 = ssub.s32 %s1280_s18, %s1726_s20  ;;  %195 = sbr.rel (%p1036_p5) target bundleno = 34 (0x22), region = 24 }
   0x8   : > { %p40_p4 = scmp.eq.s32.totalorder %s38_s21, 0 }
   0xa   : > { %s1347_s23 = scalar_select %p40_p4, %s1272_s16, %s42_s22  }
   0xe   : > { %198 = sbr.rel (!%p51_p3) target bundleno = 34 (0x22), region = 28  ;;  %s200_s24 = sand.u32 (%p51_p3), 1, %s1272_s16  }
   0xf   : > { %s1084_s25 = sshll.u32 (%p51_p3), %s1280_s18, 3  ;;  %s1037_s26 = sshll.u32 (%p51_p3), %s200_s24, 7 }
  0x10   : > { %s1355_s29 = scalar_lea.vmem (%p51_p3), %s1716_s0, %s1084_s25  ;;  %s202_s30 = scalar_lea.vmem (%p51_p3), [#allocation2], %s1037_s26 }
  0x11   : > { %v266_v0 = vld [vmem:[%s1355_s29] sm:$0xff] (%p51_p3) }
  0x12   : > { %v268_v1 = vld [vmem:[%s1355_s29 + $0x20] sm:$0xff] (%p51_p3)  ;;  %267 = vst [vmem:[%s202_s30] sm:$0xff] (%p51_p3), %v266_v0 }
  0x13   : > { %v270_v2 = vld [vmem:[%s1355_s29 + $0x40] sm:$0xff] (%p51_p3)  ;;  %269 = vst [vmem:[%s202_s30 + $0x8] sm:$0xff] (%p51_p3), %v268_v1 }
  0x14   : > { %271 = vst [vmem:[%s202_s30 + $0x10] sm:$0xff] (%p51_p3), %v270_v2  ;;  %v272_v3 = vld [vmem:[%s1355_s29 + $0x60] sm:$0xff] (%p51_p3) }
  0x15   : > { %v274_v4 = vld [vmem:[%s1355_s29 + $0x80] sm:$0xff]  ;;  %273 = vst [vmem:[%s202_s30 + $0x18] sm:$0xff] %v272_v3 }
  0x16   : > { %v276_v5 = vld [vmem:[%s1355_s29 + $0xa0] sm:$0xff]  ;;  %275 = vst [vmem:[%s202_s30 + $0x20] sm:$0xff] %v274_v4 }
  0x17   : > { %277 = vst [vmem:[%s202_s30 + $0x28] sm:$0xff] %v276_v5  ;;  %v278_v6 = vld [vmem:[%s1355_s29 + $0xc0] sm:$0xff] }
  0x18   : > { %v280_v7 = vld [vmem:[%s1355_s29 + $0xe0] sm:$0xff]  ;;  %279 = vst [vmem:[%s202_s30 + $0x30] sm:$0xff] %v278_v6 }
  0x19   : > { %v282_v8 = vld [vmem:[%s1355_s29 + $0x100] sm:$0xff]  ;;  %281 = vst [vmem:[%s202_s30 + $0x38] sm:$0xff] %v280_v7 }
  0x1a   : > { %283 = vst [vmem:[%s202_s30 + $0x40] sm:$0xff] %v282_v8  ;;  %v284_v9 = vld [vmem:[%s1355_s29 + $0x120] sm:$0xff] }
  0x1b   : > { %v286_v10 = vld [vmem:[%s1355_s29 + $0x140] sm:$0xff]  ;;  %285 = vst [vmem:[%s202_s30 + $0x48] sm:$0xff] %v284_v9 }
  0x1c   : > { %v288_v11 = vld [vmem:[%s1355_s29 + $0x160] sm:$0xff]  ;;  %287 = vst [vmem:[%s202_s30 + $0x50] sm:$0xff] %v286_v10 }
  0x1d   : > { %289 = vst [vmem:[%s202_s30 + $0x58] sm:$0xff] %v288_v11  ;;  %v290_v12 = vld [vmem:[%s1355_s29 + $0x180] sm:$0xff] }
  0x1e   : > { %v292_v13 = vld [vmem:[%s1355_s29 + $0x1a0] sm:$0xff]  ;;  %291 = vst [vmem:[%s202_s30 + $0x60] sm:$0xff] %v290_v12 }
  0x1f   : > { %v294_v14 = vld [vmem:[%s1355_s29 + $0x1c0] sm:$0xff]  ;;  %293 = vst [vmem:[%s202_s30 + $0x68] sm:$0xff] %v292_v13 }
  0x20   : > { %295 = vst [vmem:[%s202_s30 + $0x70] sm:$0xff] %v294_v14  ;;  %v296_v15 = vld [vmem:[%s1355_s29 + $0x1e0] sm:$0xff] }
  0x21   : > { %297 = vst [vmem:[%s202_s30 + $0x78] sm:$0xff] %v296_v15 }
  0x22 PF: > { %p1040_p6 = scmp.ge.s32.totalorder %s1284_s19, 1  ;;  %p314_p7 = scmp.lt.s32.totalorder %s1284_s19, 5 }
  0x24   : > { %p315_p8 = pnand %p1040_p6, %p314_p7 }
  0x25   : > { %s321_s5 = sand.u32 (!%p315_p8), 1, %s1268_s15   ;;  %s1042_s6 = sshll.u32 (!%p315_p8), %s1276_s17, 5 }
  0x26   : > { %318 = sbr.rel (%p315_p8) target bundleno = 348 (0x15c), region = 70  ;;  %s1041_s7 = sshll.u32 (!%p315_p8), %s321_s5, 7 }
  0x27   : > { %p366_p9 = scmp.lt.s32.totalorder (!%p315_p8), %s1042_s6, 127  ;;  %s1382_s12 = scalar_lea.vmem (!%p315_p8), [#allocation2], %s1041_s7 }
  0x28   : > { %p1044_p10 = scmp.ne.s32.totalorder (!%p315_p8), %s1276_s17, 0 }
  0x2d   : > { %s1728_s6 = smov (!%p366_p9, %s1042_s6), 127  ;;  %393 = sbr.rel (%p1044_p10) target bundleno = 55 (0x37), region = 78 }
  0x2e   : > { %s1043_s8 = sshll.u32 %s1728_s6, 2  ;;  %v1286_v16 = vmov (!%p1044_p10), 0.0  }
  0x2f   : > { %s1380_s11 = scalar_lea.vmem %s1717_s1, %s1043_s8  ;;  %394 = vst [vmem:[%s1720_s4] sm:$0xff] (!%p1044_p10), %v1286_v16  ;;  %395 = vst [vmem:[%s1720_s4 + $0x8] sm:$0xff] (!%p1044_p10), %v1286_v16 }
  0x30   : > { %396 = vst [vmem:[%s1720_s4 + $0x10] sm:$0xff] (!%p1044_p10), %v1286_v16  ;;  %397 = vst [vmem:[%s1720_s4 + $0x18] sm:$0xff] (!%p1044_p10), %v1286_v16 }
  0x31   : > { %398 = vst [vmem:[%s1720_s4 + $0x20] sm:$0xff] (!%p1044_p10), %v1286_v16  ;;  %399 = vst [vmem:[%s1720_s4 + $0x28] sm:$0xff] (!%p1044_p10), %v1286_v16 }
  0x32   : > { %400 = vst [vmem:[%s1720_s4 + $0x30] sm:$0xff] (!%p1044_p10), %v1286_v16  ;;  %401 = vst [vmem:[%s1720_s4 + $0x38] sm:$0xff] (!%p1044_p10), %v1286_v16 }
  0x33   : > { %402 = vst [vmem:[%s1720_s4 + $0x40] sm:$0xff] (!%p1044_p10), %v1286_v16  ;;  %403 = vst [vmem:[%s1720_s4 + $0x48] sm:$0xff] (!%p1044_p10), %v1286_v16 }
  0x34   : > { %404 = vst [vmem:[%s1720_s4 + $0x50] sm:$0xff] %v1286_v16  ;;  %405 = vst [vmem:[%s1720_s4 + $0x58] sm:$0xff] %v1286_v16 }
  0x35   : > { %406 = vst [vmem:[%s1720_s4 + $0x60] sm:$0xff] %v1286_v16  ;;  %407 = vst [vmem:[%s1720_s4 + $0x68] sm:$0xff] %v1286_v16 }
  0x36   : > { %408 = vst [vmem:[%s1720_s4 + $0x70] sm:$0xff] %v1286_v16  ;;  %409 = vst [vmem:[%s1720_s4 + $0x78] sm:$0xff] %v1286_v16 }
  0x37 PF: > { %v1206_v17 = vld [vmem:[%s1380_s11 + $0x40] sm:$0xff]   ;;  %v1208_v19 = vld [vmem:[%s1380_s11 + $0x48] sm:$0xff]   ;;  %v1210_v21 = vld [vmem:[%s1380_s11 + $0x50] sm:$0xff]   ;;  %p1077_p11 = scmp.ne.s32.totalorder %s1276_s17, 3 }
  0x38   : > { %v1207_v18 = vld [vmem:[%s1380_s11] sm:$0xff]   ;;  %1085 = vmatprep.subr.bf16.mxu0 %v1206_v17  ;;  %1149 = vmatprep.subr.bf16.mxu1 %v1206_v17  ;;  %v1209_v20 = vld [vmem:[%s1380_s11 + $0x8] sm:$0xff]   ;;  %v1211_v22 = vld [vmem:[%s1380_s11 + $0x10] sm:$0xff]  }
  0x39   : > { %1086 = vmatpush3.bf16.msra.mxu0 %v1207_v18  ;;  %1157 = vmatpush3.bf16.msra.mxu1 %v1207_v18  ;;  %v1212_v23 = vld [vmem:[%s1380_s11 + $0x58] sm:$0xff]   ;;  %v1214_v25 = vld [vmem:[%s1380_s11 + $0x60] sm:$0xff]   ;;  %v1216_v27 = vld [vmem:[%s1380_s11 + $0x68] sm:$0xff]  }
  0x3a   : > { %1087 = vmatprep.subr.bf16.mxu0 %v1208_v19  ;;  %1150 = vmatprep.subr.bf16.mxu1 %v1208_v19  ;;  %v1213_v24 = vld [vmem:[%s1380_s11 + $0x18] sm:$0xff]   ;;  %v1215_v26 = vld [vmem:[%s1380_s11 + $0x20] sm:$0xff]   ;;  %v1217_v30 = vld [vmem:[%s1380_s11 + $0x28] sm:$0xff]  }
  0x3b   : > { %v1224_v28 = vld [vmem:[%s1382_s12 + $0x4] ss:$8 sps:$4 sm:$0xff]   ;;  %v1218_v31 = vld [vmem:[%s1380_s11 + $0x70] sm:$0xff]   ;;  %v1220_v33 = vld [vmem:[%s1380_s11 + $0x78] sm:$0xff]  }
  0x3c   : > { %v1227_v29 = vld [vmem:[%s1382_s12 + $0x44] ss:$8 sps:$4 sm:$0xff]   ;;  %682 = vmatprep.mubr.bf16.mxu0 %v1224_v28  ;;  %v1219_v32 = vld [vmem:[%s1380_s11 + $0x30] sm:$0xff]   ;;  %v1221_v34 = vld [vmem:[%s1380_s11 + $0x38] sm:$0xff]  }
  0x3d   : > { %1088 = vmatpush3.bf16.msra.mxu0 %v1209_v20  ;;  %1158 = vmatpush3.bf16.msra.mxu1 %v1209_v20  ;;  %v1222_v35 = vld [vmem:[%s1382_s12] ss:$8 sps:$4 sm:$0xff]   ;;  %v1228_v37 = vld [vmem:[%s1382_s12 + $0x14] ss:$8 sps:$4 sm:$0xff]   ;;  %v1232_v39 = vld [vmem:[%s1382_s12 + $0x10] ss:$8 sps:$4 sm:$0xff]  }
  0x3e   : > { %1089 = vmatprep.subr.bf16.mxu0 %v1210_v21  ;;  %1151 = vmatprep.subr.bf16.mxu1 %v1210_v21  ;;  %v1225_v36 = vld [vmem:[%s1382_s12 + $0x40] ss:$8 sps:$4 sm:$0xff]   ;;  %v1230_v38 = vld [vmem:[%s1382_s12 + $0x54] ss:$8 sps:$4 sm:$0xff]   ;;  %v1233_v40 = vld [vmem:[%s1382_s12 + $0x50] ss:$8 sps:$4 sm:$0xff]  }
  0x3f   : > { %714 = vmatprep.mubr.bf16.mxu1 %v1227_v29  ;;  %v1234_v41 = vld [vmem:[%s1382_s12 + $0x24] ss:$8 sps:$4 sm:$0xff]   ;;  %v1238_v43 = vld [vmem:[%s1382_s12 + $0x20] ss:$8 sps:$4 sm:$0xff]   ;;  %v1240_v45 = vld [vmem:[%s1382_s12 + $0x34] ss:$8 sps:$4 sm:$0xff]  }
  0x40   : > { %v1236_v42 = vld [vmem:[%s1382_s12 + $0x64] ss:$8 sps:$4 sm:$0xff]   ;;  %v1239_v44 = vld [vmem:[%s1382_s12 + $0x60] ss:$8 sps:$4 sm:$0xff]   ;;  %v1242_v46 = vld [vmem:[%s1382_s12 + $0x74] ss:$8 sps:$4 sm:$0xff]  }
  0x41   : > { %1090 = vmatpush3.bf16.msra.mxu0 %v1211_v22  ;;  %1159 = vmatpush3.bf16.msra.mxu1 %v1211_v22  ;;  %v1244_v47 = vld [vmem:[%s1382_s12 + $0x30] ss:$8 sps:$4 sm:$0xff]   ;;  %v410_v51 = vld [vmem:[%s1720_s4] sm:$0xff]  ;;  %v411_v59 = vld [vmem:[%s1720_s4 + $0x8] sm:$0xff] }
  0x42   : > { %1091 = vmatprep.subr.bf16.mxu0 %v1212_v23  ;;  %1152 = vmatprep.subr.bf16.mxu1 %v1212_v23  ;;  %v1245_v48 = vld [vmem:[%s1382_s12 + $0x70] ss:$8 sps:$4 sm:$0xff]   ;;  %v418_v53 = vld [vmem:[%s1720_s4 + $0x40] sm:$0xff]  ;;  %v419_v61 = vld [vmem:[%s1720_s4 + $0x48] sm:$0xff] }
  0x43   : > { %v412_v7 = vld [vmem:[%s1720_s4 + $0x10] sm:$0xff]  ;;  %v413_v15 = vld [vmem:[%s1720_s4 + $0x18] sm:$0xff]  ;;  %v422_v29 = vld [vmem:[%s1720_s4 + $0x60] sm:$0xff] }
  0x44   : > { %v420_v9 = vld [vmem:[%s1720_s4 + $0x50] sm:$0xff]  ;;  %v421_v17 = vld [vmem:[%s1720_s4 + $0x58] sm:$0xff] }
  0x45   : > { %1092 = vmatpush3.bf16.msra.mxu0 %v1213_v24  ;;  %1160 = vmatpush3.bf16.msra.mxu1 %v1213_v24 }
  0x46   : > { %1093 = vmatprep.subr.bf16.mxu0 %v1214_v25  ;;  %1153 = vmatprep.subr.bf16.mxu1 %v1214_v25 }
  0x49   : > { %1094 = vmatpush3.bf16.msra.mxu0 %v1215_v26  ;;  %1161 = vmatpush3.bf16.msra.mxu1 %v1215_v26 }
  0x4a   : > { %1095 = vmatprep.subr.bf16.mxu0 %v1216_v27  ;;  %1154 = vmatprep.subr.bf16.mxu1 %v1216_v27  ;;  %v414_v27 = vld [vmem:[%s1720_s4 + $0x20] sm:$0xff] }
  0x4d   : > { %1096 = vmatpush3.bf16.msra.mxu0 %v1217_v30  ;;  %1162 = vmatpush3.bf16.msra.mxu1 %v1217_v30 }
  0x4e   : > { %1097 = vmatprep.subr.bf16.mxu0 %v1218_v31  ;;  %1155 = vmatprep.subr.bf16.mxu1 %v1218_v31 }
  0x51   : > { %1098 = vmatpush3.bf16.msra.mxu0 %v1219_v32  ;;  %1163 = vmatpush3.bf16.msra.mxu1 %v1219_v32 }
  0x52   : > { %1099 = vmatprep.subr.bf16.mxu0 %v1220_v33  ;;  %1156 = vmatprep.subr.bf16.mxu1 %v1220_v33 }
  0x55   : > { %1100 = vmatpush3.bf16.msra.mxu0 %v1221_v34  ;;  %1164 = vmatpush3.bf16.msra.mxu1 %v1221_v34 }
  0x58   : > { %683 = vmatmul.mubr.bf16.vlgmr.msra.gmra.mrb[0].mxu0 %v1222_v35  ;;  %715 = vmatmul.mubr.bf16.vlgmr.msra.gmra.mrb[0].mxu1 %v1225_v36  ;;  %v415_v35 = vld [vmem:[%s1720_s4 + $0x28] sm:$0xff] }
  0x59   : > { %690 = vmatprep.mubr.bf16.mxu0 %v1228_v37  ;;  %722 = vmatprep.mubr.bf16.mxu1 %v1230_v38  ;;  %v423_v37 = vld [vmem:[%s1720_s4 + $0x68] sm:$0xff] }
  0x60   : > { %691 = vmatmul.mubr.bf16.gmra.mrb[4].mxu0 %v1232_v39  ;;  %723 = vmatmul.mubr.bf16.gmra.mrb[4].mxu1 %v1233_v40 }
  0x61   : > { %698 = vmatprep.mubr.bf16.mxu0 %v1234_v41  ;;  %730 = vmatprep.mubr.bf16.mxu1 %v1236_v42 }
  0x68   : > { %699 = vmatmul.mubr.bf16.gmra.mrb[8].mxu0 %v1238_v43  ;;  %731 = vmatmul.mubr.bf16.gmra.mrb[8].mxu1 %v1239_v44 }
  0x69   : > { %706 = vmatprep.mubr.bf16.mxu0 %v1240_v45  ;;  %738 = vmatprep.mubr.bf16.mxu1 %v1242_v46 }
  0x70   : > { %707 = vmatmul.mubr.bf16.gmra.mrb[12].mxu0 %v1244_v47  ;;  %739 = vmatmul.mubr.bf16.gmra.mrb[12].mxu1 %v1245_v48  ;;  %v416_v47 = vld [vmem:[%s1720_s4 + $0x30] sm:$0xff] }
 0x12b   : > { %v1101_v49 = vpop.f32.mrb[0].mxu0  ;;  %v1125_v50 = vpop.f32.mrb[0].mxu1 }
 0x12c   : > { %v1102_v52 = vpop.f32.mrb[1].mxu0  ;;  %v1126_v54 = vpop.f32.mrb[1].mxu1 }
 0x12d   : > { %v1103_v55 = vadd.f32 %v1102_v52, %v1101_v49  ;;  %v1127_v56 = vadd.f32 %v1126_v54, %v1125_v50  ;;  %v1104_v57 = vpop.f32.mrb[2].mxu0  ;;  %v1128_v58 = vpop.f32.mrb[2].mxu1  ;;  %v424_v49 = vld [vmem:[%s1720_s4 + $0x70] sm:$0xff] }
 0x12e   : > { %v1105_v60 = vpop.f32.mrb[3].mxu0  ;;  %v1129_v62 = vpop.f32.mrb[3].mxu1 }
 0x12f   : > { %v747_v63 = vadd.f32 %v1103_v55, %v410_v51  ;;  %v755_v0 = vadd.f32 %v1127_v56, %v418_v53  ;;  %v1106_v1 = vadd.f32 %v1105_v60, %v1104_v57  ;;  %v1130_v2 = vadd.f32 %v1129_v62, %v1128_v58  ;;  %v417_v55 = vld [vmem:[%s1720_s4 + $0x38] sm:$0xff] }
 0x130   : > { %v425_v57 = vld [vmem:[%s1720_s4 + $0x78] sm:$0xff] }
 0x131   : > { %763 = vst [vmem:[%s1720_s4] sm:$0xff] %v747_v63  ;;  %771 = vst [vmem:[%s1720_s4 + $0x40] sm:$0xff] %v755_v0  ;;  %v748_v3 = vadd.f32 %v1106_v1, %v411_v59  ;;  %v756_v4 = vadd.f32 %v1130_v2, %v419_v61  ;;  %v1568_v2 = vld [vmem:[%s1718_s2] ss:$0 sm:$0xff] (!%p1077_p11) }
 0x133   : > { %764 = vst [vmem:[%s1720_s4 + $0x8] sm:$0xff] %v748_v3  ;;  %772 = vst [vmem:[%s1720_s4 + $0x48] sm:$0xff] %v756_v4  ;;  %v1107_v5 = vpop.f32.mrb[4].mxu0  ;;  %v1131_v6 = vpop.f32.mrb[4].mxu1  ;;  %v1573_v3 = vld [vmem:[%s1719_s3] ss:$0 sm:$0xff] (!%p1077_p11) }
 0x134   : > { %v1108_v8 = vpop.f32.mrb[5].mxu0  ;;  %v1132_v10 = vpop.f32.mrb[5].mxu1 }
 0x135   : > { %v1109_v11 = vadd.f32 %v1108_v8, %v1107_v5  ;;  %v1133_v12 = vadd.f32 %v1132_v10, %v1131_v6  ;;  %v1110_v13 = vpop.f32.mrb[6].mxu0  ;;  %v1134_v14 = vpop.f32.mrb[6].mxu1 }
 0x136   : > { %v1111_v16 = vpop.f32.mrb[7].mxu0  ;;  %v1135_v18 = vpop.f32.mrb[7].mxu1 }
 0x137   : > { %v749_v19 = vadd.f32 %v1109_v11, %v412_v7  ;;  %v757_v20 = vadd.f32 %v1133_v12, %v420_v9  ;;  %v1112_v21 = vadd.f32 %v1111_v16, %v1110_v13  ;;  %v1136_v22 = vadd.f32 %v1135_v18, %v1134_v14 }
 0x138   : > { %v783_v1 = vld [vmem:[%s1720_s4] sm:$0xff] (!%p1077_p11) }
 0x139   : > { %765 = vst [vmem:[%s1720_s4 + $0x10] sm:$0xff] %v749_v19  ;;  %773 = vst [vmem:[%s1720_s4 + $0x50] sm:$0xff] %v757_v20  ;;  %v750_v23 = vadd.f32 %v1112_v21, %v413_v15  ;;  %v758_v24 = vadd.f32 %v1136_v22, %v421_v17  ;;  %v806_v4 = vmul.f32 (!%p1077_p11), %v1568_v2, %v783_v1 }
 0x13a   : > { %v784_v5 = vld [vmem:[%s1720_s4 + $0x8] sm:$0xff] (!%p1077_p11) }
 0x13b   : > { %766 = vst [vmem:[%s1720_s4 + $0x18] sm:$0xff] %v750_v23  ;;  %774 = vst [vmem:[%s1720_s4 + $0x58] sm:$0xff] %v758_v24  ;;  %v1113_v25 = vpop.f32.mrb[8].mxu0  ;;  %v1137_v26 = vpop.f32.mrb[8].mxu1  ;;  %v807_v8 = vmul.f32 (!%p1077_p11), %v1568_v2, %v784_v5  ;;  %v829_v14 = vadd.f32 (!%p1077_p11), %v1573_v3, %v806_v4 }
 0x13c   : > { %v1114_v28 = vpop.f32.mrb[9].mxu0  ;;  %v1138_v30 = vpop.f32.mrb[9].mxu1 }
 0x13d   : > { %v1115_v31 = vadd.f32 %v1114_v28, %v1113_v25  ;;  %v1139_v32 = vadd.f32 %v1138_v30, %v1137_v26  ;;  %v1116_v33 = vpop.f32.mrb[10].mxu0  ;;  %v1140_v34 = vpop.f32.mrb[10].mxu1  ;;  %v830_v19 = vadd.f32 (!%p1077_p11), %v1573_v3, %v807_v8  ;;  %vm845_vm0 = vcmp.ge.f32.partialorder (!%p1077_p11), %v829_v14, 0.0  ;;  %v791_v26 = vld [vmem:[%s1720_s4 + $0x40] sm:$0xff] (!%p1077_p11) }
 0x13e   : > { %v1117_v36 = vpop.f32.mrb[11].mxu0  ;;  %v1141_v38 = vpop.f32.mrb[11].mxu1  ;;  %v861_v23 = vmul.f32 (!%p1077_p11), 0.2, %v829_v14 }
 0x13f   : > { %v751_v39 = vadd.f32 %v1115_v31, %v414_v27  ;;  %v759_v40 = vadd.f32 %v1139_v32, %v422_v29  ;;  %v1118_v41 = vadd.f32 %v1117_v36, %v1116_v33  ;;  %v1142_v42 = vadd.f32 %v1141_v38, %v1140_v34  ;;  %v792_v31 = vld [vmem:[%s1720_s4 + $0x48] sm:$0xff] (!%p1077_p11) }
 0x140   : > { %v785_v6 = vld [vmem:[%s1720_s4 + $0x10] sm:$0xff] (!%p1077_p11)  ;;  %vm846_vm1 = vcmp.ge.f32.partialorder (!%p1077_p11), %v830_v19, 0.0  ;;  %v862_v27 = vmul.f32 (!%p1077_p11), 0.2, %v830_v19  ;;  %v877_v29 = vsel (!%p1077_p11), %vm845_vm0, %v829_v14, %v861_v23 }
 0x141   : > { %767 = vst [vmem:[%s1720_s4 + $0x20] sm:$0xff] %v751_v39  ;;  %775 = vst [vmem:[%s1720_s4 + $0x60] sm:$0xff] %v759_v40  ;;  %v752_v43 = vadd.f32 %v1118_v41, %v415_v35  ;;  %v760_v44 = vadd.f32 %v1142_v42, %v423_v37  ;;  %v808_v9 = vmul.f32 (!%p1077_p11), %v1568_v2, %v785_v6  ;;  %v793_v32 = vld [vmem:[%s1720_s4 + $0x50] sm:$0xff] (!%p1077_p11) }
 0x142   : > { %v786_v7 = vld [vmem:[%s1720_s4 + $0x18] sm:$0xff] (!%p1077_p11)  ;;  %893 = vst [vmem:[%s1720_s4] sm:$0xff] (!%p1077_p11), %v877_v29  ;;  %v878_v33 = vsel (!%p1077_p11), %vm846_vm1, %v830_v19, %v862_v27  ;;  %v814_v41 = vmul.f32 (!%p1077_p11), %v1568_v2, %v791_v26  ;;  %v815_v42 = vmul.f32 (!%p1077_p11), %v1568_v2, %v792_v31 }
 0x143   : > { %768 = vst [vmem:[%s1720_s4 + $0x28] sm:$0xff] %v752_v43  ;;  %776 = vst [vmem:[%s1720_s4 + $0x68] sm:$0xff] %v760_v44  ;;  %v1119_v45 = vpop.f32.mrb[12].mxu0  ;;  %v1143_v46 = vpop.f32.mrb[12].mxu1  ;;  %v809_v10 = vmul.f32 (!%p1077_p11), %v1568_v2, %v786_v7  ;;  %v831_v20 = vadd.f32 (!%p1077_p11), %v1573_v3, %v808_v9  ;;  %v816_v43 = vmul.f32 (!%p1077_p11), %v1568_v2, %v793_v32  ;;  %v794_v44 = vld [vmem:[%s1720_s4 + $0x58] sm:$0xff] (!%p1077_p11) }
 0x144   : > { %v1120_v48 = vpop.f32.mrb[13].mxu0  ;;  %v1144_v50 = vpop.f32.mrb[13].mxu1  ;;  %894 = vst [vmem:[%s1720_s4 + $0x8] sm:$0xff] (!%p1077_p11), %v878_v33 }
 0x145   : > { %v1121_v51 = vadd.f32 %v1120_v48, %v1119_v45  ;;  %v1145_v52 = vadd.f32 %v1144_v50, %v1143_v46  ;;  %v1122_v53 = vpop.f32.mrb[14].mxu0  ;;  %v1146_v54 = vpop.f32.mrb[14].mxu1  ;;  %782 = sbr.rel (%p1077_p11) target bundleno = 348 (0x15c), region = 82  ;;  %v832_v21 = vadd.f32 (!%p1077_p11), %v1573_v3, %v809_v10  ;;  %vm847_vm2 = vcmp.ge.f32.partialorder (!%p1077_p11), %v831_v20, 0.0 }
 0x146   : > { %v1123_v56 = vpop.f32.mrb[15].mxu0  ;;  %v1147_v58 = vpop.f32.mrb[15].mxu1  ;;  %v863_v28 = vmul.f32 (!%p1077_p11), 0.2, %v831_v20  ;;  %v837_v50 = vadd.f32 (!%p1077_p11), %v1573_v3, %v814_v41 }
 0x147   : > { %v753_v59 = vadd.f32 %v1121_v51, %v416_v47  ;;  %v761_v60 = vadd.f32 %v1145_v52, %v424_v49  ;;  %v1124_v61 = vadd.f32 %v1123_v56, %v1122_v53  ;;  %v1148_v62 = vadd.f32 %v1147_v58, %v1146_v54 }
 0x148   : > { %v787_v11 = vld [vmem:[%s1720_s4 + $0x20] sm:$0xff] (!%p1077_p11)  ;;  %vm848_vm3 = vcmp.ge.f32.partialorder (!%p1077_p11), %v832_v21, 0.0  ;;  %v864_v30 = vmul.f32 (!%p1077_p11), 0.2, %v832_v21  ;;  %v879_v34 = vsel (!%p1077_p11), %vm847_vm2, %v831_v20, %v863_v28  ;;  %v838_v51 = vadd.f32 (!%p1077_p11), %v1573_v3, %v815_v42 }
 0x149   : > { %769 = vst [vmem:[%s1720_s4 + $0x30] sm:$0xff] %v753_v59  ;;  %777 = vst [vmem:[%s1720_s4 + $0x70] sm:$0xff] %v761_v60  ;;  %v754_v63 = vadd.f32 %v1124_v61, %v417_v55  ;;  %v762_v0 = vadd.f32 %v1148_v62, %v425_v57  ;;  %v810_v15 = vmul.f32 (!%p1077_p11), %v1568_v2, %v787_v11  ;;  %v795_v45 = vld [vmem:[%s1720_s4 + $0x60] sm:$0xff] (!%p1077_p11)  ;;  %vm853_vm8 = vcmp.ge.f32.partialorder (!%p1077_p11), %v837_v50, 0.0 }
 0x14a   : > { %v788_v12 = vld [vmem:[%s1720_s4 + $0x28] sm:$0xff] (!%p1077_p11)  ;;  %895 = vst [vmem:[%s1720_s4 + $0x10] sm:$0xff] (!%p1077_p11), %v879_v34  ;;  %v880_v36 = vsel (!%p1077_p11), %vm848_vm3, %v832_v21, %v864_v30  ;;  %v839_v52 = vadd.f32 (!%p1077_p11), %v1573_v3, %v816_v43  ;;  %v817_v54 = vmul.f32 (!%p1077_p11), %v1568_v2, %v794_v44  ;;  %v818_v55 = vmul.f32 (!%p1077_p11), %v1568_v2, %v795_v45 }
 0x14b   : > { %770 = vst [vmem:[%s1720_s4 + $0x38] sm:$0xff] %v754_v63  ;;  %778 = vst [vmem:[%s1720_s4 + $0x78] sm:$0xff] %v762_v0  ;;  %v811_v16 = vmul.f32 (!%p1077_p11), %v1568_v2, %v788_v12  ;;  %v833_v24 = vadd.f32 (!%p1077_p11), %v1573_v3, %v810_v15  ;;  %v796_v46 = vld [vmem:[%s1720_s4 + $0x68] sm:$0xff] (!%p1077_p11)  ;;  %v869_v59 = vmul.f32 (!%p1077_p11), 0.2, %v837_v50  ;;  %vm854_vm9 = vcmp.ge.f32.partialorder (!%p1077_p11), %v838_v51, 0.0 }
 0x14c   : > { %896 = vst [vmem:[%s1720_s4 + $0x18] sm:$0xff] %v880_v36  ;;  %v819_v56 = vmul.f32 %v1568_v2, %v796_v46  ;;  %v870_v60 = vmul.f32 0.2, %v838_v51  ;;  %vm855_vm10 = vcmp.ge.f32.partialorder %v839_v52, 0.0  ;;  %v871_v61 = vmul.f32 0.2, %v839_v52 }
 0x14d   : > { %v834_v25 = vadd.f32 %v1573_v3, %v811_v16  ;;  %vm849_vm4 = vcmp.ge.f32.partialorder %v833_v24, 0.0  ;;  %v865_v35 = vmul.f32 0.2, %v833_v24  ;;  %v840_v62 = vadd.f32 %v1573_v3, %v817_v54 }
 0x14e   : > { %v885_v63 = vsel %vm853_vm8, %v837_v50, %v869_v59  ;;  %v841_v0 = vadd.f32 %v1573_v3, %v818_v55  ;;  %v842_v1 = vadd.f32 %v1573_v3, %v819_v56  ;;  %v886_v6 = vsel %vm854_vm9, %v838_v51, %v870_v60 }
 0x14f   : > { %vm850_vm5 = vcmp.ge.f32.partialorder %v834_v25, 0.0  ;;  %v866_v37 = vmul.f32 0.2, %v834_v25  ;;  %v881_v40 = vsel %vm849_vm4, %v833_v24, %v865_v35  ;;  %901 = vst [vmem:[%s1720_s4 + $0x40] sm:$0xff] %v885_v63  ;;  %v887_v7 = vsel %vm855_vm10, %v839_v52, %v871_v61  ;;  %902 = vst [vmem:[%s1720_s4 + $0x48] sm:$0xff] %v886_v6 }
 0x150   : > { %v789_v13 = vld [vmem:[%s1720_s4 + $0x30] sm:$0xff]  ;;  %897 = vst [vmem:[%s1720_s4 + $0x20] sm:$0xff] %v881_v40  ;;  %vm856_vm11 = vcmp.ge.f32.partialorder %v840_v62, 0.0  ;;  %v872_v8 = vmul.f32 0.2, %v840_v62  ;;  %903 = vst [vmem:[%s1720_s4 + $0x50] sm:$0xff] %v887_v7 }
 0x151   : > { %v812_v17 = vmul.f32 %v1568_v2, %v789_v13  ;;  %v882_v47 = vsel %vm850_vm5, %v834_v25, %v866_v37  ;;  %v797_v57 = vld [vmem:[%s1720_s4 + $0x70] sm:$0xff]  ;;  %vm857_vm12 = vcmp.ge.f32.partialorder %v841_v0, 0.0  ;;  %v873_v9 = vmul.f32 0.2, %v841_v0 }
 0x152   : > { %v790_v18 = vld [vmem:[%s1720_s4 + $0x38] sm:$0xff]  ;;  %898 = vst [vmem:[%s1720_s4 + $0x28] sm:$0xff] %v882_v47  ;;  %v820_v4 = vmul.f32 %v1568_v2, %v797_v57  ;;  %vm858_vm13 = vcmp.ge.f32.partialorder %v842_v1, 0.0  ;;  %v874_v10 = vmul.f32 0.2, %v842_v1  ;;  %v888_v11 = vsel %vm856_vm11, %v840_v62, %v872_v8 }
 0x153   : > { %v813_v22 = vmul.f32 %v1568_v2, %v790_v18  ;;  %v835_v38 = vadd.f32 %v1573_v3, %v812_v17  ;;  %v798_v5 = vld [vmem:[%s1720_s4 + $0x78] sm:$0xff]  ;;  %904 = vst [vmem:[%s1720_s4 + $0x58] sm:$0xff] %v888_v11  ;;  %v889_v14 = vsel %vm857_vm12, %v841_v0, %v873_v9 }
 0x154   : > { %v843_v12 = vadd.f32 %v1573_v3, %v820_v4  ;;  %v821_v13 = vmul.f32 %v1568_v2, %v798_v5  ;;  %v890_v15 = vsel %vm858_vm13, %v842_v1, %v874_v10  ;;  %905 = vst [vmem:[%s1720_s4 + $0x60] sm:$0xff] %v889_v14 }
 0x155   : > { %v836_v39 = vadd.f32 %v1573_v3, %v813_v22  ;;  %vm851_vm6 = vcmp.ge.f32.partialorder %v835_v38, 0.0  ;;  %v867_v48 = vmul.f32 0.2, %v835_v38  ;;  %906 = vst [vmem:[%s1720_s4 + $0x68] sm:$0xff] %v890_v15 }
 0x156   : > { %vm859_vm14 = vcmp.ge.f32.partialorder %v843_v12, 0.0  ;;  %v875_v16 = vmul.f32 0.2, %v843_v12  ;;  %v844_v17 = vadd.f32 %v1573_v3, %v821_v13 }
 0x157   : > { %vm852_vm7 = vcmp.ge.f32.partialorder %v836_v39, 0.0  ;;  %v868_v49 = vmul.f32 0.2, %v836_v39  ;;  %v883_v53 = vsel %vm851_vm6, %v835_v38, %v867_v48 }
 0x158   : > { %899 = vst [vmem:[%s1720_s4 + $0x30] sm:$0xff] %v883_v53  ;;  %v891_v18 = vsel %vm859_vm14, %v843_v12, %v875_v16  ;;  %vm860_vm15 = vcmp.ge.f32.partialorder %v844_v17, 0.0  ;;  %v876_v2 = vmul.f32 0.2, %v844_v17 }
 0x159   : > { %v884_v58 = vsel %vm852_vm7, %v836_v39, %v868_v49  ;;  %907 = vst [vmem:[%s1720_s4 + $0x70] sm:$0xff] %v891_v18 }
 0x15a   : > { %900 = vst [vmem:[%s1720_s4 + $0x38] sm:$0xff] %v884_v58  ;;  %v892_v19 = vsel %vm860_vm15, %v844_v17, %v876_v2 }
 0x15b   : > { %908 = vst [vmem:[%s1720_s4 + $0x78] sm:$0xff] %v892_v19 }
 0x15c PF: > { %s14_s19 = sadd.s32 1, %s1284_s19   ;;  %s1721_s15 = smov %s1272_s16 }
 0x15d   : > { %p11_p12 = scmp.ge.s32.totalorder %s14_s19, 6   ;;  %s1722_s16 = smov %s1347_s23 }
 0x15e   : > { %s1723_s17 = smov %s1280_s18  ;;  %s1724_s18 = smov %s1726_s20 }
 0x15f   :  { %13 = sbr.rel (!%p11_p12) target bundleno = 3 (0x3), region = 126 }

// kernel: discriminator_forward.11
= control target key start
LH: loop header
LB: loop body
LE: loop exit
PB: predicated region body
PF: predicated region fallthrough
CT: control target
= control target key end

     0   :  { %s1162_s15 = smov 0   ;;  %s1164_s16 = smov 0   ;;  %s1550_s0 = inlined_call_operand.vmem [shape: bf16[128,640], index: 0, kind: input, shape index: {}]   ;;  %s1551_s1 = inlined_call_operand.vmem [shape: bf16[640,128], index: 1, kind: input, shape index: {}]   ;;  %s1552_s2 = inlined_call_operand.vmem [shape: f32[1,128], index: 2, kind: input, shape index: {}]   ;;  %s1553_s3 = inlined_call_operand.vmem [shape: f32[1,128], index: 3, kind: input, shape index: {}]   ;;  %s1554_s4 = inlined_call_operand.vmem [shape: f32[128,128], index: 4, kind: output, shape index: {}]  }
   0x1   :  { %s1166_s17 = smov 0   ;;  %s1168_s18 = smov 0  }
   0x2   :  { %s1170_s19 = smov 0  }
   0x3 LB: > { %s26_s20 = sadd.s32 1, %s1130_s18  ;;  %p49_p1 = scmp.ne.s32.totalorder %s1122_s16, %s1118_s15  ;;  %s1134_s19 = sphi %s1170_s19, %s14_s19   ;;  %s1130_s18 = sphi %s1168_s18, %s1558_s18   ;;  %s1126_s17 = sphi %s1166_s17, %s1557_s17   ;;  %s1122_s16 = sphi %s1164_s16, %s1556_s16   ;;  %s1118_s15 = sphi %s1162_s15, %s1555_s15  }
   0x4   : > { %p27_p0 = scmp.ge.s32.totalorder %s26_s20, 5  ;;  %p50_p2 = scmp.eq.s32.totalorder %s1134_s19, 0 }
   0x5   : > { %s42_s22 = sadd.s32 1, %s1122_s16  ;;  %p944_p5 = scmp.ge.s32.totalorder %s1134_s19, 5 }
   0x6   : > { %s1560_s20 = smov (%p27_p0, %s26_s20), 0  ;;  %p51_p3 = por %p50_p2, %p49_p1 }
   0x7   : > { %s38_s21 = ssub.s32 %s1130_s18, %s1560_s20  ;;  %195 = sbr.rel (%p944_p5) target bundleno = 28 (0x1c), region = 24 }
   0x8   : > { %p40_p4 = scmp.eq.s32.totalorder %s38_s21, 0 }
   0xa   : > { %s1197_s23 = scalar_select %p40_p4, %s1122_s16, %s42_s22  }
   0xe   : > { %198 = sbr.rel (!%p51_p3) target bundleno = 28 (0x1c), region = 28  ;;  %s200_s24 = sand.u32 (%p51_p3), 1, %s1122_s16  }
   0xf   : > { %s946_s25 = sshll.u32 (%p51_p3), %s1130_s18, 2  ;;  %s945_s26 = sshll.u32 (%p51_p3), %s200_s24, 6 }
  0x10   : > { %s1205_s29 = scalar_lea.vmem (%p51_p3), %s1550_s0, %s946_s25  ;;  %s202_s30 = scalar_lea.vmem (%p51_p3), [#allocation2], %s945_s26 }
  0x11   : > { %v223_v0 = vld [vmem:[%s1205_s29] sm:$0xf] (%p51_p3)  ;;  %v225_v1 = vld [vmem:[%s1205_s29 + $0x14] sm:$0xf] (%p51_p3)  ;;  %v227_v2 = vld [vmem:[%s1205_s29 + $0x28] sm:$0xf] (%p51_p3) }
  0x12   : > { %224 = vst [vmem:[%s202_s30] sm:$0xf] (%p51_p3), %v223_v0  ;;  %226 = vst [vmem:[%s202_s30 + $0x4] sm:$0xf] (%p51_p3), %v225_v1  ;;  %v229_v3 = vld [vmem:[%s1205_s29 + $0x3c] sm:$0xf] (%p51_p3) }
  0x13   : > { %v231_v4 = vld [vmem:[%s1205_s29 + $0x50] sm:$0xf] (%p51_p3)  ;;  %228 = vst [vmem:[%s202_s30 + $0x8] sm:$0xf] (%p51_p3), %v227_v2  ;;  %230 = vst [vmem:[%s202_s30 + $0xc] sm:$0xf] (%p51_p3), %v229_v3 }
  0x14   : > { %232 = vst [vmem:[%s202_s30 + $0x10] sm:$0xf] (%p51_p3), %v231_v4  ;;  %v233_v5 = vld [vmem:[%s1205_s29 + $0x64] sm:$0xf] (%p51_p3)  ;;  %v235_v6 = vld [vmem:[%s1205_s29 + $0x78] sm:$0xf] (%p51_p3) }
  0x15   : > { %v237_v7 = vld [vmem:[%s1205_s29 + $0x8c] sm:$0xf]  ;;  %234 = vst [vmem:[%s202_s30 + $0x14] sm:$0xf] %v233_v5  ;;  %236 = vst [vmem:[%s202_s30 + $0x18] sm:$0xf] %v235_v6 }
  0x16   : > { %238 = vst [vmem:[%s202_s30 + $0x1c] sm:$0xf] %v237_v7  ;;  %v239_v8 = vld [vmem:[%s1205_s29 + $0xa0] sm:$0xf]  ;;  %v241_v9 = vld [vmem:[%s1205_s29 + $0xb4] sm:$0xf] }
  0x17   : > { %v243_v10 = vld [vmem:[%s1205_s29 + $0xc8] sm:$0xf]  ;;  %240 = vst [vmem:[%s202_s30 + $0x20] sm:$0xf] %v239_v8  ;;  %242 = vst [vmem:[%s202_s30 + $0x24] sm:$0xf] %v241_v9 }
  0x18   : > { %244 = vst [vmem:[%s202_s30 + $0x28] sm:$0xf] %v243_v10  ;;  %v245_v11 = vld [vmem:[%s1205_s29 + $0xdc] sm:$0xf]  ;;  %v247_v12 = vld [vmem:[%s1205_s29 + $0xf0] sm:$0xf] }
  0x19   : > { %v249_v13 = vld [vmem:[%s1205_s29 + $0x104] sm:$0xf]  ;;  %246 = vst [vmem:[%s202_s30 + $0x2c] sm:$0xf] %v245_v11  ;;  %248 = vst [vmem:[%s202_s30 + $0x30] sm:$0xf] %v247_v12 }
  0x1a   : > { %250 = vst [vmem:[%s202_s30 + $0x34] sm:$0xf] %v249_v13  ;;  %v251_v14 = vld [vmem:[%s1205_s29 + $0x118] sm:$0xf]  ;;  %v253_v15 = vld [vmem:[%s1205_s29 + $0x12c] sm:$0xf] }
  0x1b   : > { %252 = vst [vmem:[%s202_s30 + $0x38] sm:$0xf] %v251_v14  ;;  %254 = vst [vmem:[%s202_s30 + $0x3c] sm:$0xf] %v253_v15 }
  0x1c PF: > { %p947_p6 = scmp.ge.s32.totalorder %s1134_s19, 1  ;;  %p320_p7 = scmp.lt.s32.totalorder %s1134_s19, 6 }
  0x1e   : > { %p321_p8 = pnand %p947_p6, %p320_p7 }
  0x1f   : > { %s327_s5 = sand.u32 (!%p321_p8), 1, %s1118_s15   ;;  %s949_s6 = sshll.u32 (!%p321_p8), %s1126_s17, 4 }
  0x20   : > { %324 = sbr.rel (%p321_p8) target bundleno = 331 (0x14b), region = 73  ;;  %s948_s7 = sshll.u32 (!%p321_p8), %s327_s5, 6 }
  0x21   : > { %p371_p9 = scmp.lt.s32.totalorder (!%p321_p8), %s949_s6, 79  ;;  %s1232_s12 = scalar_lea.vmem (!%p321_p8), [#allocation2], %s948_s7 }
  0x22   : > { %p951_p10 = scmp.ne.s32.totalorder (!%p321_p8), %s1126_s17, 0 }
  0x27   : > { %s1562_s6 = smov (!%p371_p9, %s949_s6), 79  ;;  %398 = sbr.rel (%p951_p10) target bundleno = 49 (0x31), region = 81 }
  0x28   : > { %s950_s8 = sshll.u32 %s1562_s6, 2  ;;  %v1136_v16 = vmov (!%p951_p10), 0.0  }
  0x29   : > { %s1230_s11 = scalar_lea.vmem %s1551_s1, %s950_s8  ;;  %399 = vst [vmem:[%s1554_s4] sm:$0xff] (!%p951_p10), %v1136_v16  ;;  %400 = vst [vmem:[%s1554_s4 + $0x8] sm:$0xff] (!%p951_p10), %v1136_v16 }
  0x2a   : > { %401 = vst [vmem:[%s1554_s4 + $0x10] sm:$0xff] (!%p951_p10), %v1136_v16  ;;  %402 = vst [vmem:[%s1554_s4 + $0x18] sm:$0xff] (!%p951_p10), %v1136_v16 }
  0x2b   : > { %403 = vst [vmem:[%s1554_s4 + $0x20] sm:$0xff] (!%p951_p10), %v1136_v16  ;;  %404 = vst [vmem:[%s1554_s4 + $0x28] sm:$0xff] (!%p951_p10), %v1136_v16 }
  0x2c   : > { %405 = vst [vmem:[%s1554_s4 + $0x30] sm:$0xff] (!%p951_p10), %v1136_v16  ;;  %406 = vst [vmem:[%s1554_s4 + $0x38] sm:$0xff] (!%p951_p10), %v1136_v16 }
  0x2d   : > { %407 = vst [vmem:[%s1554_s4 + $0x40] sm:$0xff] (!%p951_p10), %v1136_v16  ;;  %408 = vst [vmem:[%s1554_s4 + $0x48] sm:$0xff] (!%p951_p10), %v1136_v16 }
  0x2e   : > { %409 = vst [vmem:[%s1554_s4 + $0x50] sm:$0xff] %v1136_v16  ;;  %410 = vst [vmem:[%s1554_s4 + $0x58] sm:$0xff] %v1136_v16 }
  0x2f   : > { %411 = vst [vmem:[%s1554_s4 + $0x60] sm:$0xff] %v1136_v16  ;;  %412 = vst [vmem:[%s1554_s4 + $0x68] sm:$0xff] %v1136_v16 }
  0x30   : > { %413 = vst [vmem:[%s1554_s4 + $0x70] sm:$0xff] %v1136_v16  ;;  %414 = vst [vmem:[%s1554_s4 + $0x78] sm:$0xff] %v1136_v16 }
  0x31 PF: > { %v1080_v17 = vld [vmem:[%s1230_s11] sm:$0xff]   ;;  %v1081_v18 = vld [vmem:[%s1230_s11 + $0x8] sm:$0xff]   ;;  %v1082_v19 = vld [vmem:[%s1230_s11 + $0x10] sm:$0xff]   ;;  %p968_p11 = scmp.ne.s32.totalorder %s1126_s17, 4 }
  0x32   : > { %991 = vmatprep.subr.bf16.mxu0 %v1080_v17  ;;  %1023 = vmatprep.subr.bf16.mxu1 %v1080_v17  ;;  %v1083_v20 = vld [vmem:[%s1230_s11 + $0x18] sm:$0xff]   ;;  %v1088_v21 = vld [vmem:[%s1232_s12] sm:$0xff]   ;;  %v1085_v24 = vld [vmem:[%s1230_s11 + $0x28] sm:$0xff]  }
  0x33   : > { %992 = vmatpush3.bf16.msra.mxu0 %v1080_v17  ;;  %1031 = vmatpush3.bf16.msra.mxu1 %v1080_v17  ;;  %v1089_v22 = vld [vmem:[%s1232_s12 + $0x20] sm:$0xff]   ;;  %v1086_v25 = vld [vmem:[%s1230_s11 + $0x30] sm:$0xff]   ;;  %v1087_v26 = vld [vmem:[%s1230_s11 + $0x38] sm:$0xff]  }
  0x34   : > { %993 = vmatprep.subr.bf16.mxu0 %v1081_v18  ;;  %1024 = vmatprep.subr.bf16.mxu1 %v1081_v18  ;;  %v1084_v23 = vld [vmem:[%s1230_s11 + $0x20] sm:$0xff]   ;;  %v1090_v27 = vld [vmem:[%s1232_s12 + $0x8] sm:$0xff]   ;;  %v1092_v29 = vld [vmem:[%s1232_s12 + $0x10] sm:$0xff]  }
  0x35   : > { %1007 = vmatprep.mubr.bf16.mxu0 %v1088_v21  ;;  %1015 = vmatprep.mubr.bf16.mxu1 %v1089_v22  ;;  %v1091_v28 = vld [vmem:[%s1232_s12 + $0x28] sm:$0xff]   ;;  %v1093_v30 = vld [vmem:[%s1232_s12 + $0x30] sm:$0xff]   ;;  %v1094_v31 = vld [vmem:[%s1232_s12 + $0x18] sm:$0xff]  }
  0x36   : > { %v1095_v32 = vld [vmem:[%s1232_s12 + $0x38] sm:$0xff]   ;;  %v417_v33 = vld [vmem:[%s1554_s4 + $0x10] sm:$0xff]  ;;  %v415_v35 = vld [vmem:[%s1554_s4] sm:$0xff] }
  0x37   : > { %994 = vmatpush3.bf16.msra.mxu0 %v1081_v18  ;;  %1032 = vmatpush3.bf16.msra.mxu1 %v1081_v18  ;;  %v425_v34 = vld [vmem:[%s1554_s4 + $0x50] sm:$0xff]  ;;  %v423_v36 = vld [vmem:[%s1554_s4 + $0x40] sm:$0xff]  ;;  %v418_v39 = vld [vmem:[%s1554_s4 + $0x18] sm:$0xff] }
  0x38   : > { %995 = vmatprep.subr.bf16.mxu0 %v1082_v19  ;;  %1025 = vmatprep.subr.bf16.mxu1 %v1082_v19  ;;  %v426_v40 = vld [vmem:[%s1554_s4 + $0x58] sm:$0xff]  ;;  %v416_v45 = vld [vmem:[%s1554_s4 + $0x8] sm:$0xff]  ;;  %v421_v57 = vld [vmem:[%s1554_s4 + $0x30] sm:$0xff] }
  0x39   : > { %v424_v46 = vld [vmem:[%s1554_s4 + $0x48] sm:$0xff]  ;;  %v429_v58 = vld [vmem:[%s1554_s4 + $0x70] sm:$0xff]  ;;  %v419_v59 = vld [vmem:[%s1554_s4 + $0x20] sm:$0xff] }
  0x3a   : > { %v427_v60 = vld [vmem:[%s1554_s4 + $0x60] sm:$0xff]  ;;  %v422_v63 = vld [vmem:[%s1554_s4 + $0x38] sm:$0xff]  ;;  %v420_v5 = vld [vmem:[%s1554_s4 + $0x28] sm:$0xff] }
  0x3b   : > { %996 = vmatpush3.bf16.msra.mxu0 %v1082_v19  ;;  %1033 = vmatpush3.bf16.msra.mxu1 %v1082_v19  ;;  %v430_v0 = vld [vmem:[%s1554_s4 + $0x78] sm:$0xff]  ;;  %v428_v6 = vld [vmem:[%s1554_s4 + $0x68] sm:$0xff]  ;;  %v1402_v18 = vld [vmem:[%s1552_s2] ss:$0 sm:$0xff] (!%p968_p11) }
  0x3c   : > { %997 = vmatprep.subr.bf16.mxu0 %v1083_v20  ;;  %1026 = vmatprep.subr.bf16.mxu1 %v1083_v20  ;;  %v1407_v19 = vld [vmem:[%s1553_s3] ss:$0 sm:$0xff] (!%p968_p11) }
  0x3f   : > { %998 = vmatpush3.bf16.msra.mxu0 %v1083_v20  ;;  %1034 = vmatpush3.bf16.msra.mxu1 %v1083_v20 }
  0x40   : > { %999 = vmatprep.subr.bf16.mxu0 %v1084_v23  ;;  %1027 = vmatprep.subr.bf16.mxu1 %v1084_v23 }
  0x43   : > { %1000 = vmatpush3.bf16.msra.mxu0 %v1084_v23  ;;  %1035 = vmatpush3.bf16.msra.mxu1 %v1084_v23 }
  0x44   : > { %1001 = vmatprep.subr.bf16.mxu0 %v1085_v24  ;;  %1028 = vmatprep.subr.bf16.mxu1 %v1085_v24 }
  0x47   : > { %1002 = vmatpush3.bf16.msra.mxu0 %v1085_v24  ;;  %1036 = vmatpush3.bf16.msra.mxu1 %v1085_v24 }
  0x48   : > { %1003 = vmatprep.subr.bf16.mxu0 %v1086_v25  ;;  %1029 = vmatprep.subr.bf16.mxu1 %v1086_v25 }
  0x4b   : > { %1004 = vmatpush3.bf16.msra.mxu0 %v1086_v25  ;;  %1037 = vmatpush3.bf16.msra.mxu1 %v1086_v25 }
  0x4c   : > { %1005 = vmatprep.subr.bf16.mxu0 %v1087_v26  ;;  %1030 = vmatprep.subr.bf16.mxu1 %v1087_v26 }
  0x4f   : > { %1006 = vmatpush3.bf16.msra.mxu0 %v1087_v26  ;;  %1038 = vmatpush3.bf16.msra.mxu1 %v1087_v26 }
  0x52   : > { %1008 = vmatmul.mubr.bf16.vlgmr.msra.gmra.mrb[0].mxu0 %v1090_v27  ;;  %1016 = vmatmul.mubr.bf16.vlgmr.msra.gmra.mrb[0].mxu1 %v1091_v28 }
  0x53   : > { %1011 = vmatprep.mubr.bf16.mxu0 %v1092_v29  ;;  %1019 = vmatprep.mubr.bf16.mxu1 %v1093_v30 }
  0x5a   : > { %1012 = vmatmul.mubr.bf16.gmra.mrb[4].mxu0 %v1094_v31  ;;  %1020 = vmatmul.mubr.bf16.gmra.mrb[4].mxu1 %v1095_v32 }
 0x125   : > { %v1009_v37 = vpop.f32.mrb[0].mxu0  ;;  %v1017_v38 = vpop.f32.mrb[0].mxu1 }
 0x126   : > { %v658_v41 = vadd.f32 %v1009_v37, %v417_v33  ;;  %v666_v42 = vadd.f32 %v1017_v38, %v425_v34  ;;  %v593_v43 = vpop.f32.mrb[1].mxu0  ;;  %v625_v44 = vpop.f32.mrb[1].mxu1 }
 0x127   : > { %v656_v47 = vadd.f32 %v593_v43, %v415_v35  ;;  %v664_v48 = vadd.f32 %v625_v44, %v423_v36  ;;  %v1010_v49 = vpop.f32.mrb[2].mxu0  ;;  %v1018_v50 = vpop.f32.mrb[2].mxu1 }
 0x128   : > { %674 = vst [vmem:[%s1554_s4 + $0x10] sm:$0xff] %v658_v41  ;;  %682 = vst [vmem:[%s1554_s4 + $0x50] sm:$0xff] %v666_v42  ;;  %v659_v51 = vadd.f32 %v1010_v49, %v418_v39  ;;  %v667_v52 = vadd.f32 %v1018_v50, %v426_v40  ;;  %v596_v53 = vpop.f32.mrb[3].mxu0  ;;  %v628_v54 = vpop.f32.mrb[3].mxu1 }
 0x129   : > { %672 = vst [vmem:[%s1554_s4] sm:$0xff] %v656_v47  ;;  %680 = vst [vmem:[%s1554_s4 + $0x40] sm:$0xff] %v664_v48  ;;  %v657_v55 = vadd.f32 %v596_v53, %v416_v45  ;;  %v665_v56 = vadd.f32 %v628_v54, %v424_v46 }
 0x12a   : > { %675 = vst [vmem:[%s1554_s4 + $0x18] sm:$0xff] %v659_v51  ;;  %683 = vst [vmem:[%s1554_s4 + $0x58] sm:$0xff] %v667_v52 }
 0x12b   : > { %673 = vst [vmem:[%s1554_s4 + $0x8] sm:$0xff] %v657_v55  ;;  %681 = vst [vmem:[%s1554_s4 + $0x48] sm:$0xff] %v665_v56 }
 0x12d   : > { %v1013_v61 = vpop.f32.mrb[4].mxu0  ;;  %v1021_v62 = vpop.f32.mrb[4].mxu1  ;;  %691 = sbr.rel (%p968_p11) target bundleno = 331 (0x14b), region = 85 }
 0x12e   : > { %v662_v1 = vadd.f32 %v1013_v61, %v421_v57  ;;  %v670_v2 = vadd.f32 %v1021_v62, %v429_v58  ;;  %v609_v3 = vpop.f32.mrb[5].mxu0  ;;  %v641_v4 = vpop.f32.mrb[5].mxu1 }
 0x12f   : > { %v660_v7 = vadd.f32 %v609_v3, %v419_v59  ;;  %v668_v8 = vadd.f32 %v641_v4, %v427_v60  ;;  %v1014_v9 = vpop.f32.mrb[6].mxu0  ;;  %v1022_v10 = vpop.f32.mrb[6].mxu1  ;;  %v694_v22 = vld [vmem:[%s1554_s4 + $0x10] sm:$0xff] (!%p968_p11) }
 0x130   : > { %678 = vst [vmem:[%s1554_s4 + $0x30] sm:$0xff] %v662_v1  ;;  %686 = vst [vmem:[%s1554_s4 + $0x70] sm:$0xff] %v670_v2  ;;  %v663_v11 = vadd.f32 %v1014_v9, %v422_v63  ;;  %v671_v12 = vadd.f32 %v1022_v10, %v430_v0  ;;  %v612_v13 = vpop.f32.mrb[7].mxu0  ;;  %v644_v14 = vpop.f32.mrb[7].mxu1  ;;  %v692_v17 = vld [vmem:[%s1554_s4] sm:$0xff] (!%p968_p11)  ;;  %v717_v25 = vmul.f32 (!%p968_p11), %v1402_v18, %v694_v22  ;;  %v702_v48 = vld [vmem:[%s1554_s4 + $0x50] sm:$0xff] (!%p968_p11) }
 0x131   : > { %676 = vst [vmem:[%s1554_s4 + $0x20] sm:$0xff] %v660_v7  ;;  %684 = vst [vmem:[%s1554_s4 + $0x60] sm:$0xff] %v668_v8  ;;  %v661_v15 = vadd.f32 %v612_v13, %v420_v5  ;;  %v669_v16 = vadd.f32 %v644_v14, %v428_v6  ;;  %v715_v20 = vmul.f32 (!%p968_p11), %v1402_v18, %v692_v17  ;;  %v695_v23 = vld [vmem:[%s1554_s4 + $0x18] sm:$0xff] (!%p968_p11)  ;;  %v700_v42 = vld [vmem:[%s1554_s4 + $0x40] sm:$0xff] (!%p968_p11) }
 0x132   : > { %679 = vst [vmem:[%s1554_s4 + $0x38] sm:$0xff] %v663_v11  ;;  %687 = vst [vmem:[%s1554_s4 + $0x78] sm:$0xff] %v671_v12  ;;  %v693_v21 = vld [vmem:[%s1554_s4 + $0x8] sm:$0xff] (!%p968_p11)  ;;  %v718_v26 = vmul.f32 (!%p968_p11), %v1402_v18, %v695_v23  ;;  %v740_v36 = vadd.f32 (!%p968_p11), %v1407_v19, %v717_v25  ;;  %v723_v57 = vmul.f32 (!%p968_p11), %v1402_v18, %v700_v42  ;;  %v703_v60 = vld [vmem:[%s1554_s4 + $0x58] sm:$0xff] (!%p968_p11) }
 0x133   : > { %677 = vst [vmem:[%s1554_s4 + $0x28] sm:$0xff] %v661_v15  ;;  %685 = vst [vmem:[%s1554_s4 + $0x68] sm:$0xff] %v669_v16  ;;  %v716_v24 = vmul.f32 (!%p968_p11), %v1402_v18, %v693_v21  ;;  %v738_v30 = vadd.f32 (!%p968_p11), %v1407_v19, %v715_v20  ;;  %v701_v47 = vld [vmem:[%s1554_s4 + $0x48] sm:$0xff] (!%p968_p11)  ;;  %v725_v59 = vmul.f32 (!%p968_p11), %v1402_v18, %v702_v48 }
 0x134   : > { %v741_v37 = vadd.f32 %v1407_v19, %v718_v26  ;;  %vm756_vm2 = vcmp.ge.f32.partialorder %v740_v36, 0.0  ;;  %v772_v44 = vmul.f32 0.2, %v740_v36  ;;  %v724_v58 = vmul.f32 %v1402_v18, %v701_v47 }
 0x135   : > { %v739_v35 = vadd.f32 %v1407_v19, %v716_v24  ;;  %vm754_vm0 = vcmp.ge.f32.partialorder %v738_v30, 0.0  ;;  %v770_v39 = vmul.f32 0.2, %v738_v30  ;;  %v746_v2 = vadd.f32 %v1407_v19, %v723_v57 }
 0x136   : > { %vm757_vm3 = vcmp.ge.f32.partialorder %v741_v37, 0.0  ;;  %v773_v46 = vmul.f32 0.2, %v741_v37  ;;  %v788_v50 = vsel %vm756_vm2, %v740_v36, %v772_v44  ;;  %v747_v3 = vadd.f32 %v1407_v19, %v724_v58 }
 0x137   : > { %v698_v29 = vld [vmem:[%s1554_s4 + $0x30] sm:$0xff]  ;;  %vm755_vm1 = vcmp.ge.f32.partialorder %v739_v35, 0.0  ;;  %v771_v43 = vmul.f32 0.2, %v739_v35  ;;  %v786_v45 = vsel %vm754_vm0, %v738_v30, %v770_v39  ;;  %804 = vst [vmem:[%s1554_s4 + $0x10] sm:$0xff] %v788_v50  ;;  %v748_v4 = vadd.f32 %v1407_v19, %v725_v59 }
 0x138   : > { %v696_v27 = vld [vmem:[%s1554_s4 + $0x20] sm:$0xff]  ;;  %v721_v33 = vmul.f32 %v1402_v18, %v698_v29  ;;  %802 = vst [vmem:[%s1554_s4] sm:$0xff] %v786_v45  ;;  %v789_v52 = vsel %vm757_vm3, %v741_v37, %v773_v46  ;;  %v726_v6 = vmul.f32 %v1402_v18, %v703_v60  ;;  %v706_v9 = vld [vmem:[%s1554_s4 + $0x70] sm:$0xff]  ;;  %vm762_vm8 = vcmp.ge.f32.partialorder %v746_v2, 0.0 }
 0x139   : > { %v719_v31 = vmul.f32 %v1402_v18, %v696_v27  ;;  %v699_v34 = vld [vmem:[%s1554_s4 + $0x38] sm:$0xff]  ;;  %v787_v49 = vsel %vm755_vm1, %v739_v35, %v771_v43  ;;  %805 = vst [vmem:[%s1554_s4 + $0x18] sm:$0xff] %v789_v52  ;;  %v704_v61 = vld [vmem:[%s1554_s4 + $0x60] sm:$0xff]  ;;  %v778_v11 = vmul.f32 0.2, %v746_v2  ;;  %vm763_vm9 = vcmp.ge.f32.partialorder %v747_v3, 0.0 }
 0x13a   : > { %v697_v28 = vld [vmem:[%s1554_s4 + $0x28] sm:$0xff]  ;;  %v722_v38 = vmul.f32 %v1402_v18, %v699_v34  ;;  %803 = vst [vmem:[%s1554_s4 + $0x8] sm:$0xff] %v787_v49  ;;  %v744_v54 = vadd.f32 %v1407_v19, %v721_v33  ;;  %v727_v7 = vmul.f32 %v1402_v18, %v704_v61  ;;  %v779_v12 = vmul.f32 0.2, %v747_v3  ;;  %v707_v21 = vld [vmem:[%s1554_s4 + $0x78] sm:$0xff] }
 0x13b   : > { %v720_v32 = vmul.f32 %v1402_v18, %v697_v28  ;;  %v742_v40 = vadd.f32 %v1407_v19, %v719_v31  ;;  %v705_v62 = vld [vmem:[%s1554_s4 + $0x68] sm:$0xff]  ;;  %vm764_vm10 = vcmp.ge.f32.partialorder %v748_v4, 0.0  ;;  %v780_v13 = vmul.f32 0.2, %v748_v4 }
 0x13c   : > { %v745_v55 = vadd.f32 %v1407_v19, %v722_v38  ;;  %vm760_vm6 = vcmp.ge.f32.partialorder %v744_v54, 0.0  ;;  %v776_v0 = vmul.f32 0.2, %v744_v54  ;;  %v728_v8 = vmul.f32 %v1402_v18, %v705_v62 }
 0x13d   : > { %v743_v41 = vadd.f32 %v1407_v19, %v720_v32  ;;  %vm758_vm4 = vcmp.ge.f32.partialorder %v742_v40, 0.0  ;;  %v774_v51 = vmul.f32 0.2, %v742_v40  ;;  %v749_v14 = vadd.f32 %v1407_v19, %v726_v6 }
 0x13e   : > { %vm761_vm7 = vcmp.ge.f32.partialorder %v745_v55, 0.0  ;;  %v777_v1 = vmul.f32 0.2, %v745_v55  ;;  %v792_v5 = vsel %vm760_vm6, %v744_v54, %v776_v0  ;;  %v794_v15 = vsel %vm762_vm8, %v746_v2, %v778_v11 }
 0x13f   : > { %vm759_vm5 = vcmp.ge.f32.partialorder %v743_v41, 0.0  ;;  %v775_v53 = vmul.f32 0.2, %v743_v41  ;;  %v790_v56 = vsel %vm758_vm4, %v742_v40, %v774_v51  ;;  %808 = vst [vmem:[%s1554_s4 + $0x30] sm:$0xff] %v792_v5  ;;  %v750_v16 = vadd.f32 %v1407_v19, %v727_v7  ;;  %810 = vst [vmem:[%s1554_s4 + $0x40] sm:$0xff] %v794_v15 }
 0x140   : > { %806 = vst [vmem:[%s1554_s4 + $0x20] sm:$0xff] %v790_v56  ;;  %v793_v10 = vsel %vm761_vm7, %v745_v55, %v777_v1  ;;  %v751_v17 = vadd.f32 %v1407_v19, %v728_v8  ;;  %v729_v20 = vmul.f32 %v1402_v18, %v706_v9  ;;  %v795_v22 = vsel %vm763_vm9, %v747_v3, %v779_v12 }
 0x141   : > { %v791_v63 = vsel %vm759_vm5, %v743_v41, %v775_v53  ;;  %809 = vst [vmem:[%s1554_s4 + $0x38] sm:$0xff] %v793_v10  ;;  %v796_v23 = vsel %vm764_vm10, %v748_v4, %v780_v13  ;;  %vm765_vm11 = vcmp.ge.f32.partialorder %v749_v14, 0.0  ;;  %v781_v24 = vmul.f32 0.2, %v749_v14  ;;  %811 = vst [vmem:[%s1554_s4 + $0x48] sm:$0xff] %v795_v22 }
 0x142   : > { %807 = vst [vmem:[%s1554_s4 + $0x28] sm:$0xff] %v791_v63  ;;  %812 = vst [vmem:[%s1554_s4 + $0x50] sm:$0xff] %v796_v23  ;;  %vm766_vm12 = vcmp.ge.f32.partialorder %v750_v16, 0.0  ;;  %v782_v25 = vmul.f32 0.2, %v750_v16  ;;  %vm767_vm13 = vcmp.ge.f32.partialorder %v751_v17, 0.0  ;;  %v752_v28 = vadd.f32 %v1407_v19, %v729_v20 }
 0x143   : > { %v783_v26 = vmul.f32 0.2, %v751_v17  ;;  %v797_v27 = vsel %vm765_vm11, %v749_v14, %v781_v24  ;;  %v730_v29 = vmul.f32 %v1402_v18, %v707_v21 }
 0x144   : > { %813 = vst [vmem:[%s1554_s4 + $0x58] sm:$0xff] %v797_v27  ;;  %v798_v30 = vsel %vm766_vm12, %v750_v16, %v782_v25  ;;  %vm768_vm14 = vcmp.ge.f32.partialorder %v752_v28, 0.0  ;;  %v784_v32 = vmul.f32 0.2, %v752_v28 }
 0x145   : > { %v799_v31 = vsel %vm767_vm13, %v751_v17, %v783_v26  ;;  %814 = vst [vmem:[%s1554_s4 + $0x60] sm:$0xff] %v798_v30  ;;  %v753_v33 = vadd.f32 %v1407_v19, %v730_v29 }
 0x146   : > { %815 = vst [vmem:[%s1554_s4 + $0x68] sm:$0xff] %v799_v31  ;;  %v800_v34 = vsel %vm768_vm14, %v752_v28, %v784_v32 }
 0x147   : > { %vm769_vm15 = vcmp.ge.f32.partialorder %v753_v33, 0.0  ;;  %v785_v18 = vmul.f32 0.2, %v753_v33  ;;  %816 = vst [vmem:[%s1554_s4 + $0x70] sm:$0xff] %v800_v34 }
 0x149   : > { %v801_v35 = vsel %vm769_vm15, %v753_v33, %v785_v18 }
 0x14a   : > { %817 = vst [vmem:[%s1554_s4 + $0x78] sm:$0xff] %v801_v35 }
 0x14b PF: > { %s14_s19 = sadd.s32 1, %s1134_s19   ;;  %s1555_s15 = smov %s1122_s16 }
 0x14c   : > { %p11_p12 = scmp.ge.s32.totalorder %s14_s19, 7   ;;  %s1556_s16 = smov %s1197_s23 }
 0x14d   : > { %s1557_s17 = smov %s1130_s18  ;;  %s1558_s18 = smov %s1560_s20 }
 0x14e   :  { %13 = sbr.rel (!%p11_p12) target bundleno = 3 (0x3), region = 129 }

// kernel: discriminator_forward.12
= control target key start
LH: loop header
LB: loop body
LE: loop exit
PB: predicated region body
PF: predicated region fallthrough
CT: control target
= control target key end

     0   :  { %s946_s15 = smov 0   ;;  %s948_s16 = smov 0   ;;  %s1103_s0 = inlined_call_operand.vmem [shape: bf16[32,2048], index: 0, kind: input, shape index: {}]   ;;  %s1104_s1 = inlined_call_operand.vmem [shape: bf16[2048,128], index: 1, kind: input, shape index: {}]   ;;  %s1105_s2 = inlined_call_operand.vmem [shape: f32[1,128], index: 2, kind: input, shape index: {}]   ;;  %s1106_s3 = inlined_call_operand.vmem [shape: f32[1,128], index: 3, kind: input, shape index: {}]   ;;  %s1107_s4 = inlined_call_operand.vmem [shape: f32[32,128], index: 4, kind: output, shape index: {}]  }
   0x1   :  { %s950_s17 = smov 0   ;;  %s952_s18 = smov 0  }
   0x2   :  { %s954_s19 = smov 0  }
   0x3 LB: > { %s26_s20 = sadd.s32 1, %s914_s18  ;;  %p49_p1 = scmp.ne.s32.totalorder %s906_s16, %s902_s15  ;;  %s918_s19 = sphi %s954_s19, %s14_s19   ;;  %s914_s18 = sphi %s952_s18, %s1111_s18   ;;  %s910_s17 = sphi %s950_s17, %s1110_s17   ;;  %s906_s16 = sphi %s948_s16, %s1109_s16   ;;  %s902_s15 = sphi %s946_s15, %s1108_s15  }
   0x4   : > { %p27_p0 = scmp.ge.s32.totalorder %s26_s20, 8  ;;  %p50_p2 = scmp.eq.s32.totalorder %s918_s19, 0 }
   0x5   : > { %s42_s22 = sadd.s32 1, %s906_s16  ;;  %p736_p5 = scmp.ge.s32.totalorder %s918_s19, 8 }
   0x6   : > { %s1113_s20 = smov (%p27_p0, %s26_s20), 0  ;;  %p51_p3 = por %p50_p2, %p49_p1 }
   0x7   : > { %s38_s21 = ssub.s32 %s914_s18, %s1113_s20  ;;  %195 = sbr.rel (%p736_p5) target bundleno = 22 (0x16), region = 24 }
   0x8   : > { %p40_p4 = scmp.eq.s32.totalorder %s38_s21, 0 }
   0xa   : > { %s981_s23 = scalar_select %p40_p4, %s906_s16, %s42_s22  }
   0xe   : > { %198 = sbr.rel (!%p51_p3) target bundleno = 22 (0x16), region = 28  ;;  %s200_s24 = sand.u32 (%p51_p3), 1, %s906_s16  }
   0xf   : > { %s772_s25 = sshll.u32 (%p51_p3), %s914_s18, 3  ;;  %s737_s26 = sshll.u32 (%p51_p3), %s200_s24, 5 }
  0x10   : > { %s208_s29 = scalar_lea.vmem (%p51_p3), %s1103_s0, %s772_s25  ;;  %s202_s30 = scalar_lea.vmem (%p51_p3), [#allocation2], %s737_s26 }
  0x11   : > { %v242_v0 = vld [vmem:[%s208_s29] sm:$0xff] (%p51_p3) }
  0x12   : > { %v244_v1 = vld [vmem:[%s208_s29 + $0x40] sm:$0xff] (%p51_p3)  ;;  %243 = vst [vmem:[%s202_s30] sm:$0xff] (%p51_p3), %v242_v0 }
  0x13   : > { %v246_v2 = vld [vmem:[%s208_s29 + $0x80] sm:$0xff] (%p51_p3)  ;;  %245 = vst [vmem:[%s202_s30 + $0x8] sm:$0xff] (%p51_p3), %v244_v1 }
  0x14   : > { %247 = vst [vmem:[%s202_s30 + $0x10] sm:$0xff] (%p51_p3), %v246_v2  ;;  %v248_v3 = vld [vmem:[%s208_s29 + $0xc0] sm:$0xff] (%p51_p3) }
  0x15   : > { %249 = vst [vmem:[%s202_s30 + $0x18] sm:$0xff] %v248_v3 }
  0x16 PF: > { %p740_p6 = scmp.ge.s32.totalorder %s918_s19, 1  ;;  %p266_p7 = scmp.lt.s32.totalorder %s918_s19, 9 }
  0x18   : > { %p267_p8 = pnand %p740_p6, %p266_p7 }
  0x19   : > { %s273_s5 = sand.u32 (!%p267_p8), 1, %s902_s15   ;;  %s742_s6 = sshll.u32 (!%p267_p8), %s910_s17, 5 }
  0x1a   : > { %270 = sbr.rel (%p267_p8) target bundleno = 309 (0x135), region = 70  ;;  %s741_s7 = sshll.u32 (!%p267_p8), %s273_s5, 5 }
  0x1b   : > { %p318_p9 = scmp.lt.s32.totalorder (!%p267_p8), %s742_s6, 255  ;;  %s998_s12 = scalar_lea.vmem (!%p267_p8), [#allocation2], %s741_s7 }
  0x1c   : > { %p744_p10 = scmp.ne.s32.totalorder (!%p267_p8), %s910_s17, 0 }
  0x21   : > { %s1115_s6 = smov (!%p318_p9, %s742_s6), 255  ;;  %345 = sbr.rel (%p744_p10) target bundleno = 40 (0x28), region = 78 }
  0x22   : > { %s743_s8 = sshll.u32 %s1115_s6, 2  ;;  %v920_v4 = vmov (!%p744_p10), 0.0  }
  0x23   : > { %s996_s11 = scalar_lea.vmem %s1104_s1, %s743_s8  ;;  %346 = vst [vmem:[%s1107_s4] sm:$0xff] (!%p744_p10), %v920_v4  ;;  %347 = vst [vmem:[%s1107_s4 + $0x8] sm:$0xff] (!%p744_p10), %v920_v4 }
  0x24   : > { %348 = vst [vmem:[%s1107_s4 + $0x10] sm:$0xff] (!%p744_p10), %v920_v4  ;;  %349 = vst [vmem:[%s1107_s4 + $0x18] sm:$0xff] (!%p744_p10), %v920_v4 }
  0x28 PF: > { %v858_v5 = vld [vmem:[%s996_s11 + $0x40] sm:$0xff]   ;;  %v860_v7 = vld [vmem:[%s996_s11 + $0x48] sm:$0xff]   ;;  %v862_v9 = vld [vmem:[%s996_s11 + $0x50] sm:$0xff]   ;;  %p765_p11 = scmp.ne.s32.totalorder %s910_s17, 7 }
  0x29   : > { %v859_v6 = vld [vmem:[%s996_s11] sm:$0xff]   ;;  %773 = vmatprep.subr.bf16.mxu0 %v858_v5  ;;  %801 = vmatprep.subr.bf16.mxu1 %v858_v5  ;;  %v861_v8 = vld [vmem:[%s996_s11 + $0x8] sm:$0xff]   ;;  %v863_v10 = vld [vmem:[%s996_s11 + $0x10] sm:$0xff]  }
  0x2a   : > { %774 = vmatpush3.bf16.msra.mxu0 %v859_v6  ;;  %809 = vmatpush3.bf16.msra.mxu1 %v859_v6  ;;  %v864_v11 = vld [vmem:[%s996_s11 + $0x58] sm:$0xff]   ;;  %v866_v13 = vld [vmem:[%s996_s11 + $0x60] sm:$0xff]   ;;  %v868_v15 = vld [vmem:[%s996_s11 + $0x68] sm:$0xff]  }
  0x2b   : > { %775 = vmatprep.subr.bf16.mxu0 %v860_v7  ;;  %802 = vmatprep.subr.bf16.mxu1 %v860_v7  ;;  %v865_v12 = vld [vmem:[%s996_s11 + $0x18] sm:$0xff]   ;;  %v867_v14 = vld [vmem:[%s996_s11 + $0x20] sm:$0xff]   ;;  %v869_v18 = vld [vmem:[%s996_s11 + $0x28] sm:$0xff]  }
  0x2c   : > { %v876_v16 = vld [vmem:[%s998_s12 + $0x4] ss:$8 sps:$4 sm:$0xff]   ;;  %v879_v17 = vld [vmem:[%s998_s12 + $0x14] ss:$8 sps:$4 sm:$0xff]   ;;  %v874_v23 = vld [vmem:[%s998_s12] ss:$8 sps:$4 sm:$0xff]  }
  0x2d   : > { %v870_v19 = vld [vmem:[%s996_s11 + $0x70] sm:$0xff]   ;;  %538 = vmatprep.mubr.bf16.mxu0 %v876_v16  ;;  %546 = vmatprep.mubr.bf16.mxu1 %v879_v17  ;;  %v872_v21 = vld [vmem:[%s996_s11 + $0x78] sm:$0xff]   ;;  %v350_v27 = vld [vmem:[%s1107_s4] sm:$0xff] }
  0x2e   : > { %776 = vmatpush3.bf16.msra.mxu0 %v861_v8  ;;  %810 = vmatpush3.bf16.msra.mxu1 %v861_v8  ;;  %v871_v20 = vld [vmem:[%s996_s11 + $0x30] sm:$0xff]   ;;  %v873_v22 = vld [vmem:[%s996_s11 + $0x38] sm:$0xff]   ;;  %v351_v35 = vld [vmem:[%s1107_s4 + $0x8] sm:$0xff] }
  0x2f   : > { %777 = vmatprep.subr.bf16.mxu0 %v862_v9  ;;  %803 = vmatprep.subr.bf16.mxu1 %v862_v9  ;;  %v877_v24 = vld [vmem:[%s998_s12 + $0x10] ss:$8 sps:$4 sm:$0xff]   ;;  %v766_v46 = vld [vmem:[%s1105_s2] ss:$0 sm:$0xff] (!%p765_p11) }
  0x30   : > { %v352_v29 = vld [vmem:[%s1107_s4 + $0x10] sm:$0xff]  ;;  %v353_v37 = vld [vmem:[%s1107_s4 + $0x18] sm:$0xff]  ;;  %v767_v47 = vld [vmem:[%s1106_s3] ss:$0 sm:$0xff] (!%p765_p11) }
  0x32   : > { %778 = vmatpush3.bf16.msra.mxu0 %v863_v10  ;;  %811 = vmatpush3.bf16.msra.mxu1 %v863_v10 }
  0x33   : > { %779 = vmatprep.subr.bf16.mxu0 %v864_v11  ;;  %804 = vmatprep.subr.bf16.mxu1 %v864_v11 }
  0x36   : > { %780 = vmatpush3.bf16.msra.mxu0 %v865_v12  ;;  %812 = vmatpush3.bf16.msra.mxu1 %v865_v12 }
  0x37   : > { %781 = vmatprep.subr.bf16.mxu0 %v866_v13  ;;  %805 = vmatprep.subr.bf16.mxu1 %v866_v13 }
  0x3a   : > { %782 = vmatpush3.bf16.msra.mxu0 %v867_v14  ;;  %813 = vmatpush3.bf16.msra.mxu1 %v867_v14 }
  0x3b   : > { %783 = vmatprep.subr.bf16.mxu0 %v868_v15  ;;  %806 = vmatprep.subr.bf16.mxu1 %v868_v15 }
  0x3e   : > { %784 = vmatpush3.bf16.msra.mxu0 %v869_v18  ;;  %814 = vmatpush3.bf16.msra.mxu1 %v869_v18 }
  0x3f   : > { %785 = vmatprep.subr.bf16.mxu0 %v870_v19  ;;  %807 = vmatprep.subr.bf16.mxu1 %v870_v19 }
  0x42   : > { %786 = vmatpush3.bf16.msra.mxu0 %v871_v20  ;;  %815 = vmatpush3.bf16.msra.mxu1 %v871_v20 }
  0x43   : > { %787 = vmatprep.subr.bf16.mxu0 %v872_v21  ;;  %808 = vmatprep.subr.bf16.mxu1 %v872_v21 }
  0x46   : > { %788 = vmatpush3.bf16.msra.mxu0 %v873_v22  ;;  %816 = vmatpush3.bf16.msra.mxu1 %v873_v22 }
  0x49   : > { %539 = vmatmul.mubr.bf16.vlgmr.msra.gmra.mrb[0].mxu0 %v874_v23  ;;  %547 = vmatmul.mubr.bf16.vlgmr.msra.gmra.mrb[0].mxu1 %v877_v24 }
 0x11c   : > { %v789_v25 = vpop.f32.mrb[0].mxu0  ;;  %v795_v26 = vpop.f32.mrb[0].mxu1 }
 0x11d   : > { %v790_v28 = vpop.f32.mrb[1].mxu0  ;;  %v796_v30 = vpop.f32.mrb[1].mxu1 }
 0x11e   : > { %v791_v31 = vadd.f32 %v790_v28, %v789_v25  ;;  %v797_v32 = vadd.f32 %v796_v30, %v795_v26  ;;  %v792_v33 = vpop.f32.mrb[2].mxu0  ;;  %v798_v34 = vpop.f32.mrb[2].mxu1  ;;  %566 = sbr.rel (%p765_p11) target bundleno = 309 (0x135), region = 82 }
 0x11f   : > { %v793_v36 = vpop.f32.mrb[3].mxu0  ;;  %v799_v38 = vpop.f32.mrb[3].mxu1 }
 0x120   : > { %v555_v39 = vadd.f32 %v791_v31, %v350_v27  ;;  %v557_v40 = vadd.f32 %v797_v32, %v352_v29  ;;  %v794_v41 = vadd.f32 %v793_v36, %v792_v33  ;;  %v800_v42 = vadd.f32 %v799_v38, %v798_v34 }
 0x122   : > { %559 = vst [vmem:[%s1107_s4] sm:$0xff] %v555_v39  ;;  %561 = vst [vmem:[%s1107_s4 + $0x10] sm:$0xff] %v557_v40  ;;  %v556_v43 = vadd.f32 %v794_v41, %v351_v35  ;;  %v558_v44 = vadd.f32 %v800_v42, %v353_v37 }
 0x124   : > { %560 = vst [vmem:[%s1107_s4 + $0x8] sm:$0xff] %v556_v43  ;;  %562 = vst [vmem:[%s1107_s4 + $0x18] sm:$0xff] %v558_v44 }
 0x129   : > { %v567_v45 = vld [vmem:[%s1107_s4] sm:$0xff]  ;;  %v569_v50 = vld [vmem:[%s1107_s4 + $0x10] sm:$0xff] }
 0x12a   : > { %v578_v48 = vmul.f32 %v766_v46, %v567_v45  ;;  %v580_v53 = vmul.f32 %v766_v46, %v569_v50 }
 0x12b   : > { %v568_v49 = vld [vmem:[%s1107_s4 + $0x8] sm:$0xff]  ;;  %v570_v51 = vld [vmem:[%s1107_s4 + $0x18] sm:$0xff] }
 0x12c   : > { %v579_v52 = vmul.f32 %v766_v46, %v568_v49  ;;  %v581_v54 = vmul.f32 %v766_v46, %v570_v51  ;;  %v589_v55 = vadd.f32 %v767_v47, %v578_v48  ;;  %v591_v57 = vadd.f32 %v767_v47, %v580_v53 }
 0x12e   : > { %v590_v56 = vadd.f32 %v767_v47, %v579_v52  ;;  %v592_v58 = vadd.f32 %v767_v47, %v581_v54  ;;  %vm593_vm0 = vcmp.ge.f32.partialorder %v589_v55, 0.0  ;;  %v597_v59 = vmul.f32 0.2, %v589_v55 }
 0x12f   : > { %vm595_vm2 = vcmp.ge.f32.partialorder %v591_v57, 0.0  ;;  %v599_v61 = vmul.f32 0.2, %v591_v57 }
 0x130   : > { %vm594_vm1 = vcmp.ge.f32.partialorder %v590_v56, 0.0  ;;  %v598_v60 = vmul.f32 0.2, %v590_v56  ;;  %v601_v62 = vsel %vm593_vm0, %v589_v55, %v597_v59  ;;  %vm596_vm3 = vcmp.ge.f32.partialorder %v592_v58, 0.0 }
 0x131   : > { %v600_v63 = vmul.f32 0.2, %v592_v58  ;;  %605 = vst [vmem:[%s1107_s4] sm:$0xff] %v601_v62  ;;  %v603_v1 = vsel %vm595_vm2, %v591_v57, %v599_v61 }
 0x132   : > { %v602_v0 = vsel %vm594_vm1, %v590_v56, %v598_v60  ;;  %607 = vst [vmem:[%s1107_s4 + $0x10] sm:$0xff] %v603_v1 }
 0x133   : > { %606 = vst [vmem:[%s1107_s4 + $0x8] sm:$0xff] %v602_v0  ;;  %v604_v2 = vsel %vm596_vm3, %v592_v58, %v600_v63 }
 0x134   : > { %608 = vst [vmem:[%s1107_s4 + $0x18] sm:$0xff] %v604_v2 }
 0x135 PF: > { %s14_s19 = sadd.s32 1, %s918_s19   ;;  %s1108_s15 = smov %s906_s16 }
 0x136   : > { %p11_p12 = scmp.ge.s32.totalorder %s14_s19, 10   ;;  %s1109_s16 = smov %s981_s23 }
 0x137   : > { %s1110_s17 = smov %s914_s18  ;;  %s1111_s18 = smov %s1113_s20 }
 0x138   :  { %13 = sbr.rel (!%p11_p12) target bundleno = 3 (0x3), region = 126 }

// kernel: discriminator_forward.13
= control target key start
LH: loop header
LB: loop body
LE: loop exit
PB: predicated region body
PF: predicated region fallthrough
CT: control target
= control target key end

     0   :  { %s977_s15 = smov 0   ;;  %s979_s16 = smov 0   ;;  %s1195_s0 = inlined_call_operand.vmem [shape: bf16[32,1152], index: 0, kind: input, shape index: {}]   ;;  %s1196_s1 = inlined_call_operand.vmem [shape: bf16[1152,256], index: 1, kind: input, shape index: {}]   ;;  %s1197_s2 = inlined_call_operand.vmem [shape: f32[1,256], index: 2, kind: input, shape index: {}]   ;;  %s1198_s3 = inlined_call_operand.vmem [shape: f32[1,256], index: 3, kind: input, shape index: {}]   ;;  %s1199_s4 = inlined_call_operand.vmem [shape: f32[32,256], index: 4, kind: output, shape index: {}]  }
   0x1   :  { %s981_s17 = smov 0   ;;  %s983_s18 = smov 0  }
   0x2   :  { %s985_s19 = smov 0  }
   0x3 LB: > { %s26_s20 = sadd.s32 1, %s944_s18  ;;  %p49_p1 = scmp.ne.s32.totalorder %s936_s16, %s932_s15  ;;  %s948_s19 = sphi %s985_s19, %s14_s19   ;;  %s944_s18 = sphi %s983_s18, %s1203_s18   ;;  %s940_s17 = sphi %s981_s17, %s1202_s17   ;;  %s936_s16 = sphi %s979_s16, %s1201_s16   ;;  %s932_s15 = sphi %s977_s15, %s1200_s15  }
   0x4   : > { %p27_p0 = scmp.ge.s32.totalorder %s26_s20, 9  ;;  %p50_p2 = scmp.eq.s32.totalorder %s948_s19, 0 }
   0x5   : > { %s42_s22 = sadd.s32 1, %s936_s16  ;;  %p793_p5 = scmp.ge.s32.totalorder %s948_s19, 9 }
   0x6   : > { %s1205_s20 = smov (%p27_p0, %s26_s20), 0  ;;  %p51_p3 = por %p50_p2, %p49_p1 }
   0x7   : > { %s38_s21 = ssub.s32 %s944_s18, %s1205_s20  ;;  %199 = sbr.rel (%p793_p5) target bundleno = 21 (0x15), region = 24 }
   0x8   : > { %p40_p4 = scmp.eq.s32.totalorder %s38_s21, 0 }
   0xa   : > { %s1012_s23 = scalar_select %p40_p4, %s936_s16, %s42_s22  }
   0xe   : > { %202 = sbr.rel (!%p51_p3) target bundleno = 21 (0x15), region = 28  ;;  %s204_s24 = sand.u32 (%p51_p3), 1, %s936_s16  }
   0xf   : > { %s795_s25 = sshll.u32 (%p51_p3), %s944_s18, 2  ;;  %s794_s26 = sshll.u32 (%p51_p3), %s204_s24, 4 }
  0x10   : > { %s211_s29 = scalar_lea.vmem (%p51_p3), %s1195_s0, %s795_s25  ;;  %s206_s30 = scalar_lea.vmem (%p51_p3), [#allocation2], %s794_s26 }
  0x11   : > { %v227_v0 = vld [vmem:[%s211_s29] sm:$0xf] (%p51_p3)  ;;  %v229_v1 = vld [vmem:[%s211_s29 + $0x24] sm:$0xf] (%p51_p3)  ;;  %v231_v2 = vld [vmem:[%s211_s29 + $0x48] sm:$0xf] (%p51_p3) }
  0x12   : > { %228 = vst [vmem:[%s206_s30] sm:$0xf] (%p51_p3), %v227_v0  ;;  %230 = vst [vmem:[%s206_s30 + $0x4] sm:$0xf] (%p51_p3), %v229_v1  ;;  %v233_v3 = vld [vmem:[%s211_s29 + $0x6c] sm:$0xf] (%p51_p3) }
  0x13   : > { %232 = vst [vmem:[%s206_s30 + $0x8] sm:$0xf] (%p51_p3), %v231_v2  ;;  %234 = vst [vmem:[%s206_s30 + $0xc] sm:$0xf] (%p51_p3), %v233_v3 }
  0x15 PF: > { %p796_p6 = scmp.ge.s32.totalorder %s948_s19, 1  ;;  %p279_p7 = scmp.lt.s32.totalorder %s948_s19, 10 }
  0x17   : > { %p280_p8 = pnand %p796_p6, %p279_p7 }
  0x18   : > { %s286_s5 = sand.u32 (!%p280_p8), 1, %s932_s15   ;;  %s798_s6 = sshll.u32 (!%p280_p8), %s940_s17, 4 }
  0x19   : > { %283 = sbr.rel (%p280_p8) target bundleno = 309 (0x135), region = 73  ;;  %s1024_s7 = sshll.u32 (!%p280_p8), %s286_s5, 4 }
  0x1a   : > { %p337_p9 = scmp.lt.s32.totalorder (!%p280_p8), %s798_s6, 143  ;;  %s288_s12 = scalar_lea.vmem (!%p280_p8), [#allocation2], %s1024_s7 }
  0x1b   : > { %p801_p10 = scmp.ne.s32.totalorder (!%p280_p8), %s940_s17, 0 }
  0x20   : > { %s1207_s6 = smov (!%p337_p9, %s798_s6), 143  ;;  %373 = sbr.rel (%p801_p10) target bundleno = 39 (0x27), region = 81 }
  0x21   : > { %s825_s8 = sshll.u32 %s1207_s6, 3  ;;  %v950_v4 = vmov (!%p801_p10), 0.0  }
  0x22   : > { %s1029_s11 = scalar_lea.vmem %s1196_s1, %s825_s8  ;;  %374 = vst [vmem:[%s1199_s4] sm:$0xff] (!%p801_p10), %v950_v4  ;;  %375 = vst [vmem:[%s1199_s4 + $0x8] sm:$0xff] (!%p801_p10), %v950_v4 }
  0x23   : > { %376 = vst [vmem:[%s1199_s4 + $0x10] sm:$0xff] (!%p801_p10), %v950_v4  ;;  %377 = vst [vmem:[%s1199_s4 + $0x18] sm:$0xff] (!%p801_p10), %v950_v4 }
  0x24   : > { %378 = vst [vmem:[%s1199_s4 + $0x20] sm:$0xff] (!%p801_p10), %v950_v4  ;;  %379 = vst [vmem:[%s1199_s4 + $0x28] sm:$0xff] (!%p801_p10), %v950_v4 }
  0x25   : > { %380 = vst [vmem:[%s1199_s4 + $0x30] sm:$0xff] (!%p801_p10), %v950_v4  ;;  %381 = vst [vmem:[%s1199_s4 + $0x38] sm:$0xff] (!%p801_p10), %v950_v4 }
  0x27 PF: > { %v884_v5 = vld [vmem:[%s1029_s11 + $0x4] ss:$8 sps:$4 sm:$0xff]   ;;  %v886_v6 = vld [vmem:[%s1029_s11] ss:$8 sps:$4 sm:$0xff]   ;;  %v951_v7 = vmov 0   ;;  %p820_p11 = scmp.ne.s32.totalorder %s940_s17, 8 }
  0x28   : > { %534 = vmatprep.mubr.bf16.mxu0 %v951_v7  ;;  %544 = vmatprep.mubr.bf16.mxu1 %v951_v7  ;;  %v887_v8 = vld [vmem:[%s1029_s11 + $0x14] ss:$8 sps:$4 sm:$0xff]   ;;  %v889_v9 = vld [vmem:[%s1029_s11 + $0x10] ss:$8 sps:$4 sm:$0xff]   ;;  %v890_v10 = vld [vmem:[%s1029_s11 + $0x24] ss:$8 sps:$4 sm:$0xff]   ;;  %v585_v48 = vlaneseq (!%p820_p11) }
  0x29   : > { %502 = vmatprep.subr.bf16.mxu0 %v884_v5  ;;  %826 = vmatprep.subr.bf16.mxu1 %v884_v5  ;;  %v892_v11 = vld [vmem:[%s1029_s11 + $0x20] ss:$8 sps:$4 sm:$0xff]   ;;  %v893_v12 = vld [vmem:[%s1029_s11 + $0x34] ss:$8 sps:$4 sm:$0xff]   ;;  %v895_v13 = vld [vmem:[%s1029_s11 + $0x30] ss:$8 sps:$4 sm:$0xff]  }
  0x2a   : > { %503 = vmatpush1.bf16.msra.mxu0 %v886_v6  ;;  %834 = vmatpush1.bf16.msra.mxu1 %v886_v6  ;;  %v896_v14 = vld [vmem:[%s1029_s11 + $0x44] ss:$8 sps:$4 sm:$0xff]   ;;  %v898_v15 = vld [vmem:[%s1029_s11 + $0x40] ss:$8 sps:$4 sm:$0xff]   ;;  %v899_v16 = vld [vmem:[%s1029_s11 + $0x54] ss:$8 sps:$4 sm:$0xff]  }
  0x2b   : > { %504 = vmatprep.subr.bf16.mxu0 %v887_v8  ;;  %827 = vmatprep.subr.bf16.mxu1 %v887_v8  ;;  %v901_v17 = vld [vmem:[%s1029_s11 + $0x50] ss:$8 sps:$4 sm:$0xff]   ;;  %v902_v18 = vld [vmem:[%s1029_s11 + $0x64] ss:$8 sps:$4 sm:$0xff]   ;;  %v904_v19 = vld [vmem:[%s1029_s11 + $0x60] ss:$8 sps:$4 sm:$0xff]  }
  0x2c   : > { %v905_v20 = vld [vmem:[%s1029_s11 + $0x74] ss:$8 sps:$4 sm:$0xff]   ;;  %v907_v21 = vld [vmem:[%s1029_s11 + $0x70] ss:$8 sps:$4 sm:$0xff]   ;;  %v382_v24 = vld [vmem:[%s1199_s4] sm:$0xff]  ;;  %v586_v49 = vshrl.u32 (!%p820_p11), %v585_v48, 7 }
  0x2d   : > { %v908_v22 = vld [vmem:[%s288_s12] sm:$0xff]   ;;  %v909_v23 = vld [vmem:[%s288_s12 + $0x8] sm:$0xff]  }
  0x2e   : > { %505 = vmatpush1.bf16.msra.mxu0 %v889_v9  ;;  %835 = vmatpush1.bf16.msra.mxu1 %v889_v9  ;;  %v386_v25 = vld [vmem:[%s1199_s4 + $0x20] sm:$0xff]  ;;  %v383_v26 = vld [vmem:[%s1199_s4 + $0x8] sm:$0xff]  ;;  %v384_v30 = vld [vmem:[%s1199_s4 + $0x10] sm:$0xff]  ;;  %v587_v53 = vsub.s32 (!%p820_p11), 0, %v586_v49  ;;  %v591_v55 = vsub.s32 (!%p820_p11), 1, %v586_v49 }
  0x2f   : > { %506 = vmatprep.subr.bf16.mxu0 %v890_v10  ;;  %828 = vmatprep.subr.bf16.mxu1 %v890_v10  ;;  %v387_v27 = vld [vmem:[%s1199_s4 + $0x28] sm:$0xff]  ;;  %v388_v31 = vld [vmem:[%s1199_s4 + $0x30] sm:$0xff]  ;;  %v385_v36 = vld [vmem:[%s1199_s4 + $0x18] sm:$0xff] }
  0x30   : > { %v389_v37 = vld [vmem:[%s1199_s4 + $0x38] sm:$0xff]  ;;  %v583_v50 = vld [vmem:[%s1197_s2] sm:$0x3] (!%p820_p11) }
  0x31   : > { %v603_v51 = vld [vmem:[%s1198_s3] sm:$0x3] (!%p820_p11)  ;;  %v588_v59 = vrot.slane (!%p820_p11), %v583_v50, %v587_v53  ;;  %v592_v61 = vrot.slane (!%p820_p11), %v583_v50, %v591_v55 }
  0x32   : > { %507 = vmatpush1.bf16.msra.mxu0 %v892_v11  ;;  %836 = vmatpush1.bf16.msra.mxu1 %v892_v11  ;;  %v608_v60 = vrot.slane (!%p820_p11), %v603_v51, %v587_v53  ;;  %v612_v62 = vrot.slane (!%p820_p11), %v603_v51, %v591_v55 }
  0x33   : > { %508 = vmatprep.subr.bf16.mxu0 %v893_v12  ;;  %829 = vmatprep.subr.bf16.mxu1 %v893_v12 }
  0x36   : > { %509 = vmatpush1.bf16.msra.mxu0 %v895_v13  ;;  %837 = vmatpush1.bf16.msra.mxu1 %v895_v13 }
  0x37   : > { %510 = vmatprep.subr.bf16.mxu0 %v896_v14  ;;  %830 = vmatprep.subr.bf16.mxu1 %v896_v14 }
  0x3a   : > { %511 = vmatpush1.bf16.msra.mxu0 %v898_v15  ;;  %838 = vmatpush1.bf16.msra.mxu1 %v898_v15 }
  0x3b   : > { %512 = vmatprep.subr.bf16.mxu0 %v899_v16  ;;  %831 = vmatprep.subr.bf16.mxu1 %v899_v16 }
  0x3e   : > { %513 = vmatpush1.bf16.msra.mxu0 %v901_v17  ;;  %839 = vmatpush1.bf16.msra.mxu1 %v901_v17 }
  0x3f   : > { %514 = vmatprep.subr.bf16.mxu0 %v902_v18  ;;  %832 = vmatprep.subr.bf16.mxu1 %v902_v18 }
  0x42   : > { %515 = vmatpush1.bf16.msra.mxu0 %v904_v19  ;;  %840 = vmatpush1.bf16.msra.mxu1 %v904_v19 }
  0x43   : > { %516 = vmatprep.subr.bf16.mxu0 %v905_v20  ;;  %833 = vmatprep.subr.bf16.mxu1 %v905_v20 }
  0x46   : > { %517 = vmatpush1.bf16.msra.mxu0 %v907_v21  ;;  %841 = vmatpush1.bf16.msra.mxu1 %v907_v21 }
  0x49   : > { %535 = vmatmul.mubr.bf16.vlgmr.msra.gmra.mrb[0].mxu0 %v908_v22  ;;  %545 = vmatmul.mubr.bf16.vlgmr.msra.gmra.mrb[0].mxu1 %v909_v23 }
 0x11c   : > { %v536_v28 = vpop.f32.mrb[0].mxu0  ;;  %v546_v29 = vpop.f32.mrb[0].mxu1  ;;  %574 = sbr.rel (%p820_p11) target bundleno = 309 (0x135), region = 85 }
 0x11d   : > { %v555_v32 = vadd.f32 %v536_v28, %v382_v24  ;;  %v559_v33 = vadd.f32 %v546_v29, %v386_v25  ;;  %v538_v34 = vpop.f32.mrb[1].mxu0  ;;  %v548_v35 = vpop.f32.mrb[1].mxu1 }
 0x11e   : > { %v556_v38 = vadd.f32 %v538_v34, %v383_v26  ;;  %v560_v39 = vadd.f32 %v548_v35, %v387_v27  ;;  %v540_v40 = vpop.f32.mrb[2].mxu0  ;;  %v550_v41 = vpop.f32.mrb[2].mxu1 }
 0x11f   : > { %563 = vst [vmem:[%s1199_s4] sm:$0xff] %v555_v32  ;;  %567 = vst [vmem:[%s1199_s4 + $0x20] sm:$0xff] %v559_v33  ;;  %v557_v42 = vadd.f32 %v540_v40, %v384_v30  ;;  %v561_v43 = vadd.f32 %v550_v41, %v388_v31  ;;  %v542_v44 = vpop.f32.mrb[3].mxu0  ;;  %v552_v45 = vpop.f32.mrb[3].mxu1 }
 0x120   : > { %564 = vst [vmem:[%s1199_s4 + $0x8] sm:$0xff] %v556_v38  ;;  %568 = vst [vmem:[%s1199_s4 + $0x28] sm:$0xff] %v560_v39  ;;  %v558_v46 = vadd.f32 %v542_v44, %v385_v36  ;;  %v562_v47 = vadd.f32 %v552_v45, %v389_v37 }
 0x121   : > { %565 = vst [vmem:[%s1199_s4 + $0x10] sm:$0xff] %v557_v42  ;;  %569 = vst [vmem:[%s1199_s4 + $0x30] sm:$0xff] %v561_v43 }
 0x122   : > { %566 = vst [vmem:[%s1199_s4 + $0x18] sm:$0xff] %v558_v46  ;;  %570 = vst [vmem:[%s1199_s4 + $0x38] sm:$0xff] %v562_v47 }
 0x126   : > { %v575_v52 = vld [vmem:[%s1199_s4] sm:$0xff] }
 0x127   : > { %v576_v54 = vld [vmem:[%s1199_s4 + $0x8] sm:$0xff]  ;;  %v579_v58 = vld [vmem:[%s1199_s4 + $0x20] sm:$0xff]  ;;  %v595_v2 = vmul.f32 %v588_v59, %v575_v52 }
 0x128   : > { %v577_v56 = vld [vmem:[%s1199_s4 + $0x10] sm:$0xff]  ;;  %v580_v63 = vld [vmem:[%s1199_s4 + $0x28] sm:$0xff]  ;;  %v596_v3 = vmul.f32 %v592_v61, %v576_v54  ;;  %v599_v6 = vmul.f32 %v588_v59, %v579_v58 }
 0x129   : > { %v578_v57 = vld [vmem:[%s1199_s4 + $0x18] sm:$0xff]  ;;  %v581_v0 = vld [vmem:[%s1199_s4 + $0x30] sm:$0xff]  ;;  %v597_v4 = vmul.f32 %v588_v59, %v577_v56  ;;  %v600_v7 = vmul.f32 %v592_v61, %v580_v63  ;;  %v615_v10 = vadd.f32 %v608_v60, %v595_v2 }
 0x12a   : > { %v582_v1 = vld [vmem:[%s1199_s4 + $0x38] sm:$0xff]  ;;  %v598_v5 = vmul.f32 %v592_v61, %v578_v57  ;;  %v601_v8 = vmul.f32 %v588_v59, %v581_v0  ;;  %v616_v11 = vadd.f32 %v612_v62, %v596_v3  ;;  %v619_v14 = vadd.f32 %v608_v60, %v599_v6 }
 0x12b   : > { %v602_v9 = vmul.f32 %v592_v61, %v582_v1  ;;  %v617_v12 = vadd.f32 %v608_v60, %v597_v4  ;;  %v620_v15 = vadd.f32 %v612_v62, %v600_v7  ;;  %vm623_vm0 = vcmp.ge.f32.partialorder %v615_v10, 0.0 }
 0x12c   : > { %v618_v13 = vadd.f32 %v612_v62, %v598_v5  ;;  %v621_v16 = vadd.f32 %v608_v60, %v601_v8  ;;  %v631_v18 = vmul.f32 0.2, %v615_v10  ;;  %vm624_vm1 = vcmp.ge.f32.partialorder %v616_v11, 0.0 }
 0x12d   : > { %v622_v17 = vadd.f32 %v612_v62, %v602_v9  ;;  %v632_v19 = vmul.f32 0.2, %v616_v11  ;;  %vm625_vm2 = vcmp.ge.f32.partialorder %v617_v12, 0.0  ;;  %v633_v20 = vmul.f32 0.2, %v617_v12 }
 0x12e   : > { %vm626_vm3 = vcmp.ge.f32.partialorder %v618_v13, 0.0  ;;  %v634_v21 = vmul.f32 0.2, %v618_v13  ;;  %v639_v22 = vsel %vm623_vm0, %v615_v10, %v631_v18  ;;  %vm627_vm4 = vcmp.ge.f32.partialorder %v619_v14, 0.0 }
 0x12f   : > { %v640_v23 = vsel %vm624_vm1, %v616_v11, %v632_v19  ;;  %v635_v24 = vmul.f32 0.2, %v619_v14  ;;  %647 = vst [vmem:[%s1199_s4] sm:$0xff] %v639_v22  ;;  %v641_v25 = vsel %vm625_vm2, %v617_v12, %v633_v20  ;;  %vm628_vm5 = vcmp.ge.f32.partialorder %v620_v15, 0.0 }
 0x130   : > { %648 = vst [vmem:[%s1199_s4 + $0x8] sm:$0xff] %v640_v23  ;;  %v642_v26 = vsel %vm626_vm3, %v618_v13, %v634_v21  ;;  %v636_v27 = vmul.f32 0.2, %v620_v15  ;;  %649 = vst [vmem:[%s1199_s4 + $0x10] sm:$0xff] %v641_v25  ;;  %vm629_vm6 = vcmp.ge.f32.partialorder %v621_v16, 0.0  ;;  %vm630_vm7 = vcmp.ge.f32.partialorder %v622_v17, 0.0 }
 0x131   : > { %650 = vst [vmem:[%s1199_s4 + $0x18] sm:$0xff] %v642_v26  ;;  %v643_v28 = vsel %vm627_vm4, %v619_v14, %v635_v24  ;;  %v637_v29 = vmul.f32 0.2, %v621_v16  ;;  %v638_v31 = vmul.f32 0.2, %v622_v17 }
 0x132   : > { %651 = vst [vmem:[%s1199_s4 + $0x20] sm:$0xff] %v643_v28  ;;  %v644_v30 = vsel %vm628_vm5, %v620_v15, %v636_v27 }
 0x133   : > { %652 = vst [vmem:[%s1199_s4 + $0x28] sm:$0xff] %v644_v30  ;;  %v645_v32 = vsel %vm629_vm6, %v621_v16, %v637_v29  ;;  %v646_v33 = vsel %vm630_vm7, %v622_v17, %v638_v31 }
 0x134   : > { %653 = vst [vmem:[%s1199_s4 + $0x30] sm:$0xff] %v645_v32  ;;  %654 = vst [vmem:[%s1199_s4 + $0x38] sm:$0xff] %v646_v33 }
 0x135 PF: > { %s14_s19 = sadd.s32 1, %s948_s19   ;;  %s1200_s15 = smov %s936_s16 }
 0x136   : > { %p11_p12 = scmp.ge.s32.totalorder %s14_s19, 11   ;;  %s1201_s16 = smov %s1012_s23 }
 0x137   : > { %s1202_s17 = smov %s944_s18  ;;  %s1203_s18 = smov %s1205_s20 }
 0x138   :  { %13 = sbr.rel (!%p11_p12) target bundleno = 3 (0x3), region = 129 }

// kernel: discriminator_forward.14
= control target key start
LH: loop header
LB: loop body
LE: loop exit
PB: predicated region body
PF: predicated region fallthrough
CT: control target
= control target key end

     0   :  { %s1027_s15 = smov 0   ;;  %s1029_s16 = smov 0   ;;  %s1201_s0 = inlined_call_operand.vmem [shape: bf16[16,4096], index: 0, kind: input, shape index: {}]   ;;  %s1202_s1 = inlined_call_operand.vmem [shape: bf16[4096,256], index: 1, kind: input, shape index: {}]   ;;  %s1203_s2 = inlined_call_operand.vmem [shape: f32[1,256], index: 2, kind: input, shape index: {}]   ;;  %s1204_s3 = inlined_call_operand.vmem [shape: f32[1,256], index: 3, kind: input, shape index: {}]   ;;  %s1205_s4 = inlined_call_operand.vmem [shape: f32[16,256], index: 4, kind: output, shape index: {}]  }
   0x1   :  { %s1031_s17 = smov 0   ;;  %s1033_s18 = smov 0  }
   0x2   :  { %s1035_s19 = smov 0  }
   0x3 LB: > { %s26_s20 = sadd.s32 1, %s995_s18  ;;  %p49_p1 = scmp.ne.s32.totalorder %s987_s16, %s983_s15  ;;  %s999_s19 = sphi %s1035_s19, %s14_s19   ;;  %s995_s18 = sphi %s1033_s18, %s1209_s18   ;;  %s991_s17 = sphi %s1031_s17, %s1208_s17   ;;  %s987_s16 = sphi %s1029_s16, %s1207_s16   ;;  %s983_s15 = sphi %s1027_s15, %s1206_s15  }
   0x4   : > { %p27_p0 = scmp.ge.s32.totalorder %s26_s20, 16  ;;  %p50_p2 = scmp.eq.s32.totalorder %s999_s19, 0 }
   0x5   : > { %s42_s22 = sadd.s32 1, %s987_s16  ;;  %p818_p5 = scmp.ge.s32.totalorder %s999_s19, 16 }
   0x6   : > { %s1211_s20 = smov (%p27_p0, %s26_s20), 0  ;;  %p51_p3 = por %p50_p2, %p49_p1 }
   0x7   : > { %s38_s21 = ssub.s32 %s995_s18, %s1211_s20  ;;  %199 = sbr.rel (%p818_p5) target bundleno = 21 (0x15), region = 24 }
   0x8   : > { %p40_p4 = scmp.eq.s32.totalorder %s38_s21, 0 }
   0xa   : > { %s1062_s23 = scalar_select %p40_p4, %s987_s16, %s42_s22  }
   0xe   : > { %202 = sbr.rel (!%p51_p3) target bundleno = 21 (0x15), region = 28  ;;  %s204_s24 = sand.u32 (%p51_p3), 1, %s987_s16  }
   0xf   : > { %s867_s25 = sshll.u32 (%p51_p3), %s995_s18, 3  ;;  %s819_s26 = sshll.u32 (%p51_p3), %s204_s24, 4 }
  0x10   : > { %s212_s29 = scalar_lea.vmem (%p51_p3), %s1201_s0, %s867_s25  ;;  %s206_s30 = scalar_lea.vmem (%p51_p3), [#allocation2], %s819_s26 }
  0x11   : > { %v242_v0 = vld [vmem:[%s212_s29] sm:$0xff] (%p51_p3) }
  0x12   : > { %v244_v1 = vld [vmem:[%s212_s29 + $0x80] sm:$0xff] (%p51_p3)  ;;  %243 = vst [vmem:[%s206_s30] sm:$0xff] (%p51_p3), %v242_v0 }
  0x13   : > { %245 = vst [vmem:[%s206_s30 + $0x8] sm:$0xff] (%p51_p3), %v244_v1 }
  0x15 PF: > { %p822_p6 = scmp.ge.s32.totalorder %s999_s19, 1  ;;  %p265_p7 = scmp.lt.s32.totalorder %s999_s19, 17 }
  0x17   : > { %p266_p8 = pnand %p822_p6, %p265_p7 }
  0x18   : > { %s272_s5 = sand.u32 (!%p266_p8), 1, %s983_s15   ;;  %s824_s6 = sshll.u32 (!%p266_p8), %s991_s17, 5 }
  0x19   : > { %269 = sbr.rel (%p266_p8) target bundleno = 337 (0x151), region = 70  ;;  %s1074_s7 = sshll.u32 (!%p266_p8), %s272_s5, 4 }
  0x1a   : > { %p324_p9 = scmp.lt.s32.totalorder (!%p266_p8), %s824_s6, 511  ;;  %s274_s12 = scalar_lea.vmem (!%p266_p8), [#allocation2], %s1074_s7 }
  0x1b   : > { %p827_p10 = scmp.ne.s32.totalorder (!%p266_p8), %s991_s17, 0 }
  0x20   : > { %s1213_s6 = smov (!%p324_p9, %s824_s6), 511  ;;  %359 = sbr.rel (%p827_p10) target bundleno = 39 (0x27), region = 78 }
  0x21   : > { %s868_s8 = sshll.u32 %s1213_s6, 3  ;;  %v1001_v2 = vmov (!%p827_p10), 0.0  }
  0x22   : > { %s1079_s11 = scalar_lea.vmem %s1202_s1, %s868_s8  ;;  %360 = vst [vmem:[%s1205_s4] sm:$0xff] (!%p827_p10), %v1001_v2  ;;  %361 = vst [vmem:[%s1205_s4 + $0x8] sm:$0xff] (!%p827_p10), %v1001_v2 }
  0x23   : > { %362 = vst [vmem:[%s1205_s4 + $0x10] sm:$0xff] (!%p827_p10), %v1001_v2  ;;  %363 = vst [vmem:[%s1205_s4 + $0x18] sm:$0xff] (!%p827_p10), %v1001_v2 }
  0x27 PF: > { %v910_v3 = vld [vmem:[%s1079_s11 + $0x4] ss:$8 sps:$4 sm:$0xff]   ;;  %v912_v4 = vld [vmem:[%s1079_s11] ss:$8 sps:$4 sm:$0xff]   ;;  %v913_v5 = vld [vmem:[%s1079_s11 + $0x14] ss:$8 sps:$4 sm:$0xff]  }
  0x28   : > { %572 = vmatprep.subr.bf16.mxu0 %v910_v3  ;;  %v915_v6 = vld [vmem:[%s1079_s11 + $0x10] ss:$8 sps:$4 sm:$0xff]   ;;  %v916_v7 = vld [vmem:[%s1079_s11 + $0x24] ss:$8 sps:$4 sm:$0xff]   ;;  %v918_v8 = vld [vmem:[%s1079_s11 + $0x20] ss:$8 sps:$4 sm:$0xff]  }
  0x29   : > { %573 = vmatpush1.bf16.msra.mxu0 %v912_v4  ;;  %v919_v9 = vld [vmem:[%s1079_s11 + $0x34] ss:$8 sps:$4 sm:$0xff]   ;;  %v921_v10 = vld [vmem:[%s1079_s11 + $0x30] ss:$8 sps:$4 sm:$0xff]   ;;  %v922_v11 = vld [vmem:[%s1079_s11 + $0x44] ss:$8 sps:$4 sm:$0xff]  }
  0x2a   : > { %574 = vmatprep.subr.bf16.mxu0 %v913_v5  ;;  %v924_v12 = vld [vmem:[%s1079_s11 + $0x40] ss:$8 sps:$4 sm:$0xff]   ;;  %v925_v13 = vld [vmem:[%s1079_s11 + $0x54] ss:$8 sps:$4 sm:$0xff]   ;;  %v927_v14 = vld [vmem:[%s1079_s11 + $0x50] ss:$8 sps:$4 sm:$0xff]  }
  0x2b   : > { %v928_v15 = vld [vmem:[%s1079_s11 + $0x64] ss:$8 sps:$4 sm:$0xff]   ;;  %v930_v17 = vld [vmem:[%s1079_s11 + $0x60] ss:$8 sps:$4 sm:$0xff]   ;;  %v931_v18 = vld [vmem:[%s1079_s11 + $0x74] ss:$8 sps:$4 sm:$0xff]  }
  0x2c   : > { %v960_v16 = vld [vmem:[%s274_s12 + $0x4] ss:$8 sps:$4 sm:$0xff]   ;;  %v933_v19 = vld [vmem:[%s1079_s11 + $0x70] ss:$8 sps:$4 sm:$0xff]   ;;  %v936_v21 = vld [vmem:[%s1079_s11 + $0x80] ss:$8 sps:$4 sm:$0xff]  }
  0x2d   : > { %575 = vmatpush1.bf16.msra.mxu0 %v915_v6  ;;  %604 = vmatprep.mubr.bf16.mxu0 %v960_v16  ;;  %v934_v20 = vld [vmem:[%s1079_s11 + $0x84] ss:$8 sps:$4 sm:$0xff]   ;;  %v937_v22 = vld [vmem:[%s1079_s11 + $0x94] ss:$8 sps:$4 sm:$0xff]   ;;  %v939_v23 = vld [vmem:[%s1079_s11 + $0x90] ss:$8 sps:$4 sm:$0xff]  }
  0x2e   : > { %576 = vmatprep.subr.bf16.mxu0 %v916_v7  ;;  %v940_v24 = vld [vmem:[%s1079_s11 + $0xa4] ss:$8 sps:$4 sm:$0xff]   ;;  %v942_v25 = vld [vmem:[%s1079_s11 + $0xa0] ss:$8 sps:$4 sm:$0xff]   ;;  %v943_v26 = vld [vmem:[%s1079_s11 + $0xb4] ss:$8 sps:$4 sm:$0xff]  }
  0x2f   : > { %v945_v27 = vld [vmem:[%s1079_s11 + $0xb0] ss:$8 sps:$4 sm:$0xff]   ;;  %v946_v28 = vld [vmem:[%s1079_s11 + $0xc4] ss:$8 sps:$4 sm:$0xff]   ;;  %v948_v29 = vld [vmem:[%s1079_s11 + $0xc0] ss:$8 sps:$4 sm:$0xff]  }
  0x30   : > { %v949_v30 = vld [vmem:[%s1079_s11 + $0xd4] ss:$8 sps:$4 sm:$0xff]   ;;  %v951_v31 = vld [vmem:[%s1079_s11 + $0xd0] ss:$8 sps:$4 sm:$0xff]   ;;  %v952_v32 = vld [vmem:[%s1079_s11 + $0xe4] ss:$8 sps:$4 sm:$0xff]  }
  0x31   : > { %577 = vmatpush1.bf16.msra.mxu0 %v918_v8  ;;  %v954_v33 = vld [vmem:[%s1079_s11 + $0xe0] ss:$8 sps:$4 sm:$0xff]   ;;  %v955_v34 = vld [vmem:[%s1079_s11 + $0xf4] ss:$8 sps:$4 sm:$0xff]   ;;  %v957_v35 = vld [vmem:[%s1079_s11 + $0xf0] ss:$8 sps:$4 sm:$0xff]  }
  0x32   : > { %578 = vmatprep.subr.bf16.mxu0 %v919_v9  ;;  %v958_v36 = vld [vmem:[%s274_s12] ss:$8 sps:$4 sm:$0xff]   ;;  %p862_p11 = scmp.ne.s32.totalorder %s991_s17, 15 }
  0x33   : > { %v364_v37 = vld [vmem:[%s1205_s4] sm:$0xff]  ;;  %v365_v38 = vld [vmem:[%s1205_s4 + $0x8] sm:$0xff]  ;;  %v366_v40 = vld [vmem:[%s1205_s4 + $0x10] sm:$0xff]  ;;  %v633_v49 = vlaneseq (!%p862_p11) }
  0x34   : > { %v367_v43 = vld [vmem:[%s1205_s4 + $0x18] sm:$0xff]  ;;  %v631_v51 = vld [vmem:[%s1203_s2] sm:$0x3] (!%p862_p11) }
  0x35   : > { %579 = vmatpush1.bf16.msra.mxu0 %v921_v10  ;;  %v634_v50 = vshrl.u32 (!%p862_p11), %v633_v49, 7  ;;  %v647_v52 = vld [vmem:[%s1204_s3] sm:$0x3] (!%p862_p11) }
  0x36   : > { %580 = vmatprep.subr.bf16.mxu0 %v922_v11 }
  0x37   : > { %v635_v54 = vsub.s32 (!%p862_p11), 0, %v634_v50  ;;  %v639_v55 = vsub.s32 (!%p862_p11), 1, %v634_v50 }
  0x39   : > { %581 = vmatpush1.bf16.msra.mxu0 %v924_v12  ;;  %v636_v59 = vrot.slane (!%p862_p11), %v631_v51, %v635_v54  ;;  %v652_v60 = vrot.slane (!%p862_p11), %v647_v52, %v635_v54  ;;  %v640_v61 = vrot.slane (!%p862_p11), %v631_v51, %v639_v55  ;;  %v656_v62 = vrot.slane (!%p862_p11), %v647_v52, %v639_v55 }
  0x3a   : > { %582 = vmatprep.subr.bf16.mxu0 %v925_v13 }
  0x3d   : > { %583 = vmatpush1.bf16.msra.mxu0 %v927_v14 }
  0x3e   : > { %584 = vmatprep.subr.bf16.mxu0 %v928_v15 }
  0x41   : > { %585 = vmatpush1.bf16.msra.mxu0 %v930_v17 }
  0x42   : > { %586 = vmatprep.subr.bf16.mxu0 %v931_v18 }
  0x45   : > { %587 = vmatpush1.bf16.msra.mxu0 %v933_v19 }
  0x46   : > { %588 = vmatprep.subr.bf16.mxu0 %v934_v20 }
  0x49   : > { %589 = vmatpush1.bf16.msra.mxu0 %v936_v21 }
  0x4a   : > { %590 = vmatprep.subr.bf16.mxu0 %v937_v22 }
  0x4d   : > { %591 = vmatpush1.bf16.msra.mxu0 %v939_v23 }
  0x4e   : > { %592 = vmatprep.subr.bf16.mxu0 %v940_v24 }
  0x51   : > { %593 = vmatpush1.bf16.msra.mxu0 %v942_v25 }
  0x52   : > { %594 = vmatprep.subr.bf16.mxu0 %v943_v26 }
  0x55   : > { %595 = vmatpush1.bf16.msra.mxu0 %v945_v27 }
  0x56   : > { %596 = vmatprep.subr.bf16.mxu0 %v946_v28 }
  0x59   : > { %597 = vmatpush1.bf16.msra.mxu0 %v948_v29 }
  0x5a   : > { %598 = vmatprep.subr.bf16.mxu0 %v949_v30 }
  0x5d   : > { %599 = vmatpush1.bf16.msra.mxu0 %v951_v31 }
  0x5e   : > { %600 = vmatprep.subr.bf16.mxu0 %v952_v32 }
  0x61   : > { %601 = vmatpush1.bf16.msra.mxu0 %v954_v33 }
  0x62   : > { %602 = vmatprep.subr.bf16.mxu0 %v955_v34 }
  0x65   : > { %603 = vmatpush1.bf16.msra.mxu0 %v957_v35 }
  0x68   : > { %605 = vmatmul.mubr.bf16.vlgmr.msra.gmra.mrb[0].mxu0 %v958_v36 }
 0x13b   : > { %v606_v39 = vpop.f32.mrb[0].mxu0  ;;  %626 = sbr.rel (%p862_p11) target bundleno = 337 (0x151), region = 82 }
 0x13c   : > { %v615_v41 = vadd.f32 %v606_v39, %v364_v37  ;;  %v608_v42 = vpop.f32.mrb[1].mxu0 }
 0x13d   : > { %v616_v44 = vadd.f32 %v608_v42, %v365_v38  ;;  %v610_v45 = vpop.f32.mrb[2].mxu0 }
 0x13e   : > { %619 = vst [vmem:[%s1205_s4] sm:$0xff] %v615_v41  ;;  %v617_v46 = vadd.f32 %v610_v45, %v366_v40  ;;  %v612_v47 = vpop.f32.mrb[3].mxu0 }
 0x13f   : > { %620 = vst [vmem:[%s1205_s4 + $0x8] sm:$0xff] %v616_v44  ;;  %v618_v48 = vadd.f32 %v612_v47, %v367_v43 }
 0x140   : > { %621 = vst [vmem:[%s1205_s4 + $0x10] sm:$0xff] %v617_v46 }
 0x141   : > { %622 = vst [vmem:[%s1205_s4 + $0x18] sm:$0xff] %v618_v48 }
 0x145   : > { %v627_v53 = vld [vmem:[%s1205_s4] sm:$0xff] }
 0x146   : > { %v628_v56 = vld [vmem:[%s1205_s4 + $0x8] sm:$0xff]  ;;  %v643_v63 = vmul.f32 %v636_v59, %v627_v53 }
 0x147   : > { %v629_v57 = vld [vmem:[%s1205_s4 + $0x10] sm:$0xff]  ;;  %v644_v0 = vmul.f32 %v640_v61, %v628_v56 }
 0x148   : > { %v630_v58 = vld [vmem:[%s1205_s4 + $0x18] sm:$0xff]  ;;  %v645_v1 = vmul.f32 %v636_v59, %v629_v57  ;;  %v659_v3 = vadd.f32 %v652_v60, %v643_v63 }
 0x149   : > { %v646_v2 = vmul.f32 %v640_v61, %v630_v58  ;;  %v660_v4 = vadd.f32 %v656_v62, %v644_v0 }
 0x14a   : > { %v661_v5 = vadd.f32 %v652_v60, %v645_v1  ;;  %vm663_vm0 = vcmp.ge.f32.partialorder %v659_v3, 0.0  ;;  %v667_v7 = vmul.f32 0.2, %v659_v3 }
 0x14b   : > { %v662_v6 = vadd.f32 %v656_v62, %v646_v2  ;;  %vm664_vm1 = vcmp.ge.f32.partialorder %v660_v4, 0.0  ;;  %v668_v8 = vmul.f32 0.2, %v660_v4 }
 0x14c   : > { %vm665_vm2 = vcmp.ge.f32.partialorder %v661_v5, 0.0  ;;  %v669_v9 = vmul.f32 0.2, %v661_v5  ;;  %v671_v11 = vsel %vm663_vm0, %v659_v3, %v667_v7 }
 0x14d   : > { %vm666_vm3 = vcmp.ge.f32.partialorder %v662_v6, 0.0  ;;  %v670_v10 = vmul.f32 0.2, %v662_v6  ;;  %v672_v12 = vsel %vm664_vm1, %v660_v4, %v668_v8  ;;  %675 = vst [vmem:[%s1205_s4] sm:$0xff] %v671_v11 }
 0x14e   : > { %676 = vst [vmem:[%s1205_s4 + $0x8] sm:$0xff] %v672_v12  ;;  %v673_v13 = vsel %vm665_vm2, %v661_v5, %v669_v9 }
 0x14f   : > { %v674_v14 = vsel %vm666_vm3, %v662_v6, %v670_v10  ;;  %677 = vst [vmem:[%s1205_s4 + $0x10] sm:$0xff] %v673_v13 }
 0x150   : > { %678 = vst [vmem:[%s1205_s4 + $0x18] sm:$0xff] %v674_v14 }
 0x151 PF: > { %s14_s19 = sadd.s32 1, %s999_s19   ;;  %s1206_s15 = smov %s987_s16 }
 0x152   : > { %p11_p12 = scmp.ge.s32.totalorder %s14_s19, 18   ;;  %s1207_s16 = smov %s1062_s23 }
 0x153   : > { %s1208_s17 = smov %s995_s18  ;;  %s1209_s18 = smov %s1211_s20 }
 0x154   :  { %13 = sbr.rel (!%p11_p12) target bundleno = 3 (0x3), region = 126 }

// kernel: discriminator_forward.15
= control target key start
LH: loop header
LB: loop body
LE: loop exit
PB: predicated region body
PF: predicated region fallthrough
CT: control target
= control target key end

     0   :  { %s1276_s15 = smov 0   ;;  %s1278_s16 = smov 0   ;;  %s1592_s0 = inlined_call_operand.vmem [shape: bf16[16,2304], index: 0, kind: input, shape index: {}]   ;;  %s1593_s1 = inlined_call_operand.vmem [shape: bf16[2304,512], index: 1, kind: input, shape index: {}]   ;;  %s1594_s2 = inlined_call_operand.vmem [shape: f32[1,512], index: 2, kind: input, shape index: {}]   ;;  %s1595_s3 = inlined_call_operand.vmem [shape: f32[1,512], index: 3, kind: input, shape index: {}]   ;;  %s1596_s4 = inlined_call_operand.vmem [shape: f32[16,512], index: 4, kind: output, shape index: {}]  }
   0x1   :  { %s1280_s17 = smov 0   ;;  %s1282_s18 = smov 0  }
   0x2   :  { %s1284_s19 = smov 0   ;;  %s1286_s20 = smov 0  }
   0x3   :  { %s1288_s21 = smov 0   ;;  %s1290_s22 = smov 0  }
   0x4   :  { %s1292_s23 = smov 0   ;;  %s1294_s24 = smov 0  }
   0x5   :  { %s1296_s25 = smov 0  }
   0x6 LB: > { %1600 = sst [smem:[#allocation5_spill]] %s1228_s20  ;;  %s960_s26 = sadd.s32 4294967295, %s1248_s25   ;;  %s1248_s25 = sphi %s1296_s25, %s14_s25   ;;  %s1244_s24 = sphi %s1294_s24, %s1618_s24   ;;  %s1240_s23 = sphi %s1292_s23, %s1617_s23   ;;  %s1236_s22 = sphi %s1290_s22, %s1616_s22   ;;  %s1232_s21 = sphi %s1288_s21, %s1615_s21   ;;  %s1228_s20 = sphi %s1286_s20, %s1608_s20   ;;  %s1224_s19 = sphi %s1284_s19, %s1607_s19   ;;  %s1220_s18 = sphi %s1282_s18, %s1614_s18   ;;  %s1216_s17 = sphi %s1280_s17, %s1613_s17   ;;  %s1212_s16 = sphi %s1278_s16, %s1612_s16   ;;  %s1208_s15 = sphi %s1276_s15, %s1611_s15  }
   0x7   : > { %s26_s27 = sadd.s32 1, %s1240_s23  ;;  %s29_s28 = sadd.s32 1, %s1244_s24 }
   0x8   : > { %p27_p0 = scmp.ge.s32.totalorder %s26_s27, 9  ;;  %s42_s29 = sadd.s32 1, %s1228_s20 }
   0x9   : > { %p49_p1 = scmp.ne.s32.totalorder %s1228_s20, %s1224_s19  ;;  %p50_p2 = scmp.eq.s32.totalorder %s1248_s25, 0 }
   0xa   : > { %s1620_s27 = smov (%p27_p0, %s26_s27), 0  ;;  %s1622_s28 = smov (!%p27_p0, %s29_s28), %s1244_s24 }
   0xb   : > { %1601 = sst [smem:[#allocation6_spill]] %s1620_s27  ;;  %s38_s30 = ssub.s32 %s1240_s23, %s1620_s27 }
   0xc   : > { %p31_p3 = scmp.ge.s32.totalorder %s1622_s28, 2  ;;  %p40_p4 = scmp.eq.s32.totalorder %s38_s30, 0 }
   0xd   : > { %p1343_p5 = por %p50_p2, %p49_p1  ;;  %s70_s6 = sadd.s32 1, %s1220_s18 }
   0xe   : > { %s1624_s28 = smov (%p31_p3, %s1622_s28), 0  ;;  %p77_p6 = scmp.ne.s32.totalorder %s1220_s18, %s1216_s17 }
   0xf   : > { %1603 = sst [smem:[#allocation7_spill]] %s1624_s28  ;;  %s66_s8 = ssub.s32 %s1244_s24, %s1624_s28 }
  0x10   : > { %s1351_s7 = scalar_select %p40_p4, %s1228_s20, %s42_s29  }
  0x11   : > { %s67_s9 = sor.u32 %s66_s8, %s38_s30  ;;  %p148_p7 = scmp.eq.s32.totalorder %s66_s8, 0 }
  0x12   : > { %1604 = sst [smem:[#allocation8_spill]] %s1351_s7  ;;  %p68_p8 = scmp.eq.s32.totalorder %s67_s9, 0 }
  0x13   : > { %p1357_p9 = por %p77_p6, %p50_p2  ;;  %s150_s11 = sadd.s32 1, %s1212_s16 }
  0x14   : > { %p160_p10 = scmp.ne.s32.totalorder %s1212_s16, %s1208_s15  ;;  %p161_p11 = scmp.eq.s32.totalorder %s960_s26, 17 }
  0x15   : > { %s1365_s12 = scalar_select %p68_p8, %s1220_s18, %s70_s6  }
  0x16   : > { %s1368_s13 = scalar_select %p148_p7, %s1212_s16, %s150_s11  }
  0x17   : > { %p1370_p12 = por %p161_p11, %p160_p10  ;;  %p963_p13 = scmp.ge.s32.totalorder %s1248_s25, 18 }
  0x19   : > { %183 = sbr.rel (%p963_p13) target bundleno = 62 (0x3e), region = 16 }
  0x20   : > { %186 = sbr.rel (!%p1343_p5) target bundleno = 39 (0x27), region = 20  ;;  %s188_s29 = sand.u32 (%p1343_p5), 1, %s1228_s20  }
  0x21   : > { %s1019_s30 = sshll.u32 (%p1343_p5), %s1240_s23, 3  ;;  %s964_s8 = sshll.u32 (%p1343_p5), %s188_s29, 4 }
  0x22   : > { %s196_s11 = scalar_lea.vmem (%p1343_p5), %s1592_s0, %s1019_s30  ;;  %s190_s26 = scalar_lea.vmem (%p1343_p5), [#allocation2], %s964_s8 }
  0x23   : > { %v226_v0 = vld [vmem:[%s196_s11] sm:$0xff] (%p1343_p5)  ;;  %v228_v1 = vld [vmem:[%s196_s11 + $0x48] sm:$0xff] (%p1343_p5) }
  0x24   : > { %227 = vst [vmem:[%s190_s26] sm:$0xff] (%p1343_p5), %v226_v0  ;;  %229 = vst [vmem:[%s190_s26 + $0x8] sm:$0xff] (%p1343_p5), %v228_v1 }
  0x27 PF: > { %235 = sbr.rel (!%p1357_p9) target bundleno = 62 (0x3e), region = 58  ;;  %s237_s5 = sand.u32 (%p1357_p9), 1, %s1220_s18  }
  0x28   : > { %s969_s28 = sshll.u32 (%p1357_p9), %s1244_s24, 1  ;;  %s967_s27 = sshll.u32 (%p1357_p9), %s237_s5, 8 }
  0x29   : > { %s1020_s29 = sshll.u32 (%p1357_p9), %s1240_s23, 7  ;;  %s1395_s10 = scalar_lea.vmem (%p1357_p9), [#allocation3], %s967_s27 }
  0x2a   : > { %s243_s7 = sadd.s32 (%p1357_p9), %s1020_s29, %s969_s28 }
  0x2b   : > { %s971_s20 = sshll.u32 (%p1357_p9), %s243_s7, 2 }
  0x2c   : > { %s1390_s9 = scalar_lea.vmem (%p1357_p9), %s1593_s1, %s971_s20 }
  0x2d   : > { %v335_v2 = vld [vmem:[%s1390_s9] sm:$0xff] (%p1357_p9)  ;;  %v337_v3 = vld [vmem:[%s1390_s9 + $0x10] sm:$0xff] (%p1357_p9) }
  0x2e   : > { %v339_v4 = vld [vmem:[%s1390_s9 + $0x20] sm:$0xff]  ;;  %336 = vst [vmem:[%s1395_s10] sm:$0xff] %v335_v2  ;;  %338 = vst [vmem:[%s1395_s10 + $0x8] sm:$0xff] %v337_v3  ;;  %v341_v5 = vld [vmem:[%s1390_s9 + $0x30] sm:$0xff] }
  0x2f   : > { %340 = vst [vmem:[%s1395_s10 + $0x10] sm:$0xff] %v339_v4  ;;  %v343_v6 = vld [vmem:[%s1390_s9 + $0x40] sm:$0xff]  ;;  %v345_v7 = vld [vmem:[%s1390_s9 + $0x50] sm:$0xff]  ;;  %342 = vst [vmem:[%s1395_s10 + $0x18] sm:$0xff] %v341_v5 }
  0x30   : > { %344 = vst [vmem:[%s1395_s10 + $0x20] sm:$0xff] %v343_v6  ;;  %346 = vst [vmem:[%s1395_s10 + $0x28] sm:$0xff] %v345_v7  ;;  %v347_v8 = vld [vmem:[%s1390_s9 + $0x60] sm:$0xff]  ;;  %v349_v9 = vld [vmem:[%s1390_s9 + $0x70] sm:$0xff] }
  0x31   : > { %v351_v10 = vld [vmem:[%s1390_s9 + $0x80] sm:$0xff]  ;;  %348 = vst [vmem:[%s1395_s10 + $0x30] sm:$0xff] %v347_v8  ;;  %350 = vst [vmem:[%s1395_s10 + $0x38] sm:$0xff] %v349_v9  ;;  %v353_v11 = vld [vmem:[%s1390_s9 + $0x90] sm:$0xff] }
  0x32   : > { %352 = vst [vmem:[%s1395_s10 + $0x40] sm:$0xff] %v351_v10  ;;  %v355_v12 = vld [vmem:[%s1390_s9 + $0xa0] sm:$0xff]  ;;  %v357_v13 = vld [vmem:[%s1390_s9 + $0xb0] sm:$0xff]  ;;  %354 = vst [vmem:[%s1395_s10 + $0x48] sm:$0xff] %v353_v11 }
  0x33   : > { %356 = vst [vmem:[%s1395_s10 + $0x50] sm:$0xff] %v355_v12  ;;  %358 = vst [vmem:[%s1395_s10 + $0x58] sm:$0xff] %v357_v13  ;;  %v359_v14 = vld [vmem:[%s1390_s9 + $0xc0] sm:$0xff]  ;;  %v361_v15 = vld [vmem:[%s1390_s9 + $0xd0] sm:$0xff] }
  0x34   : > { %v363_v16 = vld [vmem:[%s1390_s9 + $0xe0] sm:$0xff]  ;;  %360 = vst [vmem:[%s1395_s10 + $0x60] sm:$0xff] %v359_v14  ;;  %362 = vst [vmem:[%s1395_s10 + $0x68] sm:$0xff] %v361_v15  ;;  %v365_v17 = vld [vmem:[%s1390_s9 + $0xf0] sm:$0xff] }
  0x35   : > { %364 = vst [vmem:[%s1395_s10 + $0x70] sm:$0xff] %v363_v16  ;;  %v367_v18 = vld [vmem:[%s1390_s9 + $0x100] sm:$0xff]  ;;  %v369_v19 = vld [vmem:[%s1390_s9 + $0x110] sm:$0xff]  ;;  %366 = vst [vmem:[%s1395_s10 + $0x78] sm:$0xff] %v365_v17 }
  0x36   : > { %368 = vst [vmem:[%s1395_s10 + $0x80] sm:$0xff] %v367_v18  ;;  %370 = vst [vmem:[%s1395_s10 + $0x88] sm:$0xff] %v369_v19  ;;  %v371_v20 = vld [vmem:[%s1390_s9 + $0x120] sm:$0xff]  ;;  %v373_v21 = vld [vmem:[%s1390_s9 + $0x130] sm:$0xff] }
  0x37   : > { %v375_v22 = vld [vmem:[%s1390_s9 + $0x140] sm:$0xff]  ;;  %372 = vst [vmem:[%s1395_s10 + $0x90] sm:$0xff] %v371_v20  ;;  %374 = vst [vmem:[%s1395_s10 + $0x98] sm:$0xff] %v373_v21  ;;  %v377_v23 = vld [vmem:[%s1390_s9 + $0x150] sm:$0xff] }
  0x38   : > { %376 = vst [vmem:[%s1395_s10 + $0xa0] sm:$0xff] %v375_v22  ;;  %v379_v24 = vld [vmem:[%s1390_s9 + $0x160] sm:$0xff]  ;;  %v381_v25 = vld [vmem:[%s1390_s9 + $0x170] sm:$0xff]  ;;  %378 = vst [vmem:[%s1395_s10 + $0xa8] sm:$0xff] %v377_v23 }
  0x39   : > { %380 = vst [vmem:[%s1395_s10 + $0xb0] sm:$0xff] %v379_v24  ;;  %382 = vst [vmem:[%s1395_s10 + $0xb8] sm:$0xff] %v381_v25  ;;  %v383_v26 = vld [vmem:[%s1390_s9 + $0x180] sm:$0xff]  ;;  %v385_v27 = vld [vmem:[%s1390_s9 + $0x190] sm:$0xff] }
  0x3a   : > { %v387_v28 = vld [vmem:[%s1390_s9 + $0x1a0] sm:$0xff]  ;;  %384 = vst [vmem:[%s1395_s10 + $0xc0] sm:$0xff] %v383_v26  ;;  %386 = vst [vmem:[%s1395_s10 + $0xc8] sm:$0xff] %v385_v27  ;;  %v389_v29 = vld [vmem:[%s1390_s9 + $0x1b0] sm:$0xff] }
  0x3b   : > { %388 = vst [vmem:[%s1395_s10 + $0xd0] sm:$0xff] %v387_v28  ;;  %v391_v30 = vld [vmem:[%s1390_s9 + $0x1c0] sm:$0xff]  ;;  %v393_v31 = vld [vmem:[%s1390_s9 + $0x1d0] sm:$0xff]  ;;  %390 = vst [vmem:[%s1395_s10 + $0xd8] sm:$0xff] %v389_v29 }
  0x3c   : > { %392 = vst [vmem:[%s1395_s10 + $0xe0] sm:$0xff] %v391_v30  ;;  %394 = vst [vmem:[%s1395_s10 + $0xe8] sm:$0xff] %v393_v31  ;;  %v395_v32 = vld [vmem:[%s1390_s9 + $0x1e0] sm:$0xff]  ;;  %v397_v33 = vld [vmem:[%s1390_s9 + $0x1f0] sm:$0xff] }
  0x3d   : > { %396 = vst [vmem:[%s1395_s10 + $0xf0] sm:$0xff] %v395_v32  ;;  %398 = vst [vmem:[%s1395_s10 + $0xf8] sm:$0xff] %v397_v33 }
  0x3e PF: > { %p972_p0 = scmp.ge.s32.totalorder %s1248_s25, 1  ;;  %p419_p1 = scmp.lt.s32.totalorder %s1248_s25, 19 }
  0x40   : > { %p420_p2 = pnand %p972_p0, %p419_p1 }
  0x41   : > { %s426_s20 = sand.u32 (!%p420_p2), 1, %s1224_s19   ;;  %s433_s27 = sand.u32 (!%p420_p2), 1, %s1216_s17  }
  0x42   : > { %423 = sbr.rel (%p420_p2) target bundleno = 386 (0x182), region = 104  ;;  %s1462_s28 = sshll.u32 (!%p420_p2), %s426_s20, 4 }
  0x43   : > { %s974_s7 = sshll.u32 (!%p420_p2), %s433_s27, 8  ;;  %s466_s8 = sand.u32 (!%p420_p2), 1, %s1208_s15  }
  0x44   : > { %s976_s11 = sshll.u32 (!%p420_p2), %s1236_s22, 1  ;;  %s975_s26 = sshll.u32 (!%p420_p2), %s466_s8, 5 }
  0x45   : > { %p474_p3 = scmp.lt.s32.totalorder (!%p420_p2), %s976_s11, 3  ;;  %s428_s19 = scalar_lea.vmem (!%p420_p2), [#allocation2], %s1462_s28 }
  0x46   : > { %s1477_s10 = scalar_lea.vmem (!%p420_p2), [#allocation3], %s974_s7  ;;  %s1479_s20 = scalar_lea.vmem (!%p420_p2), [#allocation4], %s975_s26 }
  0x47   : > { %p978_p4 = scmp.ne.s32.totalorder (!%p420_p2), %s1232_s21, 0 }
  0x49   : > { %s1626_s11 = smov (!%p474_p3, %s976_s11), 3  ;;  %488 = sbr.rel (%p978_p4) target bundleno = 80 (0x50), region = 116 }
  0x4a   : > { %s476_s6 = scalar_lea.vmem %s1594_s2, %s1626_s11  ;;  %s481_s17 = scalar_lea.vmem %s1595_s3, %s1626_s11  ;;  %v1250_v34 = vmov (!%p978_p4), 0.0  }
  0x4b   : > { %489 = vst [vmem:[%s1479_s20] sm:$0xff] (!%p978_p4), %v1250_v34  ;;  %490 = vst [vmem:[%s1479_s20 + $0x8] sm:$0xff] (!%p978_p4), %v1250_v34 }
  0x4c   : > { %491 = vst [vmem:[%s1479_s20 + $0x10] sm:$0xff] (!%p978_p4), %v1250_v34  ;;  %492 = vst [vmem:[%s1479_s20 + $0x18] sm:$0xff] (!%p978_p4), %v1250_v34 }
  0x50 PF: > { %v1111_v35 = vld [vmem:[%s1477_s10 + $0x4] ss:$8 sps:$4 sm:$0xff]   ;;  %v1113_v36 = vld [vmem:[%s1477_s10] ss:$8 sps:$4 sm:$0xff]   ;;  %v1114_v37 = vld [vmem:[%s1477_s10 + $0x14] ss:$8 sps:$4 sm:$0xff]  }
  0x51   : > { %701 = vmatprep.subr.bf16.mxu0 %v1111_v35  ;;  %v1116_v38 = vld [vmem:[%s1477_s10 + $0x10] ss:$8 sps:$4 sm:$0xff]   ;;  %v1117_v39 = vld [vmem:[%s1477_s10 + $0x24] ss:$8 sps:$4 sm:$0xff]   ;;  %v1119_v40 = vld [vmem:[%s1477_s10 + $0x20] ss:$8 sps:$4 sm:$0xff]  }
  0x52   : > { %702 = vmatpush1.bf16.msra.mxu0 %v1113_v36  ;;  %v1120_v41 = vld [vmem:[%s1477_s10 + $0x34] ss:$8 sps:$4 sm:$0xff]   ;;  %v1122_v42 = vld [vmem:[%s1477_s10 + $0x30] ss:$8 sps:$4 sm:$0xff]   ;;  %v1123_v43 = vld [vmem:[%s1477_s10 + $0x44] ss:$8 sps:$4 sm:$0xff]  }
  0x53   : > { %703 = vmatprep.subr.bf16.mxu0 %v1114_v37  ;;  %v1125_v44 = vld [vmem:[%s1477_s10 + $0x40] ss:$8 sps:$4 sm:$0xff]   ;;  %v1126_v45 = vld [vmem:[%s1477_s10 + $0x54] ss:$8 sps:$4 sm:$0xff]   ;;  %v1128_v46 = vld [vmem:[%s1477_s10 + $0x50] ss:$8 sps:$4 sm:$0xff]  }
  0x54   : > { %v1129_v47 = vld [vmem:[%s1477_s10 + $0x64] ss:$8 sps:$4 sm:$0xff]   ;;  %v1131_v49 = vld [vmem:[%s1477_s10 + $0x60] ss:$8 sps:$4 sm:$0xff]   ;;  %v1132_v50 = vld [vmem:[%s1477_s10 + $0x74] ss:$8 sps:$4 sm:$0xff]  }
  0x55   : > { %v1161_v48 = vld [vmem:[%s428_s19 + $0x4] ss:$8 sps:$4 sm:$0xff]   ;;  %v1134_v51 = vld [vmem:[%s1477_s10 + $0x70] ss:$8 sps:$4 sm:$0xff]   ;;  %v1137_v53 = vld [vmem:[%s1477_s10 + $0x80] ss:$8 sps:$4 sm:$0xff]  }
  0x56   : > { %704 = vmatpush1.bf16.msra.mxu0 %v1116_v38  ;;  %733 = vmatprep.mubr.bf16.mxu0 %v1161_v48  ;;  %v1135_v52 = vld [vmem:[%s1477_s10 + $0x84] ss:$8 sps:$4 sm:$0xff]   ;;  %v1138_v54 = vld [vmem:[%s1477_s10 + $0x94] ss:$8 sps:$4 sm:$0xff]   ;;  %v1140_v55 = vld [vmem:[%s1477_s10 + $0x90] ss:$8 sps:$4 sm:$0xff]  }
  0x57   : > { %705 = vmatprep.subr.bf16.mxu0 %v1117_v39  ;;  %v1141_v56 = vld [vmem:[%s1477_s10 + $0xa4] ss:$8 sps:$4 sm:$0xff]   ;;  %v1143_v57 = vld [vmem:[%s1477_s10 + $0xa0] ss:$8 sps:$4 sm:$0xff]   ;;  %v1144_v58 = vld [vmem:[%s1477_s10 + $0xb4] ss:$8 sps:$4 sm:$0xff]  }
  0x58   : > { %v1146_v59 = vld [vmem:[%s1477_s10 + $0xb0] ss:$8 sps:$4 sm:$0xff]   ;;  %v1147_v60 = vld [vmem:[%s1477_s10 + $0xc4] ss:$8 sps:$4 sm:$0xff]   ;;  %v1149_v61 = vld [vmem:[%s1477_s10 + $0xc0] ss:$8 sps:$4 sm:$0xff]  }
  0x59   : > { %v1150_v62 = vld [vmem:[%s1477_s10 + $0xd4] ss:$8 sps:$4 sm:$0xff]   ;;  %v1152_v63 = vld [vmem:[%s1477_s10 + $0xd0] ss:$8 sps:$4 sm:$0xff]   ;;  %v1153_v0 = vld [vmem:[%s1477_s10 + $0xe4] ss:$8 sps:$4 sm:$0xff]  }
  0x5a   : > { %706 = vmatpush1.bf16.msra.mxu0 %v1119_v40  ;;  %v1155_v1 = vld [vmem:[%s1477_s10 + $0xe0] ss:$8 sps:$4 sm:$0xff]   ;;  %v1156_v2 = vld [vmem:[%s1477_s10 + $0xf4] ss:$8 sps:$4 sm:$0xff]   ;;  %v1158_v3 = vld [vmem:[%s1477_s10 + $0xf0] ss:$8 sps:$4 sm:$0xff]  }
  0x5b   : > { %707 = vmatprep.subr.bf16.mxu0 %v1120_v41  ;;  %v1159_v4 = vld [vmem:[%s428_s19] ss:$8 sps:$4 sm:$0xff]   ;;  %p1013_p5 = scmp.ne.s32.totalorder %s1232_s21, 8 }
  0x5c   : > { %v493_v5 = vld [vmem:[%s1479_s20] sm:$0xff]  ;;  %v494_v6 = vld [vmem:[%s1479_s20 + $0x8] sm:$0xff]  ;;  %v495_v8 = vld [vmem:[%s1479_s20 + $0x10] sm:$0xff]  ;;  %v762_v17 = vlaneseq (!%p1013_p5) }
  0x5d   : > { %v496_v11 = vld [vmem:[%s1479_s20 + $0x18] sm:$0xff]  ;;  %v760_v19 = vld [vmem:[%s476_s6] sm:$0x3] (!%p1013_p5) }
  0x5e   : > { %708 = vmatpush1.bf16.msra.mxu0 %v1122_v42  ;;  %v763_v18 = vshrl.u32 (!%p1013_p5), %v762_v17, 7  ;;  %v776_v20 = vld [vmem:[%s481_s17] sm:$0x3] (!%p1013_p5) }
  0x5f   : > { %709 = vmatprep.subr.bf16.mxu0 %v1123_v43 }
  0x60   : > { %v764_v22 = vsub.s32 (!%p1013_p5), 0, %v763_v18  ;;  %v768_v23 = vsub.s32 (!%p1013_p5), 1, %v763_v18 }
  0x62   : > { %710 = vmatpush1.bf16.msra.mxu0 %v1125_v44  ;;  %v765_v27 = vrot.slane (!%p1013_p5), %v760_v19, %v764_v22  ;;  %v781_v28 = vrot.slane (!%p1013_p5), %v776_v20, %v764_v22  ;;  %v769_v29 = vrot.slane (!%p1013_p5), %v760_v19, %v768_v23  ;;  %v785_v30 = vrot.slane (!%p1013_p5), %v776_v20, %v768_v23 }
  0x63   : > { %711 = vmatprep.subr.bf16.mxu0 %v1126_v45 }
  0x66   : > { %712 = vmatpush1.bf16.msra.mxu0 %v1128_v46 }
  0x67   : > { %713 = vmatprep.subr.bf16.mxu0 %v1129_v47 }
  0x6a   : > { %714 = vmatpush1.bf16.msra.mxu0 %v1131_v49 }
  0x6b   : > { %715 = vmatprep.subr.bf16.mxu0 %v1132_v50 }
  0x6e   : > { %716 = vmatpush1.bf16.msra.mxu0 %v1134_v51 }
  0x6f   : > { %717 = vmatprep.subr.bf16.mxu0 %v1135_v52 }
  0x72   : > { %718 = vmatpush1.bf16.msra.mxu0 %v1137_v53 }
  0x73   : > { %719 = vmatprep.subr.bf16.mxu0 %v1138_v54 }
  0x76   : > { %720 = vmatpush1.bf16.msra.mxu0 %v1140_v55 }
  0x77   : > { %721 = vmatprep.subr.bf16.mxu0 %v1141_v56 }
  0x7a   : > { %722 = vmatpush1.bf16.msra.mxu0 %v1143_v57 }
  0x7b   : > { %723 = vmatprep.subr.bf16.mxu0 %v1144_v58 }
  0x7e   : > { %724 = vmatpush1.bf16.msra.mxu0 %v1146_v59 }
  0x7f   : > { %725 = vmatprep.subr.bf16.mxu0 %v1147_v60 }
  0x82   : > { %726 = vmatpush1.bf16.msra.mxu0 %v1149_v61 }
  0x83   : > { %727 = vmatprep.subr.bf16.mxu0 %v1150_v62 }
  0x86   : > { %728 = vmatpush1.bf16.msra.mxu0 %v1152_v63 }
  0x87   : > { %729 = vmatprep.subr.bf16.mxu0 %v1153_v0 }
  0x8a   : > { %730 = vmatpush1.bf16.msra.mxu0 %v1155_v1 }
  0x8b   : > { %731 = vmatprep.subr.bf16.mxu0 %v1156_v2 }
  0x8e   : > { %732 = vmatpush1.bf16.msra.mxu0 %v1158_v3 }
  0x91   : > { %734 = vmatmul.mubr.bf16.vlgmr.msra.gmra.mrb[0].mxu0 %v1159_v4 }
 0x164   : > { %v735_v7 = vpop.f32.mrb[0].mxu0  ;;  %755 = sbr.rel (%p1013_p5) target bundleno = 378 (0x17a), region = 120 }
 0x165   : > { %v744_v9 = vadd.f32 %v735_v7, %v493_v5  ;;  %v737_v10 = vpop.f32.mrb[1].mxu0 }
 0x166   : > { %v745_v12 = vadd.f32 %v737_v10, %v494_v6  ;;  %v739_v13 = vpop.f32.mrb[2].mxu0 }
 0x167   : > { %748 = vst [vmem:[%s1479_s20] sm:$0xff] %v744_v9  ;;  %v746_v14 = vadd.f32 %v739_v13, %v495_v8  ;;  %v741_v15 = vpop.f32.mrb[3].mxu0 }
 0x168   : > { %749 = vst [vmem:[%s1479_s20 + $0x8] sm:$0xff] %v745_v12  ;;  %v747_v16 = vadd.f32 %v741_v15, %v496_v11 }
 0x169   : > { %750 = vst [vmem:[%s1479_s20 + $0x10] sm:$0xff] %v746_v14 }
 0x16a   : > { %751 = vst [vmem:[%s1479_s20 + $0x18] sm:$0xff] %v747_v16 }
 0x16e   : > { %v756_v21 = vld [vmem:[%s1479_s20] sm:$0xff] }
 0x16f   : > { %v757_v24 = vld [vmem:[%s1479_s20 + $0x8] sm:$0xff]  ;;  %v772_v31 = vmul.f32 %v765_v27, %v756_v21 }
 0x170   : > { %v758_v25 = vld [vmem:[%s1479_s20 + $0x10] sm:$0xff]  ;;  %v773_v32 = vmul.f32 %v769_v29, %v757_v24 }
 0x171   : > { %v759_v26 = vld [vmem:[%s1479_s20 + $0x18] sm:$0xff]  ;;  %v774_v33 = vmul.f32 %v765_v27, %v758_v25  ;;  %v788_v35 = vadd.f32 %v781_v28, %v772_v31 }
 0x172   : > { %v775_v34 = vmul.f32 %v769_v29, %v759_v26  ;;  %v789_v36 = vadd.f32 %v785_v30, %v773_v32 }
 0x173   : > { %v790_v37 = vadd.f32 %v781_v28, %v774_v33  ;;  %vm792_vm0 = vcmp.ge.f32.partialorder %v788_v35, 0.0  ;;  %v796_v39 = vmul.f32 0.2, %v788_v35 }
 0x174   : > { %v791_v38 = vadd.f32 %v785_v30, %v775_v34  ;;  %vm793_vm1 = vcmp.ge.f32.partialorder %v789_v36, 0.0  ;;  %v797_v40 = vmul.f32 0.2, %v789_v36 }
 0x175   : > { %vm794_vm2 = vcmp.ge.f32.partialorder %v790_v37, 0.0  ;;  %v798_v41 = vmul.f32 0.2, %v790_v37  ;;  %v800_v43 = vsel %vm792_vm0, %v788_v35, %v796_v39 }
 0x176   : > { %vm795_vm3 = vcmp.ge.f32.partialorder %v791_v38, 0.0  ;;  %v799_v42 = vmul.f32 0.2, %v791_v38  ;;  %v801_v44 = vsel %vm793_vm1, %v789_v36, %v797_v40  ;;  %804 = vst [vmem:[%s1479_s20] sm:$0xff] %v800_v43 }
 0x177   : > { %805 = vst [vmem:[%s1479_s20 + $0x8] sm:$0xff] %v801_v44  ;;  %v802_v45 = vsel %vm794_vm2, %v790_v37, %v798_v41 }
 0x178   : > { %v803_v46 = vsel %vm795_vm3, %v791_v38, %v799_v42  ;;  %806 = vst [vmem:[%s1479_s20 + $0x10] sm:$0xff] %v802_v45 }
 0x179   : > { %807 = vst [vmem:[%s1479_s20 + $0x18] sm:$0xff] %v803_v46 }
 0x17a PF: > { %814 = sbr.rel (!%p1370_p12) target bundleno = 386 (0x182), region = 124  ;;  %s1021_s21 = sshll.u32 (%p1370_p12), %s1236_s22, 4 }
 0x17b   : > { %s820_s26 = scalar_lea.vmem (%p1370_p12), %s1596_s4, %s1021_s21 }
 0x17d   : > { %v833_v47 = vld [vmem:[%s1479_s20] sm:$0xff] (%p1370_p12) }
 0x17e   : > { %v835_v48 = vld [vmem:[%s1479_s20 + $0x8] sm:$0xff] (%p1370_p12)  ;;  %834 = vst [vmem:[%s820_s26] sm:$0xff] (%p1370_p12), %v833_v47 }
 0x17f   : > { %v837_v49 = vld [vmem:[%s1479_s20 + $0x10] sm:$0xff] (%p1370_p12)  ;;  %836 = vst [vmem:[%s820_s26 + $0x8] sm:$0xff] (%p1370_p12), %v835_v48 }
 0x180   : > { %v839_v50 = vld [vmem:[%s1479_s20 + $0x18] sm:$0xff] (%p1370_p12)  ;;  %838 = vst [vmem:[%s820_s26 + $0x20] sm:$0xff] (%p1370_p12), %v837_v49 }
 0x181   : > { %840 = vst [vmem:[%s820_s26 + $0x28] sm:$0xff] %v839_v50 }
 0x182 PF: > { %s14_s25 = sadd.s32 1, %s1248_s25   ;;  %s1607_s19 = sld [smem:[#allocation5_spill]] }
 0x183   : > { %p11_p6 = scmp.ge.s32.totalorder %s14_s25, 20   ;;  %s1608_s20 = sld [smem:[#allocation8_spill]] }
 0x184   : > { %s1609_s14 = sld [smem:[#allocation6_spill]]  ;;  %s1610_s5 = sld [smem:[#allocation7_spill]] }
 0x185   : > { %s1611_s15 = smov %s1212_s16  ;;  %s1612_s16 = smov %s1368_s13 }
 0x186   : > { %s1613_s17 = smov %s1220_s18  ;;  %s1614_s18 = smov %s1365_s12 }
 0x187   : > { %s1615_s21 = smov %s1240_s23  ;;  %s1616_s22 = smov %s1244_s24 }
 0x188   :  { %13 = sbr.rel (!%p11_p6) target bundleno = 6 (0x6), region = 192 }
 0x18a   : > { %s1617_s23 = smov %s1609_s14  ;;  %s1618_s24 = smov %s1610_s5 }

// kernel: discriminator_forward.16
= control target key start
LH: loop header
LB: loop body
LE: loop exit
PB: predicated region body
PF: predicated region fallthrough
CT: control target
= control target key end

     0   :  { %s1276_s15 = smov 0   ;;  %s1278_s16 = smov 0   ;;  %s1592_s0 = inlined_call_operand.vmem [shape: bf16[16,4608], index: 0, kind: input, shape index: {}]   ;;  %s1593_s1 = inlined_call_operand.vmem [shape: bf16[4608,512], index: 1, kind: input, shape index: {}]   ;;  %s1594_s2 = inlined_call_operand.vmem [shape: f32[1,512], index: 2, kind: input, shape index: {}]   ;;  %s1595_s3 = inlined_call_operand.vmem [shape: f32[1,512], index: 3, kind: input, shape index: {}]   ;;  %s1596_s4 = inlined_call_operand.vmem [shape: f32[16,512], index: 4, kind: output, shape index: {}]  }
   0x1   :  { %s1280_s17 = smov 0   ;;  %s1282_s18 = smov 0  }
   0x2   :  { %s1284_s19 = smov 0   ;;  %s1286_s20 = smov 0  }
   0x3   :  { %s1288_s21 = smov 0   ;;  %s1290_s22 = smov 0  }
   0x4   :  { %s1292_s23 = smov 0   ;;  %s1294_s24 = smov 0  }
   0x5   :  { %s1296_s25 = smov 0  }
   0x6 LB: > { %1600 = sst [smem:[#allocation5_spill]] %s1228_s20  ;;  %s960_s26 = sadd.s32 4294967295, %s1248_s25   ;;  %s1248_s25 = sphi %s1296_s25, %s14_s25   ;;  %s1244_s24 = sphi %s1294_s24, %s1618_s24   ;;  %s1240_s23 = sphi %s1292_s23, %s1617_s23   ;;  %s1236_s22 = sphi %s1290_s22, %s1616_s22   ;;  %s1232_s21 = sphi %s1288_s21, %s1615_s21   ;;  %s1228_s20 = sphi %s1286_s20, %s1608_s20   ;;  %s1224_s19 = sphi %s1284_s19, %s1607_s19   ;;  %s1220_s18 = sphi %s1282_s18, %s1614_s18   ;;  %s1216_s17 = sphi %s1280_s17, %s1613_s17   ;;  %s1212_s16 = sphi %s1278_s16, %s1612_s16   ;;  %s1208_s15 = sphi %s1276_s15, %s1611_s15  }
   0x7   : > { %s26_s27 = sadd.s32 1, %s1240_s23  ;;  %s29_s28 = sadd.s32 1, %s1244_s24 }
   0x8   : > { %p27_p0 = scmp.ge.s32.totalorder %s26_s27, 18  ;;  %s42_s29 = sadd.s32 1, %s1228_s20 }
   0x9   : > { %p49_p1 = scmp.ne.s32.totalorder %s1228_s20, %s1224_s19  ;;  %p50_p2 = scmp.eq.s32.totalorder %s1248_s25, 0 }
   0xa   : > { %s1620_s27 = smov (%p27_p0, %s26_s27), 0  ;;  %s1622_s28 = smov (!%p27_p0, %s29_s28), %s1244_s24 }
   0xb   : > { %1601 = sst [smem:[#allocation6_spill]] %s1620_s27  ;;  %s38_s30 = ssub.s32 %s1240_s23, %s1620_s27 }
   0xc   : > { %p31_p3 = scmp.ge.s32.totalorder %s1622_s28, 2  ;;  %p40_p4 = scmp.eq.s32.totalorder %s38_s30, 0 }
   0xd   : > { %p1343_p5 = por %p50_p2, %p49_p1  ;;  %s70_s6 = sadd.s32 1, %s1220_s18 }
   0xe   : > { %s1624_s28 = smov (%p31_p3, %s1622_s28), 0  ;;  %p77_p6 = scmp.ne.s32.totalorder %s1220_s18, %s1216_s17 }
   0xf   : > { %1603 = sst [smem:[#allocation7_spill]] %s1624_s28  ;;  %s66_s8 = ssub.s32 %s1244_s24, %s1624_s28 }
  0x10   : > { %s1351_s7 = scalar_select %p40_p4, %s1228_s20, %s42_s29  }
  0x11   : > { %s67_s9 = sor.u32 %s66_s8, %s38_s30  ;;  %p148_p7 = scmp.eq.s32.totalorder %s66_s8, 0 }
  0x12   : > { %1604 = sst [smem:[#allocation8_spill]] %s1351_s7  ;;  %p68_p8 = scmp.eq.s32.totalorder %s67_s9, 0 }
  0x13   : > { %p1357_p9 = por %p77_p6, %p50_p2  ;;  %s150_s11 = sadd.s32 1, %s1212_s16 }
  0x14   : > { %p160_p10 = scmp.ne.s32.totalorder %s1212_s16, %s1208_s15  ;;  %p161_p11 = scmp.eq.s32.totalorder %s960_s26, 35 }
  0x15   : > { %s1365_s12 = scalar_select %p68_p8, %s1220_s18, %s70_s6  }
  0x16   : > { %s1368_s13 = scalar_select %p148_p7, %s1212_s16, %s150_s11  }
  0x17   : > { %p1370_p12 = por %p161_p11, %p160_p10  ;;  %p963_p13 = scmp.ge.s32.totalorder %s1248_s25, 36 }
  0x19   : > { %183 = sbr.rel (%p963_p13) target bundleno = 62 (0x3e), region = 16 }
  0x20   : > { %186 = sbr.rel (!%p1343_p5) target bundleno = 39 (0x27), region = 20  ;;  %s188_s29 = sand.u32 (%p1343_p5), 1, %s1228_s20  }
  0x21   : > { %s1019_s30 = sshll.u32 (%p1343_p5), %s1240_s23, 3  ;;  %s964_s8 = sshll.u32 (%p1343_p5), %s188_s29, 4 }
  0x22   : > { %s196_s11 = scalar_lea.vmem (%p1343_p5), %s1592_s0, %s1019_s30  ;;  %s190_s26 = scalar_lea.vmem (%p1343_p5), [#allocation2], %s964_s8 }
  0x23   : > { %v226_v0 = vld [vmem:[%s196_s11] sm:$0xff] (%p1343_p5)  ;;  %v228_v1 = vld [vmem:[%s196_s11 + $0x90] sm:$0xff] (%p1343_p5) }
  0x24   : > { %227 = vst [vmem:[%s190_s26] sm:$0xff] (%p1343_p5), %v226_v0  ;;  %229 = vst [vmem:[%s190_s26 + $0x8] sm:$0xff] (%p1343_p5), %v228_v1 }
  0x27 PF: > { %235 = sbr.rel (!%p1357_p9) target bundleno = 62 (0x3e), region = 58  ;;  %s237_s5 = sand.u32 (%p1357_p9), 1, %s1220_s18  }
  0x28   : > { %s969_s28 = sshll.u32 (%p1357_p9), %s1244_s24, 1  ;;  %s967_s27 = sshll.u32 (%p1357_p9), %s237_s5, 8 }
  0x29   : > { %s1020_s29 = sshll.u32 (%p1357_p9), %s1240_s23, 7  ;;  %s1395_s10 = scalar_lea.vmem (%p1357_p9), [#allocation3], %s967_s27 }
  0x2a   : > { %s243_s7 = sadd.s32 (%p1357_p9), %s1020_s29, %s969_s28 }
  0x2b   : > { %s971_s20 = sshll.u32 (%p1357_p9), %s243_s7, 2 }
  0x2c   : > { %s1390_s9 = scalar_lea.vmem (%p1357_p9), %s1593_s1, %s971_s20 }
  0x2d   : > { %v335_v2 = vld [vmem:[%s1390_s9] sm:$0xff] (%p1357_p9)  ;;  %v337_v3 = vld [vmem:[%s1390_s9 + $0x10] sm:$0xff] (%p1357_p9) }
  0x2e   : > { %v339_v4 = vld [vmem:[%s1390_s9 + $0x20] sm:$0xff]  ;;  %336 = vst [vmem:[%s1395_s10] sm:$0xff] %v335_v2  ;;  %338 = vst [vmem:[%s1395_s10 + $0x8] sm:$0xff] %v337_v3  ;;  %v341_v5 = vld [vmem:[%s1390_s9 + $0x30] sm:$0xff] }
  0x2f   : > { %340 = vst [vmem:[%s1395_s10 + $0x10] sm:$0xff] %v339_v4  ;;  %v343_v6 = vld [vmem:[%s1390_s9 + $0x40] sm:$0xff]  ;;  %v345_v7 = vld [vmem:[%s1390_s9 + $0x50] sm:$0xff]  ;;  %342 = vst [vmem:[%s1395_s10 + $0x18] sm:$0xff] %v341_v5 }
  0x30   : > { %344 = vst [vmem:[%s1395_s10 + $0x20] sm:$0xff] %v343_v6  ;;  %346 = vst [vmem:[%s1395_s10 + $0x28] sm:$0xff] %v345_v7  ;;  %v347_v8 = vld [vmem:[%s1390_s9 + $0x60] sm:$0xff]  ;;  %v349_v9 = vld [vmem:[%s1390_s9 + $0x70] sm:$0xff] }
  0x31   : > { %v351_v10 = vld [vmem:[%s1390_s9 + $0x80] sm:$0xff]  ;;  %348 = vst [vmem:[%s1395_s10 + $0x30] sm:$0xff] %v347_v8  ;;  %350 = vst [vmem:[%s1395_s10 + $0x38] sm:$0xff] %v349_v9  ;;  %v353_v11 = vld [vmem:[%s1390_s9 + $0x90] sm:$0xff] }
  0x32   : > { %352 = vst [vmem:[%s1395_s10 + $0x40] sm:$0xff] %v351_v10  ;;  %v355_v12 = vld [vmem:[%s1390_s9 + $0xa0] sm:$0xff]  ;;  %v357_v13 = vld [vmem:[%s1390_s9 + $0xb0] sm:$0xff]  ;;  %354 = vst [vmem:[%s1395_s10 + $0x48] sm:$0xff] %v353_v11 }
  0x33   : > { %356 = vst [vmem:[%s1395_s10 + $0x50] sm:$0xff] %v355_v12  ;;  %358 = vst [vmem:[%s1395_s10 + $0x58] sm:$0xff] %v357_v13  ;;  %v359_v14 = vld [vmem:[%s1390_s9 + $0xc0] sm:$0xff]  ;;  %v361_v15 = vld [vmem:[%s1390_s9 + $0xd0] sm:$0xff] }
  0x34   : > { %v363_v16 = vld [vmem:[%s1390_s9 + $0xe0] sm:$0xff]  ;;  %360 = vst [vmem:[%s1395_s10 + $0x60] sm:$0xff] %v359_v14  ;;  %362 = vst [vmem:[%s1395_s10 + $0x68] sm:$0xff] %v361_v15  ;;  %v365_v17 = vld [vmem:[%s1390_s9 + $0xf0] sm:$0xff] }
  0x35   : > { %364 = vst [vmem:[%s1395_s10 + $0x70] sm:$0xff] %v363_v16  ;;  %v367_v18 = vld [vmem:[%s1390_s9 + $0x100] sm:$0xff]  ;;  %v369_v19 = vld [vmem:[%s1390_s9 + $0x110] sm:$0xff]  ;;  %366 = vst [vmem:[%s1395_s10 + $0x78] sm:$0xff] %v365_v17 }
  0x36   : > { %368 = vst [vmem:[%s1395_s10 + $0x80] sm:$0xff] %v367_v18  ;;  %370 = vst [vmem:[%s1395_s10 + $0x88] sm:$0xff] %v369_v19  ;;  %v371_v20 = vld [vmem:[%s1390_s9 + $0x120] sm:$0xff]  ;;  %v373_v21 = vld [vmem:[%s1390_s9 + $0x130] sm:$0xff] }
  0x37   : > { %v375_v22 = vld [vmem:[%s1390_s9 + $0x140] sm:$0xff]  ;;  %372 = vst [vmem:[%s1395_s10 + $0x90] sm:$0xff] %v371_v20  ;;  %374 = vst [vmem:[%s1395_s10 + $0x98] sm:$0xff] %v373_v21  ;;  %v377_v23 = vld [vmem:[%s1390_s9 + $0x150] sm:$0xff] }
  0x38   : > { %376 = vst [vmem:[%s1395_s10 + $0xa0] sm:$0xff] %v375_v22  ;;  %v379_v24 = vld [vmem:[%s1390_s9 + $0x160] sm:$0xff]  ;;  %v381_v25 = vld [vmem:[%s1390_s9 + $0x170] sm:$0xff]  ;;  %378 = vst [vmem:[%s1395_s10 + $0xa8] sm:$0xff] %v377_v23 }
  0x39   : > { %380 = vst [vmem:[%s1395_s10 + $0xb0] sm:$0xff] %v379_v24  ;;  %382 = vst [vmem:[%s1395_s10 + $0xb8] sm:$0xff] %v381_v25  ;;  %v383_v26 = vld [vmem:[%s1390_s9 + $0x180] sm:$0xff]  ;;  %v385_v27 = vld [vmem:[%s1390_s9 + $0x190] sm:$0xff] }
  0x3a   : > { %v387_v28 = vld [vmem:[%s1390_s9 + $0x1a0] sm:$0xff]  ;;  %384 = vst [vmem:[%s1395_s10 + $0xc0] sm:$0xff] %v383_v26  ;;  %386 = vst [vmem:[%s1395_s10 + $0xc8] sm:$0xff] %v385_v27  ;;  %v389_v29 = vld [vmem:[%s1390_s9 + $0x1b0] sm:$0xff] }
  0x3b   : > { %388 = vst [vmem:[%s1395_s10 + $0xd0] sm:$0xff] %v387_v28  ;;  %v391_v30 = vld [vmem:[%s1390_s9 + $0x1c0] sm:$0xff]  ;;  %v393_v31 = vld [vmem:[%s1390_s9 + $0x1d0] sm:$0xff]  ;;  %390 = vst [vmem:[%s1395_s10 + $0xd8] sm:$0xff] %v389_v29 }
  0x3c   : > { %392 = vst [vmem:[%s1395_s10 + $0xe0] sm:$0xff] %v391_v30  ;;  %394 = vst [vmem:[%s1395_s10 + $0xe8] sm:$0xff] %v393_v31  ;;  %v395_v32 = vld [vmem:[%s1390_s9 + $0x1e0] sm:$0xff]  ;;  %v397_v33 = vld [vmem:[%s1390_s9 + $0x1f0] sm:$0xff] }
  0x3d   : > { %396 = vst [vmem:[%s1395_s10 + $0xf0] sm:$0xff] %v395_v32  ;;  %398 = vst [vmem:[%s1395_s10 + $0xf8] sm:$0xff] %v397_v33 }
  0x3e PF: > { %p972_p0 = scmp.ge.s32.totalorder %s1248_s25, 1  ;;  %p419_p1 = scmp.lt.s32.totalorder %s1248_s25, 37 }
  0x40   : > { %p420_p2 = pnand %p972_p0, %p419_p1 }
  0x41   : > { %s426_s20 = sand.u32 (!%p420_p2), 1, %s1224_s19   ;;  %s433_s27 = sand.u32 (!%p420_p2), 1, %s1216_s17  }
  0x42   : > { %423 = sbr.rel (%p420_p2) target bundleno = 386 (0x182), region = 104  ;;  %s1462_s28 = sshll.u32 (!%p420_p2), %s426_s20, 4 }
  0x43   : > { %s974_s7 = sshll.u32 (!%p420_p2), %s433_s27, 8  ;;  %s466_s8 = sand.u32 (!%p420_p2), 1, %s1208_s15  }
  0x44   : > { %s976_s11 = sshll.u32 (!%p420_p2), %s1236_s22, 1  ;;  %s975_s26 = sshll.u32 (!%p420_p2), %s466_s8, 5 }
  0x45   : > { %p474_p3 = scmp.lt.s32.totalorder (!%p420_p2), %s976_s11, 3  ;;  %s428_s19 = scalar_lea.vmem (!%p420_p2), [#allocation2], %s1462_s28 }
  0x46   : > { %s1477_s10 = scalar_lea.vmem (!%p420_p2), [#allocation3], %s974_s7  ;;  %s1479_s20 = scalar_lea.vmem (!%p420_p2), [#allocation4], %s975_s26 }
  0x47   : > { %p978_p4 = scmp.ne.s32.totalorder (!%p420_p2), %s1232_s21, 0 }
  0x49   : > { %s1626_s11 = smov (!%p474_p3, %s976_s11), 3  ;;  %488 = sbr.rel (%p978_p4) target bundleno = 80 (0x50), region = 116 }
  0x4a   : > { %s476_s6 = scalar_lea.vmem %s1594_s2, %s1626_s11  ;;  %s481_s17 = scalar_lea.vmem %s1595_s3, %s1626_s11  ;;  %v1250_v34 = vmov (!%p978_p4), 0.0  }
  0x4b   : > { %489 = vst [vmem:[%s1479_s20] sm:$0xff] (!%p978_p4), %v1250_v34  ;;  %490 = vst [vmem:[%s1479_s20 + $0x8] sm:$0xff] (!%p978_p4), %v1250_v34 }
  0x4c   : > { %491 = vst [vmem:[%s1479_s20 + $0x10] sm:$0xff] (!%p978_p4), %v1250_v34  ;;  %492 = vst [vmem:[%s1479_s20 + $0x18] sm:$0xff] (!%p978_p4), %v1250_v34 }
  0x50 PF: > { %v1111_v35 = vld [vmem:[%s1477_s10 + $0x4] ss:$8 sps:$4 sm:$0xff]   ;;  %v1113_v36 = vld [vmem:[%s1477_s10] ss:$8 sps:$4 sm:$0xff]   ;;  %v1114_v37 = vld [vmem:[%s1477_s10 + $0x14] ss:$8 sps:$4 sm:$0xff]  }
  0x51   : > { %701 = vmatprep.subr.bf16.mxu0 %v1111_v35  ;;  %v1116_v38 = vld [vmem:[%s1477_s10 + $0x10] ss:$8 sps:$4 sm:$0xff]   ;;  %v1117_v39 = vld [vmem:[%s1477_s10 + $0x24] ss:$8 sps:$4 sm:$0xff]   ;;  %v1119_v40 = vld [vmem:[%s1477_s10 + $0x20] ss:$8 sps:$4 sm:$0xff]  }
  0x52   : > { %702 = vmatpush1.bf16.msra.mxu0 %v1113_v36  ;;  %v1120_v41 = vld [vmem:[%s1477_s10 + $0x34] ss:$8 sps:$4 sm:$0xff]   ;;  %v1122_v42 = vld [vmem:[%s1477_s10 + $0x30] ss:$8 sps:$4 sm:$0xff]   ;;  %v1123_v43 = vld [vmem:[%s1477_s10 + $0x44] ss:$8 sps:$4 sm:$0xff]  }
  0x53   : > { %703 = vmatprep.subr.bf16.mxu0 %v1114_v37  ;;  %v1125_v44 = vld [vmem:[%s1477_s10 + $0x40] ss:$8 sps:$4 sm:$0xff]   ;;  %v1126_v45 = vld [vmem:[%s1477_s10 + $0x54] ss:$8 sps:$4 sm:$0xff]   ;;  %v1128_v46 = vld [vmem:[%s1477_s10 + $0x50] ss:$8 sps:$4 sm:$0xff]  }
  0x54   : > { %v1129_v47 = vld [vmem:[%s1477_s10 + $0x64] ss:$8 sps:$4 sm:$0xff]   ;;  %v1131_v49 = vld [vmem:[%s1477_s10 + $0x60] ss:$8 sps:$4 sm:$0xff]   ;;  %v1132_v50 = vld [vmem:[%s1477_s10 + $0x74] ss:$8 sps:$4 sm:$0xff]  }
  0x55   : > { %v1161_v48 = vld [vmem:[%s428_s19 + $0x4] ss:$8 sps:$4 sm:$0xff]   ;;  %v1134_v51 = vld [vmem:[%s1477_s10 + $0x70] ss:$8 sps:$4 sm:$0xff]   ;;  %v1137_v53 = vld [vmem:[%s1477_s10 + $0x80] ss:$8 sps:$4 sm:$0xff]  }
  0x56   : > { %704 = vmatpush1.bf16.msra.mxu0 %v1116_v38  ;;  %733 = vmatprep.mubr.bf16.mxu0 %v1161_v48  ;;  %v1135_v52 = vld [vmem:[%s1477_s10 + $0x84] ss:$8 sps:$4 sm:$0xff]   ;;  %v1138_v54 = vld [vmem:[%s1477_s10 + $0x94] ss:$8 sps:$4 sm:$0xff]   ;;  %v1140_v55 = vld [vmem:[%s1477_s10 + $0x90] ss:$8 sps:$4 sm:$0xff]  }
  0x57   : > { %705 = vmatprep.subr.bf16.mxu0 %v1117_v39  ;;  %v1141_v56 = vld [vmem:[%s1477_s10 + $0xa4] ss:$8 sps:$4 sm:$0xff]   ;;  %v1143_v57 = vld [vmem:[%s1477_s10 + $0xa0] ss:$8 sps:$4 sm:$0xff]   ;;  %v1144_v58 = vld [vmem:[%s1477_s10 + $0xb4] ss:$8 sps:$4 sm:$0xff]  }
  0x58   : > { %v1146_v59 = vld [vmem:[%s1477_s10 + $0xb0] ss:$8 sps:$4 sm:$0xff]   ;;  %v1147_v60 = vld [vmem:[%s1477_s10 + $0xc4] ss:$8 sps:$4 sm:$0xff]   ;;  %v1149_v61 = vld [vmem:[%s1477_s10 + $0xc0] ss:$8 sps:$4 sm:$0xff]  }
  0x59   : > { %v1150_v62 = vld [vmem:[%s1477_s10 + $0xd4] ss:$8 sps:$4 sm:$0xff]   ;;  %v1152_v63 = vld [vmem:[%s1477_s10 + $0xd0] ss:$8 sps:$4 sm:$0xff]   ;;  %v1153_v0 = vld [vmem:[%s1477_s10 + $0xe4] ss:$8 sps:$4 sm:$0xff]  }
  0x5a   : > { %706 = vmatpush1.bf16.msra.mxu0 %v1119_v40  ;;  %v1155_v1 = vld [vmem:[%s1477_s10 + $0xe0] ss:$8 sps:$4 sm:$0xff]   ;;  %v1156_v2 = vld [vmem:[%s1477_s10 + $0xf4] ss:$8 sps:$4 sm:$0xff]   ;;  %v1158_v3 = vld [vmem:[%s1477_s10 + $0xf0] ss:$8 sps:$4 sm:$0xff]  }
  0x5b   : > { %707 = vmatprep.subr.bf16.mxu0 %v1120_v41  ;;  %v1159_v4 = vld [vmem:[%s428_s19] ss:$8 sps:$4 sm:$0xff]   ;;  %p1013_p5 = scmp.ne.s32.totalorder %s1232_s21, 17 }
  0x5c   : > { %v493_v5 = vld [vmem:[%s1479_s20] sm:$0xff]  ;;  %v494_v6 = vld [vmem:[%s1479_s20 + $0x8] sm:$0xff]  ;;  %v495_v8 = vld [vmem:[%s1479_s20 + $0x10] sm:$0xff]  ;;  %v762_v17 = vlaneseq (!%p1013_p5) }
  0x5d   : > { %v496_v11 = vld [vmem:[%s1479_s20 + $0x18] sm:$0xff]  ;;  %v760_v19 = vld [vmem:[%s476_s6] sm:$0x3] (!%p1013_p5) }
  0x5e   : > { %708 = vmatpush1.bf16.msra.mxu0 %v1122_v42  ;;  %v763_v18 = vshrl.u32 (!%p1013_p5), %v762_v17, 7  ;;  %v776_v20 = vld [vmem:[%s481_s17] sm:$0x3] (!%p1013_p5) }
  0x5f   : > { %709 = vmatprep.subr.bf16.mxu0 %v1123_v43 }
  0x60   : > { %v764_v22 = vsub.s32 (!%p1013_p5), 0, %v763_v18  ;;  %v768_v23 = vsub.s32 (!%p1013_p5), 1, %v763_v18 }
  0x62   : > { %710 = vmatpush1.bf16.msra.mxu0 %v1125_v44  ;;  %v765_v27 = vrot.slane (!%p1013_p5), %v760_v19, %v764_v22  ;;  %v781_v28 = vrot.slane (!%p1013_p5), %v776_v20, %v764_v22  ;;  %v769_v29 = vrot.slane (!%p1013_p5), %v760_v19, %v768_v23  ;;  %v785_v30 = vrot.slane (!%p1013_p5), %v776_v20, %v768_v23 }
  0x63   : > { %711 = vmatprep.subr.bf16.mxu0 %v1126_v45 }
  0x66   : > { %712 = vmatpush1.bf16.msra.mxu0 %v1128_v46 }
  0x67   : > { %713 = vmatprep.subr.bf16.mxu0 %v1129_v47 }
  0x6a   : > { %714 = vmatpush1.bf16.msra.mxu0 %v1131_v49 }
  0x6b   : > { %715 = vmatprep.subr.bf16.mxu0 %v1132_v50 }
  0x6e   : > { %716 = vmatpush1.bf16.msra.mxu0 %v1134_v51 }
  0x6f   : > { %717 = vmatprep.subr.bf16.mxu0 %v1135_v52 }
  0x72   : > { %718 = vmatpush1.bf16.msra.mxu0 %v1137_v53 }
  0x73   : > { %719 = vmatprep.subr.bf16.mxu0 %v1138_v54 }
  0x76   : > { %720 = vmatpush1.bf16.msra.mxu0 %v1140_v55 }
  0x77   : > { %721 = vmatprep.subr.bf16.mxu0 %v1141_v56 }
  0x7a   : > { %722 = vmatpush1.bf16.msra.mxu0 %v1143_v57 }
  0x7b   : > { %723 = vmatprep.subr.bf16.mxu0 %v1144_v58 }
  0x7e   : > { %724 = vmatpush1.bf16.msra.mxu0 %v1146_v59 }
  0x7f   : > { %725 = vmatprep.subr.bf16.mxu0 %v1147_v60 }
  0x82   : > { %726 = vmatpush1.bf16.msra.mxu0 %v1149_v61 }
  0x83   : > { %727 = vmatprep.subr.bf16.mxu0 %v1150_v62 }
  0x86   : > { %728 = vmatpush1.bf16.msra.mxu0 %v1152_v63 }
  0x87   : > { %729 = vmatprep.subr.bf16.mxu0 %v1153_v0 }
  0x8a   : > { %730 = vmatpush1.bf16.msra.mxu0 %v1155_v1 }
  0x8b   : > { %731 = vmatprep.subr.bf16.mxu0 %v1156_v2 }
  0x8e   : > { %732 = vmatpush1.bf16.msra.mxu0 %v1158_v3 }
  0x91   : > { %734 = vmatmul.mubr.bf16.vlgmr.msra.gmra.mrb[0].mxu0 %v1159_v4 }
 0x164   : > { %v735_v7 = vpop.f32.mrb[0].mxu0  ;;  %755 = sbr.rel (%p1013_p5) target bundleno = 378 (0x17a), region = 120 }
 0x165   : > { %v744_v9 = vadd.f32 %v735_v7, %v493_v5  ;;  %v737_v10 = vpop.f32.mrb[1].mxu0 }
 0x166   : > { %v745_v12 = vadd.f32 %v737_v10, %v494_v6  ;;  %v739_v13 = vpop.f32.mrb[2].mxu0 }
 0x167   : > { %748 = vst [vmem:[%s1479_s20] sm:$0xff] %v744_v9  ;;  %v746_v14 = vadd.f32 %v739_v13, %v495_v8  ;;  %v741_v15 = vpop.f32.mrb[3].mxu0 }
 0x168   : > { %749 = vst [vmem:[%s1479_s20 + $0x8] sm:$0xff] %v745_v12  ;;  %v747_v16 = vadd.f32 %v741_v15, %v496_v11 }
 0x169   : > { %750 = vst [vmem:[%s1479_s20 + $0x10] sm:$0xff] %v746_v14 }
 0x16a   : > { %751 = vst [vmem:[%s1479_s20 + $0x18] sm:$0xff] %v747_v16 }
 0x16e   : > { %v756_v21 = vld [vmem:[%s1479_s20] sm:$0xff] }
 0x16f   : > { %v757_v24 = vld [vmem:[%s1479_s20 + $0x8] sm:$0xff]  ;;  %v772_v31 = vmul.f32 %v765_v27, %v756_v21 }
 0x170   : > { %v758_v25 = vld [vmem:[%s1479_s20 + $0x10] sm:$0xff]  ;;  %v773_v32 = vmul.f32 %v769_v29, %v757_v24 }
 0x171   : > { %v759_v26 = vld [vmem:[%s1479_s20 + $0x18] sm:$0xff]  ;;  %v774_v33 = vmul.f32 %v765_v27, %v758_v25  ;;  %v788_v35 = vadd.f32 %v781_v28, %v772_v31 }
 0x172   : > { %v775_v34 = vmul.f32 %v769_v29, %v759_v26  ;;  %v789_v36 = vadd.f32 %v785_v30, %v773_v32 }
 0x173   : > { %v790_v37 = vadd.f32 %v781_v28, %v774_v33  ;;  %vm792_vm0 = vcmp.ge.f32.partialorder %v788_v35, 0.0  ;;  %v796_v39 = vmul.f32 0.2, %v788_v35 }
 0x174   : > { %v791_v38 = vadd.f32 %v785_v30, %v775_v34  ;;  %vm793_vm1 = vcmp.ge.f32.partialorder %v789_v36, 0.0  ;;  %v797_v40 = vmul.f32 0.2, %v789_v36 }
 0x175   : > { %vm794_vm2 = vcmp.ge.f32.partialorder %v790_v37, 0.0  ;;  %v798_v41 = vmul.f32 0.2, %v790_v37  ;;  %v800_v43 = vsel %vm792_vm0, %v788_v35, %v796_v39 }
 0x176   : > { %vm795_vm3 = vcmp.ge.f32.partialorder %v791_v38, 0.0  ;;  %v799_v42 = vmul.f32 0.2, %v791_v38  ;;  %v801_v44 = vsel %vm793_vm1, %v789_v36, %v797_v40  ;;  %804 = vst [vmem:[%s1479_s20] sm:$0xff] %v800_v43 }
 0x177   : > { %805 = vst [vmem:[%s1479_s20 + $0x8] sm:$0xff] %v801_v44  ;;  %v802_v45 = vsel %vm794_vm2, %v790_v37, %v798_v41 }
 0x178   : > { %v803_v46 = vsel %vm795_vm3, %v791_v38, %v799_v42  ;;  %806 = vst [vmem:[%s1479_s20 + $0x10] sm:$0xff] %v802_v45 }
 0x179   : > { %807 = vst [vmem:[%s1479_s20 + $0x18] sm:$0xff] %v803_v46 }
 0x17a PF: > { %814 = sbr.rel (!%p1370_p12) target bundleno = 386 (0x182), region = 124  ;;  %s1021_s21 = sshll.u32 (%p1370_p12), %s1236_s22, 4 }
 0x17b   : > { %s820_s26 = scalar_lea.vmem (%p1370_p12), %s1596_s4, %s1021_s21 }
 0x17d   : > { %v833_v47 = vld [vmem:[%s1479_s20] sm:$0xff] (%p1370_p12) }
 0x17e   : > { %v835_v48 = vld [vmem:[%s1479_s20 + $0x8] sm:$0xff] (%p1370_p12)  ;;  %834 = vst [vmem:[%s820_s26] sm:$0xff] (%p1370_p12), %v833_v47 }
 0x17f   : > { %v837_v49 = vld [vmem:[%s1479_s20 + $0x10] sm:$0xff] (%p1370_p12)  ;;  %836 = vst [vmem:[%s820_s26 + $0x8] sm:$0xff] (%p1370_p12), %v835_v48 }
 0x180   : > { %v839_v50 = vld [vmem:[%s1479_s20 + $0x18] sm:$0xff] (%p1370_p12)  ;;  %838 = vst [vmem:[%s820_s26 + $0x20] sm:$0xff] (%p1370_p12), %v837_v49 }
 0x181   : > { %840 = vst [vmem:[%s820_s26 + $0x28] sm:$0xff] %v839_v50 }
 0x182 PF: > { %s14_s25 = sadd.s32 1, %s1248_s25   ;;  %s1607_s19 = sld [smem:[#allocation5_spill]] }
 0x183   : > { %p11_p6 = scmp.ge.s32.totalorder %s14_s25, 38   ;;  %s1608_s20 = sld [smem:[#allocation8_spill]] }
 0x184   : > { %s1609_s14 = sld [smem:[#allocation6_spill]]  ;;  %s1610_s5 = sld [smem:[#allocation7_spill]] }
 0x185   : > { %s1611_s15 = smov %s1212_s16  ;;  %s1612_s16 = smov %s1368_s13 }
 0x186   : > { %s1613_s17 = smov %s1220_s18  ;;  %s1614_s18 = smov %s1365_s12 }
 0x187   : > { %s1615_s21 = smov %s1240_s23  ;;  %s1616_s22 = smov %s1244_s24 }
 0x188   :  { %13 = sbr.rel (!%p11_p6) target bundleno = 6 (0x6), region = 192 }
 0x18a   : > { %s1617_s23 = smov %s1609_s14  ;;  %s1618_s24 = smov %s1610_s5 }

// kernel: discriminator_forward.17
= control target key start
LH: loop header
LB: loop body
LE: loop exit
PB: predicated region body
PF: predicated region fallthrough
CT: control target
= control target key end

     0   :  { %s881_s15 = smov 0   ;;  %s883_s16 = smov 0   ;;  %s1009_s0 = inlined_call_operand.vmem [shape: bf16[16,4608], index: 0, kind: input, shape index: {}]   ;;  %s1010_s1 = inlined_call_operand.vmem [shape: bf16[4608,128], index: 1, kind: input, shape index: {}]   ;;  %s1011_s2 = inlined_call_operand.vmem [shape: f32[1,128], index: 2, kind: input, shape index: {}]   ;;  %s1012_s3 = inlined_call_operand.vmem [shape: f32[1,128], index: 3, kind: input, shape index: {}]   ;;  %s1013_s4 = inlined_call_operand.vmem [shape: f32[16,128], index: 4, kind: output, shape index: {}]  }
   0x1   :  { %s885_s17 = smov 0   ;;  %s887_s18 = smov 0  }
   0x2   :  { %s889_s19 = smov 0  }
   0x3 LB: > { %s26_s20 = sadd.s32 1, %s849_s18  ;;  %p49_p1 = scmp.ne.s32.totalorder %s841_s16, %s837_s15  ;;  %s853_s19 = sphi %s889_s19, %s14_s19   ;;  %s849_s18 = sphi %s887_s18, %s1017_s18   ;;  %s845_s17 = sphi %s885_s17, %s1016_s17   ;;  %s841_s16 = sphi %s883_s16, %s1015_s16   ;;  %s837_s15 = sphi %s881_s15, %s1014_s15  }
   0x4   : > { %p27_p0 = scmp.ge.s32.totalorder %s26_s20, 18  ;;  %p50_p2 = scmp.eq.s32.totalorder %s853_s19, 0 }
   0x5   : > { %s42_s22 = sadd.s32 1, %s841_s16  ;;  %p690_p5 = scmp.ge.s32.totalorder %s853_s19, 18 }
   0x6   : > { %s1019_s20 = smov (%p27_p0, %s26_s20), 0  ;;  %p51_p3 = por %p50_p2, %p49_p1 }
   0x7   : > { %s38_s21 = ssub.s32 %s849_s18, %s1019_s20  ;;  %195 = sbr.rel (%p690_p5) target bundleno = 21 (0x15), region = 24 }
   0x8   : > { %p40_p4 = scmp.eq.s32.totalorder %s38_s21, 0 }
   0xa   : > { %s916_s23 = scalar_select %p40_p4, %s841_s16, %s42_s22  }
   0xe   : > { %198 = sbr.rel (!%p51_p3) target bundleno = 21 (0x15), region = 28  ;;  %s200_s24 = sand.u32 (%p51_p3), 1, %s841_s16  }
   0xf   : > { %s724_s25 = sshll.u32 (%p51_p3), %s849_s18, 3  ;;  %s691_s26 = sshll.u32 (%p51_p3), %s200_s24, 4 }
  0x10   : > { %s208_s29 = scalar_lea.vmem (%p51_p3), %s1009_s0, %s724_s25  ;;  %s202_s30 = scalar_lea.vmem (%p51_p3), [#allocation2], %s691_s26 }
  0x11   : > { %v238_v0 = vld [vmem:[%s208_s29] sm:$0xff] (%p51_p3)  ;;  %v240_v1 = vld [vmem:[%s208_s29 + $0x90] sm:$0xff] (%p51_p3) }
  0x12   : > { %239 = vst [vmem:[%s202_s30] sm:$0xff] (%p51_p3), %v238_v0  ;;  %241 = vst [vmem:[%s202_s30 + $0x8] sm:$0xff] (%p51_p3), %v240_v1 }
  0x15 PF: > { %p694_p6 = scmp.ge.s32.totalorder %s853_s19, 1  ;;  %p258_p7 = scmp.lt.s32.totalorder %s853_s19, 19 }
  0x17   : > { %p259_p8 = pnand %p694_p6, %p258_p7 }
  0x18   : > { %s265_s5 = sand.u32 (!%p259_p8), 1, %s837_s15   ;;  %s696_s6 = sshll.u32 (!%p259_p8), %s845_s17, 5 }
  0x19   : > { %262 = sbr.rel (%p259_p8) target bundleno = 332 (0x14c), region = 70  ;;  %s928_s7 = sshll.u32 (!%p259_p8), %s265_s5, 4 }
  0x1a   : > { %p310_p9 = scmp.lt.s32.totalorder (!%p259_p8), %s696_s6, 575  ;;  %s267_s12 = scalar_lea.vmem (!%p259_p8), [#allocation2], %s928_s7 }
  0x1b   : > { %p698_p10 = scmp.ne.s32.totalorder (!%p259_p8), %s845_s17, 0 }
  0x20   : > { %s1021_s6 = smov (!%p310_p9, %s696_s6), 575  ;;  %337 = sbr.rel (%p698_p10) target bundleno = 39 (0x27), region = 78 }
  0x21   : > { %s697_s8 = sshll.u32 %s1021_s6, 2  ;;  %v855_v2 = vmov (!%p698_p10), 0.0  }
  0x22   : > { %s933_s11 = scalar_lea.vmem %s1010_s1, %s697_s8  ;;  %338 = vst [vmem:[%s1013_s4] sm:$0xff] (!%p698_p10), %v855_v2  ;;  %339 = vst [vmem:[%s1013_s4 + $0x8] sm:$0xff] (!%p698_p10), %v855_v2 }
  0x27 PF: > { %v788_v3 = vld [vmem:[%s933_s11 + $0x40] sm:$0xff]   ;;  %v790_v5 = vld [vmem:[%s933_s11 + $0x48] sm:$0xff]   ;;  %v792_v7 = vld [vmem:[%s933_s11 + $0x50] sm:$0xff]   ;;  %p717_p11 = scmp.ne.s32.totalorder %s845_s17, 17 }
  0x28   : > { %v789_v4 = vld [vmem:[%s933_s11] sm:$0xff]   ;;  %725 = vmatprep.subr.bf16.mxu0 %v788_v3  ;;  %v791_v6 = vld [vmem:[%s933_s11 + $0x8] sm:$0xff]   ;;  %v793_v8 = vld [vmem:[%s933_s11 + $0x10] sm:$0xff]  }
  0x29   : > { %726 = vmatpush3.bf16.msra.mxu0 %v789_v4  ;;  %v794_v9 = vld [vmem:[%s933_s11 + $0x58] sm:$0xff]   ;;  %v796_v11 = vld [vmem:[%s933_s11 + $0x60] sm:$0xff]   ;;  %v798_v13 = vld [vmem:[%s933_s11 + $0x68] sm:$0xff]  }
  0x2a   : > { %727 = vmatprep.subr.bf16.mxu0 %v790_v5  ;;  %v795_v10 = vld [vmem:[%s933_s11 + $0x18] sm:$0xff]   ;;  %v797_v12 = vld [vmem:[%s933_s11 + $0x20] sm:$0xff]   ;;  %v799_v15 = vld [vmem:[%s933_s11 + $0x28] sm:$0xff]  }
  0x2b   : > { %v806_v14 = vld [vmem:[%s267_s12 + $0x4] ss:$8 sps:$4 sm:$0xff]   ;;  %v804_v20 = vld [vmem:[%s267_s12] ss:$8 sps:$4 sm:$0xff]  }
  0x2c   : > { %514 = vmatprep.mubr.bf16.mxu0 %v806_v14  ;;  %v800_v16 = vld [vmem:[%s933_s11 + $0x70] sm:$0xff]   ;;  %v802_v18 = vld [vmem:[%s933_s11 + $0x78] sm:$0xff]   ;;  %v340_v22 = vld [vmem:[%s1013_s4] sm:$0xff] }
  0x2d   : > { %728 = vmatpush3.bf16.msra.mxu0 %v791_v6  ;;  %v801_v17 = vld [vmem:[%s933_s11 + $0x30] sm:$0xff]   ;;  %v803_v19 = vld [vmem:[%s933_s11 + $0x38] sm:$0xff]   ;;  %v341_v26 = vld [vmem:[%s1013_s4 + $0x8] sm:$0xff] }
  0x2e   : > { %729 = vmatprep.subr.bf16.mxu0 %v792_v7  ;;  %v718_v32 = vld [vmem:[%s1011_s2] ss:$0 sm:$0xff] (!%p717_p11) }
  0x2f   : > { %v719_v33 = vld [vmem:[%s1012_s3] ss:$0 sm:$0xff] (!%p717_p11) }
  0x31   : > { %730 = vmatpush3.bf16.msra.mxu0 %v793_v8 }
  0x32   : > { %731 = vmatprep.subr.bf16.mxu0 %v794_v9 }
  0x35   : > { %732 = vmatpush3.bf16.msra.mxu0 %v795_v10 }
  0x36   : > { %733 = vmatprep.subr.bf16.mxu0 %v796_v11 }
  0x39   : > { %734 = vmatpush3.bf16.msra.mxu0 %v797_v12 }
  0x3a   : > { %735 = vmatprep.subr.bf16.mxu0 %v798_v13 }
  0x3d   : > { %736 = vmatpush3.bf16.msra.mxu0 %v799_v15 }
  0x3e   : > { %737 = vmatprep.subr.bf16.mxu0 %v800_v16 }
  0x41   : > { %738 = vmatpush3.bf16.msra.mxu0 %v801_v17 }
  0x42   : > { %739 = vmatprep.subr.bf16.mxu0 %v802_v18 }
  0x45   : > { %740 = vmatpush3.bf16.msra.mxu0 %v803_v19 }
  0x48   : > { %515 = vmatmul.mubr.bf16.vlgmr.msra.gmra.mrb[0].mxu0 %v804_v20 }
 0x11b   : > { %v741_v21 = vpop.f32.mrb[0].mxu0 }
 0x11c   : > { %v742_v23 = vpop.f32.mrb[1].mxu0 }
 0x11d   : > { %v743_v24 = vadd.f32 %v742_v23, %v741_v21  ;;  %v744_v25 = vpop.f32.mrb[2].mxu0  ;;  %530 = sbr.rel (%p717_p11) target bundleno = 332 (0x14c), region = 82 }
 0x11e   : > { %v745_v27 = vpop.f32.mrb[3].mxu0 }
 0x11f   : > { %v523_v28 = vadd.f32 %v743_v24, %v340_v22  ;;  %v746_v29 = vadd.f32 %v745_v27, %v744_v25 }
 0x121   : > { %525 = vst [vmem:[%s1013_s4] sm:$0xff] %v523_v28  ;;  %v524_v30 = vadd.f32 %v746_v29, %v341_v26 }
 0x123   : > { %526 = vst [vmem:[%s1013_s4 + $0x8] sm:$0xff] %v524_v30 }
 0x128   : > { %v531_v31 = vld [vmem:[%s1013_s4] sm:$0xff] }
 0x129   : > { %v540_v34 = vmul.f32 %v718_v32, %v531_v31 }
 0x12a   : > { %v532_v35 = vld [vmem:[%s1013_s4 + $0x8] sm:$0xff] }
 0x12b   : > { %v541_v36 = vmul.f32 %v718_v32, %v532_v35  ;;  %v549_v37 = vadd.f32 %v719_v33, %v540_v34 }
 0x12d   : > { %v550_v38 = vadd.f32 %v719_v33, %v541_v36  ;;  %v551_v39 = vsub.f32 0.0, %v549_v37 }
 0x12f   : > { %v552_v40 = vsub.f32 0.0, %v550_v38  ;;  %v553_v41 = vmul.f32 1.442695, %v551_v39 }
 0x131   : > { %v555_v42 = vmul.f32 1.442695, %v552_v40  ;;  %807 = vpow2.f32 %v553_v41 }
 0x133   : > { %809 = vpow2.f32 %v555_v42 }
 0x13b   : > { %v808_v43 = vpop.eup %807 }
 0x13c   : > { %v557_v45 = vadd.f32 1.0, %v808_v43 }
 0x13d   : > { %v810_v44 = vpop.eup %809 }
 0x13e   : > { %v558_v46 = vadd.f32 1.0, %v810_v44  ;;  %811 = vrcp.f32 %v557_v45 }
 0x140   : > { %813 = vrcp.f32 %v558_v46 }
 0x148   : > { %v812_v47 = vpop.eup %811 }
 0x149   : > { %561 = vst [vmem:[%s1013_s4] sm:$0xff] %v812_v47 }
 0x14a   : > { %v814_v48 = vpop.eup %813 }
 0x14b   : > { %562 = vst [vmem:[%s1013_s4 + $0x8] sm:$0xff] %v814_v48 }
 0x14c PF: > { %s14_s19 = sadd.s32 1, %s853_s19   ;;  %s1014_s15 = smov %s841_s16 }
 0x14d   : > { %p11_p12 = scmp.ge.s32.totalorder %s14_s19, 20   ;;  %s1015_s16 = smov %s916_s23 }
 0x14e   : > { %s1016_s17 = smov %s849_s18  ;;  %s1017_s18 = smov %s1019_s20 }
 0x14f   :  { %13 = sbr.rel (!%p11_p12) target bundleno = 3 (0x3), region = 126 }

</bundles_post_ra>
